<compile_context>
chip_gen: v6e
topology: v6e:2x2x1
jax: 0.10.0
libtpu: 0.0.40
codegen_flags: <defaults>
</compile_context>

<pallas_src>
import functools

import jax
import jax.numpy as jnp
from jax.experimental import pallas as pl
from jax.experimental.pallas import tpu as pltpu


def _round_up(x, m):
    return (x + m - 1) // m * m


# ----------------------------------------------------------------------------
# Pallas kernel: tiled matmul + bias + (ReLU | row-wise L2 norm) epilogue
# ----------------------------------------------------------------------------
def _matmul_epilogue_kernel(x_ref, w_ref, b_ref, o_ref, acc_ref, *, epilogue):
    @pl.when(pl.program_id(2) == 0)
    def _init():
        acc_ref[...] = jnp.zeros_like(acc_ref)

    acc_ref[...] += jnp.dot(x_ref[...], w_ref[...],
                            preferred_element_type=jnp.float32)

    @pl.when(pl.program_id(2) == pl.num_programs(2) - 1)
    def _finalize():
        y = acc_ref[...] + b_ref[...]          # f32 epilogue
        if epilogue == "relu":
            o_ref[...] = jnp.maximum(y, 0.0).astype(o_ref.dtype)
        elif epilogue == "l2norm":
            # F.normalize(p=2, dim=1): x / max(||x||, eps) == x * rsqrt(max(ss, eps^2))
            ss = jnp.sum(y * y, axis=1, keepdims=True)
            inv = jax.lax.rsqrt(jnp.maximum(ss, 1e-24))
            o_ref[...] = (y * inv).astype(o_ref.dtype)
        else:
            raise ValueError(epilogue)


def fused_matmul(x, w, b, *, epilogue, out_dtype, tm=256, tn=256, tk=512):
    """x: (M, K) bf16, w: (K, N) bf16, b: (1, N) f32 -> (M, Np) out_dtype.

    Pads M/K/N up to tile multiples (zero padding, exact); keeps the padded N
    (lane-dense zero channels) and slices off padded M rows.
    """
    M, K = x.shape
    K2, N = w.shape
    assert K == K2 and b.shape == (1, N)

    if epilogue == "l2norm":
        # Row reduction needs the full N dimension inside a single block.
        tn = _round_up(N, 128)
        if tn > 512:
            raise ValueError("l2norm epilogue requires N <= 512")
    tm = min(tm, _round_up(M, 16))       # sublane-friendly (bf16 packs 16 rows)
    tn = min(tn, _round_up(N, 128))      # lane-dense output blocks
    tk = min(tk, _round_up(K, 128))

    Mp, Kp, Np = _round_up(M, tm), _round_up(K, tk), _round_up(N, tn)
    if (Mp, Kp) != (M, K):
        x = jnp.pad(x, ((0, Mp - M), (0, Kp - K)))
    if (Kp, Np) != (K, N):
        w = jnp.pad(w, ((0, Kp - K), (0, Np - N)))
    if Np != N:
        b = jnp.pad(b, ((0, 0), (0, Np - N)))

    grid = (Mp // tm, Np // tn, Kp // tk)
    out = pl.pallas_call(
        functools.partial(_matmul_epilogue_kernel, epilogue=epilogue),
        out_shape=jax.ShapeDtypeStruct((Mp, Np), out_dtype),
        grid=grid,
        in_specs=[
            pl.BlockSpec((tm, tk), lambda i, j, k: (i, k)),
            pl.BlockSpec((tk, tn), lambda i, j, k: (k, j)),
            pl.BlockSpec((1, tn), lambda i, j, k: (0, j)),
        ],
        out_specs=pl.BlockSpec((tm, tn), lambda i, j, k: (i, j)),
        scratch_shapes=[pltpu.VMEM((tm, tn), jnp.float32)],
        compiler_params=pltpu.CompilerParams(
            dimension_semantics=("parallel", "parallel", "arbitrary"),
            vmem_limit_bytes=32 * 1024 * 1024,
        ),
    )(x, w, b)
    # Keep padded N (zero channels) for lane-dense downstream activations;
    # drop padded M rows.
    return out[:M] if Mp != M else out


# ----------------------------------------------------------------------------
# Parameter construction (deterministic, synthetic; BN folded, channels padded)
# ----------------------------------------------------------------------------
def _fold_bn(w_im2col, conv_bias, gamma, beta, mean, var, eps=1e-5):
    scale = gamma / jnp.sqrt(var + eps)
    return w_im2col * scale[None, :], beta + (conv_bias - mean) * scale


def make_params(key, input_channels=1, feature_dim=128, calib_hw=32):
    conv_cfg = [  # (cin, cout, k, stride, pad) -- mirrors the PyTorch module
        (input_channels, 32, 7, 2, 3),
        (32, 64, 5, 2, 2),
        (64, 128, 3, 2, 1),
        (128, 256, 3, 2, 1),
    ]
    params = {"convs": []}
    hw = calib_hw
    cin_pad = input_channels           # the raw input is not channel-padded
    for (cin, cout, k, s, p) in conv_cfg:
        key, kw_, kb_ = jax.random.split(key, 3)
        cout_pad = _round_up(cout, 128)   # lane-dense (>=128) activations
        w = 0.05 * jax.random.normal(kw_, (cout, cin, k, k), jnp.float32)
        bias = 0.01 * jax.random.normal(kb_, (cout,), jnp.float32)

        # Embed real weights into the channel-padded layout (zeros elsewhere).
        w_pad = jnp.zeros((cout_pad, cin_pad, k, k), jnp.float32)
        w_pad = w_pad.at[:cout, :cin].set(w)
        # im2col weight (Cin_pad*k*k, Cout_pad); row order (c, kh, kw) matches
        # lax.conv_general_dilated_patches channel ordering.
        w_im2col = w_pad.reshape(cout_pad, cin_pad * k * k).T

        # Eval-mode BatchNorm defaults: gamma=1, beta=0, mean=0, var=1
        # (padded channels get scale=1, bias=0 -> stay exactly zero).
        w_eff, b_eff = _fold_bn(
            w_im2col,
            jnp.zeros((cout_pad,), jnp.float32).at[:cout].set(bias),
            jnp.ones((cout_pad,), jnp.float32),
            jnp.zeros((cout_pad,), jnp.float32),
            jnp.zeros((cout_pad,), jnp.float32),
            jnp.ones((cout_pad,), jnp.float32))

        params["convs"].append(dict(
            w=w_eff.astype(jnp.bfloat16),
            b=b_eff.reshape(1, -1).astype(jnp.float32),
            k=k, s=s, p=p))
        cin_pad = cout_pad
        hw = (hw + 2 * p - k) // s + 1

    # fc1: fold the PyTorch NCHW flatten permutation into the weight rows so
    # fc1 consumes the NHWC-flattened conv4 activation directly (no runtime
    # transpose). conv4's cout (256) needs no channel padding.
    c_last, hf, wf = cin_pad, hw, hw
    conv_out_size = c_last * hf * wf     # analogue of _calculate_conv_output_size
    key, k1, k2, k3, k4 = jax.random.split(key, 5)
    fc1_w_nchw = 0.02 * jax.random.normal(k1, (conv_out_size, 512), jnp.float32)
    h_i = jnp.arange(hf)[:, None, None]
    w_i = jnp.arange(wf)[None, :, None]
    c_i = jnp.arange(c_last)[None, None, :]
    perm = (c_i * hf * wf + h_i * wf + w_i).reshape(-1)   # NHWC row -> NCHW row
    params["fc1_w"] = fc1_w_nchw[perm].astype(jnp.bfloat16)
    params["fc1_b"] = (0.01 * jax.random.normal(k2, (512,), jnp.float32)).reshape(1, -1)
    params["fc2_w"] = (0.02 * jax.random.normal(k3, (512, feature_dim),
                                                jnp.float32)).astype(jnp.bfloat16)
    params["fc2_b"] = (0.01 * jax.random.normal(k4, (feature_dim,),
                                                jnp.float32)).reshape(1, -1)
    return params


# ----------------------------------------------------------------------------
# Forward pass
# ----------------------------------------------------------------------------
def feature_extractor_forward(params, x_nchw):
    """x_nchw: (N, Cin, H, W) float32 -> (N, feature_dim) float32, unit-L2 rows."""
    n = x_nchw.shape[0]
    x = jnp.transpose(x_nchw, (0, 2, 3, 1)).astype(jnp.bfloat16)   # NHWC, bf16

    # TODO(synk): fuse the conv1 patch extraction into the Pallas kernel
    # (manual window DMA) to avoid materializing the k*k-expanded patches in HBM.
    for cp in params["convs"]:
        k, s, p = cp["k"], cp["s"], cp["p"]
        patches = jax.lax.conv_general_dilated_patches(
            x, filter_shape=(k, k), window_strides=(s, s),
            padding=((p, p), (p, p)),
            dimension_numbers=("NHWC", "HWIO", "NHWC"))
        nb, ho, wo, kf = patches.shape
        y = fused_matmul(patches.reshape(nb * ho * wo, kf), cp["w"], cp["b"],
                         epilogue="relu", out_dtype=jnp.bfloat16)
        x = y.reshape(nb, ho, wo, cp["w"].shape[1])

    x_flat = x.reshape(n, -1)   # NHWC flatten; NCHW permutation folded into fc1_w
    h = fused_matmul(x_flat, params["fc1_w"], params["fc1_b"],
                     epilogue="relu", out_dtype=jnp.bfloat16)
    # Dropout(p=0.5): eval-mode identity.
    out = fused_matmul(h, params["fc2_w"], params["fc2_b"],
                       epilogue="l2norm", out_dtype=jnp.float32)
    return out[:, :params["fc2_w"].shape[1]]


if __name__ == "__main__":
    key = jax.random.PRNGKey(0)
    batch, cin, hw, feat = 2, 1, 32, 128   # small stand-in for the 512x512 input

    kparams, kx = jax.random.split(key)
    params = make_params(kparams, input_channels=cin, feature_dim=feat, calib_hw=hw)
    x = jax.random.normal(kx, (batch, cin, hw, hw), dtype=jnp.float32)

    fwd = jax.jit(functools.partial(feature_extractor_forward, params))
    out = jax.block_until_ready(fwd(x))

    assert out.shape == (batch, feat), out.shape
    norms = jnp.linalg.norm(out, axis=1)
    assert bool(jnp.all(jnp.isfinite(out)))
    assert bool(jnp.all(jnp.abs(norms - 1.0) < 1e-3)), norms
    print("KERNEL_OK")
</pallas_src>

<mosaic_0001>
module attributes {stable_mosaic.version = 11 : i64} {
  func.func @_matmul_epilogue_kernel(%arg0: i32, %arg1: i32, %arg2: i32, %arg3: memref<256x128xbf16, #tpu.memory_space<vmem>>, %arg4: memref<128x128xbf16, #tpu.memory_space<vmem>>, %arg5: memref<1x128xf32, #tpu.memory_space<vmem>>, %arg6: memref<256x128xbf16, #tpu.memory_space<vmem>>, %arg7: memref<256x128xf32, #tpu.memory_space<vmem>>) attributes {dimension_semantics = [#tpu.dimension_semantics<parallel>, #tpu.dimension_semantics<parallel>, #tpu.dimension_semantics<arbitrary>], iteration_bounds = array<i64: 2, 1, 1>, scalar_prefetch = 0 : i64, scratch_operands = 1 : i64, tpu.core_type = #tpu.core_type<tc>, window_params = [{transform_indices = @transform_0, window_bounds = array<i64: 256, 128>}, {transform_indices = @transform_1, window_bounds = array<i64: 128, 128>}, {transform_indices = @transform_2, window_bounds = array<i64: 1, 128>}, {transform_indices = @transform_3, window_bounds = array<i64: 256, 128>}]} {
    %c0_i32 = arith.constant 0 : i32
    %0 = arith.cmpi eq, %arg2, %c0_i32 : i32
    %1 = arith.extui %0 : i1 to i32
    %c0_i32_0 = arith.constant 0 : i32
    %2 = arith.cmpi ne, %1, %c0_i32_0 : i32
    scf.if %2 {
      %cst_10 = arith.constant 0.000000e+00 : f32
      %12 = vector.broadcast %cst_10 : f32 to vector<256x128xf32>
      %c0_11 = arith.constant 0 : index
      %c0_12 = arith.constant 0 : index
      %13 = vector.load %arg7[%c0_11, %c0_12] : memref<256x128xf32, #tpu.memory_space<vmem>>, vector<256x128xf32>
      tpu.vector_store %arg7[%c0_11, %c0_12], %12 {strides = array<i32>} : memref<256x128xf32, #tpu.memory_space<vmem>>, vector<256x128xf32>,
    } else {
    }
    %c0 = arith.constant 0 : index
    %c0_1 = arith.constant 0 : index
    %3 = vector.load %arg7[%c0, %c0_1] : memref<256x128xf32, #tpu.memory_space<vmem>>, vector<256x128xf32>
    %c0_2 = arith.constant 0 : index
    %c0_3 = arith.constant 0 : index
    %4 = vector.load %arg3[%c0_2, %c0_3] : memref<256x128xbf16, #tpu.memory_space<vmem>>, vector<256x128xbf16>
    %c0_4 = arith.constant 0 : index
    %c0_5 = arith.constant 0 : index
    %5 = vector.load %arg4[%c0_4, %c0_5] : memref<128x128xbf16, #tpu.memory_space<vmem>>, vector<128x128xbf16>
    %cst = arith.constant dense<0.000000e+00> : vector<256x128xf32>
    %6 = tpu.matmul %4, %5, %cst {dimension_numbers = #tpu.dot_dimension_numbers<[1], [0], [0], [1], [0, 0, 1, 1], [], []>} : vector<256x128xbf16>, vector<128x128xbf16>, vector<256x128xf32> -> vector<256x128xf32>
    %7 = arith.addf %3, %6 : vector<256x128xf32>
    %c0_6 = arith.constant 0 : index
    %c0_7 = arith.constant 0 : index
    %8 = vector.load %arg7[%c0_6, %c0_7] : memref<256x128xf32, #tpu.memory_space<vmem>>, vector<256x128xf32>
    tpu.vector_store %arg7[%c0_6, %c0_7], %7 {strides = array<i32>} : memref<256x128xf32, #tpu.memory_space<vmem>>, vector<256x128xf32>,
    %c0_i32_8 = arith.constant 0 : i32
    %9 = arith.cmpi eq, %arg2, %c0_i32_8 : i32
    %10 = arith.extui %9 : i1 to i32
    %c0_i32_9 = arith.constant 0 : i32
    %11 = arith.cmpi ne, %10, %c0_i32_9 : i32
    scf.if %11 {
      %c0_10 = arith.constant 0 : index
      %c0_11 = arith.constant 0 : index
      %12 = vector.load %arg7[%c0_10, %c0_11] : memref<256x128xf32, #tpu.memory_space<vmem>>, vector<256x128xf32>
      %c0_12 = arith.constant 0 : index
      %c0_13 = arith.constant 0 : index
      %13 = vector.load %arg5[%c0_12, %c0_13] : memref<1x128xf32, #tpu.memory_space<vmem>>, vector<1x128xf32>
      %14 = vector.broadcast %13 : vector<1x128xf32> to vector<256x128xf32>
      %15 = arith.addf %12, %14 : vector<256x128xf32>
      %cst_14 = arith.constant 0.000000e+00 : f32
      %16 = vector.broadcast %cst_14 : f32 to vector<256x128xf32>
      %17 = arith.maximumf %15, %16 : vector<256x128xf32>
      %18 = arith.truncf %17 : vector<256x128xf32> to vector<256x128xbf16>
      %c0_15 = arith.constant 0 : index
      %c0_16 = arith.constant 0 : index
      %19 = vector.load %arg6[%c0_15, %c0_16] : memref<256x128xbf16, #tpu.memory_space<vmem>>, vector<256x128xbf16>
      tpu.vector_store %arg6[%c0_15, %c0_16], %18 {strides = array<i32>} : memref<256x128xbf16, #tpu.memory_space<vmem>>, vector<256x128xbf16>,
    } else {
    }
    return
  }
  func.func @transform_0(%arg0: i32, %arg1: i32, %arg2: i32) -> (i32, i32) {
    %c0_i32 = arith.constant 0 : i32
    return %arg0, %arg2 : i32, i32
  }
  func.func @transform_1(%arg0: i32, %arg1: i32, %arg2: i32) -> (i32, i32) {
    %c0_i32 = arith.constant 0 : i32
    return %arg2, %arg1 : i32, i32
  }
  func.func @transform_2(%arg0: i32, %arg1: i32, %arg2: i32) -> (i32, i32) {
    %c0_i32 = arith.constant 0 : i32
    %c0_i32_0 = arith.constant 0 : i32
    return %c0_i32, %arg1 : i32, i32
  }
  func.func @transform_3(%arg0: i32, %arg1: i32, %arg2: i32) -> (i32, i32) {
    %c0_i32 = arith.constant 0 : i32
    return %arg0, %arg1 : i32, i32
  }
}

module attributes {stable_mosaic.version = 11 : i64} {
  func.func @_matmul_epilogue_kernel(%arg0: i32, %arg1: i32, %arg2: i32, %arg3: memref<128x512xbf16, #tpu.memory_space<vmem>>, %arg4: memref<512x128xbf16, #tpu.memory_space<vmem>>, %arg5: memref<1x128xf32, #tpu.memory_space<vmem>>, %arg6: memref<128x128xbf16, #tpu.memory_space<vmem>>, %arg7: memref<128x128xf32, #tpu.memory_space<vmem>>) attributes {dimension_semantics = [#tpu.dimension_semantics<parallel>, #tpu.dimension_semantics<parallel>, #tpu.dimension_semantics<arbitrary>], iteration_bounds = array<i64: 1, 1, 7>, scalar_prefetch = 0 : i64, scratch_operands = 1 : i64, tpu.core_type = #tpu.core_type<tc>, window_params = [{transform_indices = @transform_0, window_bounds = array<i64: 128, 512>}, {transform_indices = @transform_1, window_bounds = array<i64: 512, 128>}, {transform_indices = @transform_2, window_bounds = array<i64: 1, 128>}, {transform_indices = @transform_3, window_bounds = array<i64: 128, 128>}]} {
    %c0_i32 = arith.constant 0 : i32
    %0 = arith.cmpi eq, %arg2, %c0_i32 : i32
    %1 = arith.extui %0 : i1 to i32
    %c0_i32_0 = arith.constant 0 : i32
    %2 = arith.cmpi ne, %1, %c0_i32_0 : i32
    scf.if %2 {
      %cst_9 = arith.constant 0.000000e+00 : f32
      %12 = vector.broadcast %cst_9 : f32 to vector<128x128xf32>
      %c0_10 = arith.constant 0 : index
      %c0_11 = arith.constant 0 : index
      %13 = vector.load %arg7[%c0_10, %c0_11] : memref<128x128xf32, #tpu.memory_space<vmem>>, vector<128x128xf32>
      tpu.vector_store %arg7[%c0_10, %c0_11], %12 {strides = array<i32>} : memref<128x128xf32, #tpu.memory_space<vmem>>, vector<128x128xf32>,
    } else {
    }
    %c0 = arith.constant 0 : index
    %c0_1 = arith.constant 0 : index
    %3 = vector.load %arg7[%c0, %c0_1] : memref<128x128xf32, #tpu.memory_space<vmem>>, vector<128x128xf32>
    %c0_2 = arith.constant 0 : index
    %c0_3 = arith.constant 0 : index
    %4 = vector.load %arg3[%c0_2, %c0_3] : memref<128x512xbf16, #tpu.memory_space<vmem>>, vector<128x512xbf16>
    %c0_4 = arith.constant 0 : index
    %c0_5 = arith.constant 0 : index
    %5 = vector.load %arg4[%c0_4, %c0_5] : memref<512x128xbf16, #tpu.memory_space<vmem>>, vector<512x128xbf16>
    %cst = arith.constant dense<0.000000e+00> : vector<128x128xf32>
    %6 = tpu.matmul %4, %5, %cst {dimension_numbers = #tpu.dot_dimension_numbers<[1], [0], [0], [1], [0, 0, 1, 1], [], []>} : vector<128x512xbf16>, vector<512x128xbf16>, vector<128x128xf32> -> vector<128x128xf32>
    %7 = arith.addf %3, %6 : vector<128x128xf32>
    %c0_6 = arith.constant 0 : index
    %c0_7 = arith.constant 0 : index
    %8 = vector.load %arg7[%c0_6, %c0_7] : memref<128x128xf32, #tpu.memory_space<vmem>>, vector<128x128xf32>
    tpu.vector_store %arg7[%c0_6, %c0_7], %7 {strides = array<i32>} : memref<128x128xf32, #tpu.memory_space<vmem>>, vector<128x128xf32>,
    %c6_i32 = arith.constant 6 : i32
    %9 = arith.cmpi eq, %arg2, %c6_i32 : i32
    %10 = arith.extui %9 : i1 to i32
    %c0_i32_8 = arith.constant 0 : i32
    %11 = arith.cmpi ne, %10, %c0_i32_8 : i32
    scf.if %11 {
      %c0_9 = arith.constant 0 : index
      %c0_10 = arith.constant 0 : index
      %12 = vector.load %arg7[%c0_9, %c0_10] : memref<128x128xf32, #tpu.memory_space<vmem>>, vector<128x128xf32>
      %c0_11 = arith.constant 0 : index
      %c0_12 = arith.constant 0 : index
      %13 = vector.load %arg5[%c0_11, %c0_12] : memref<1x128xf32, #tpu.memory_space<vmem>>, vector<1x128xf32>
      %14 = vector.broadcast %13 : vector<1x128xf32> to vector<128x128xf32>
      %15 = arith.addf %12, %14 : vector<128x128xf32>
      %cst_13 = arith.constant 0.000000e+00 : f32
      %16 = vector.broadcast %cst_13 : f32 to vector<128x128xf32>
      %17 = arith.maximumf %15, %16 : vector<128x128xf32>
      %18 = arith.truncf %17 : vector<128x128xf32> to vector<128x128xbf16>
      %c0_14 = arith.constant 0 : index
      %c0_15 = arith.constant 0 : index
      %19 = vector.load %arg6[%c0_14, %c0_15] : memref<128x128xbf16, #tpu.memory_space<vmem>>, vector<128x128xbf16>
      tpu.vector_store %arg6[%c0_14, %c0_15], %18 {strides = array<i32>} : memref<128x128xbf16, #tpu.memory_space<vmem>>, vector<128x128xbf16>,
    } else {
    }
    return
  }
  func.func @transform_0(%arg0: i32, %arg1: i32, %arg2: i32) -> (i32, i32) {
    %c0_i32 = arith.constant 0 : i32
    return %arg0, %arg2 : i32, i32
  }
  func.func @transform_1(%arg0: i32, %arg1: i32, %arg2: i32) -> (i32, i32) {
    %c0_i32 = arith.constant 0 : i32
    return %arg2, %arg1 : i32, i32
  }
  func.func @transform_2(%arg0: i32, %arg1: i32, %arg2: i32) -> (i32, i32) {
    %c0_i32 = arith.constant 0 : i32
    %c0_i32_0 = arith.constant 0 : i32
    return %c0_i32, %arg1 : i32, i32
  }
  func.func @transform_3(%arg0: i32, %arg1: i32, %arg2: i32) -> (i32, i32) {
    %c0_i32 = arith.constant 0 : i32
    return %arg0, %arg1 : i32, i32
  }
}

module attributes {stable_mosaic.version = 11 : i64} {
  func.func @_matmul_epilogue_kernel(%arg0: i32, %arg1: i32, %arg2: i32, %arg3: memref<32x512xbf16, #tpu.memory_space<vmem>>, %arg4: memref<512x128xbf16, #tpu.memory_space<vmem>>, %arg5: memref<1x128xf32, #tpu.memory_space<vmem>>, %arg6: memref<32x128xbf16, #tpu.memory_space<vmem>>, %arg7: memref<32x128xf32, #tpu.memory_space<vmem>>) attributes {dimension_semantics = [#tpu.dimension_semantics<parallel>, #tpu.dimension_semantics<parallel>, #tpu.dimension_semantics<arbitrary>], iteration_bounds = array<i64: 1, 1, 3>, scalar_prefetch = 0 : i64, scratch_operands = 1 : i64, tpu.core_type = #tpu.core_type<tc>, window_params = [{transform_indices = @transform_0, window_bounds = array<i64: 32, 512>}, {transform_indices = @transform_1, window_bounds = array<i64: 512, 128>}, {transform_indices = @transform_2, window_bounds = array<i64: 1, 128>}, {transform_indices = @transform_3, window_bounds = array<i64: 32, 128>}]} {
    %c0_i32 = arith.constant 0 : i32
    %0 = arith.cmpi eq, %arg2, %c0_i32 : i32
    %1 = arith.extui %0 : i1 to i32
    %c0_i32_0 = arith.constant 0 : i32
    %2 = arith.cmpi ne, %1, %c0_i32_0 : i32
    scf.if %2 {
      %cst_9 = arith.constant 0.000000e+00 : f32
      %12 = vector.broadcast %cst_9 : f32 to vector<32x128xf32>
      %c0_10 = arith.constant 0 : index
      %c0_11 = arith.constant 0 : index
      %13 = vector.load %arg7[%c0_10, %c0_11] : memref<32x128xf32, #tpu.memory_space<vmem>>, vector<32x128xf32>
      tpu.vector_store %arg7[%c0_10, %c0_11], %12 {strides = array<i32>} : memref<32x128xf32, #tpu.memory_space<vmem>>, vector<32x128xf32>,
    } else {
    }
    %c0 = arith.constant 0 : index
    %c0_1 = arith.constant 0 : index
    %3 = vector.load %arg7[%c0, %c0_1] : memref<32x128xf32, #tpu.memory_space<vmem>>, vector<32x128xf32>
    %c0_2 = arith.constant 0 : index
    %c0_3 = arith.constant 0 : index
    %4 = vector.load %arg3[%c0_2, %c0_3] : memref<32x512xbf16, #tpu.memory_space<vmem>>, vector<32x512xbf16>
    %c0_4 = arith.constant 0 : index
    %c0_5 = arith.constant 0 : index
    %5 = vector.load %arg4[%c0_4, %c0_5] : memref<512x128xbf16, #tpu.memory_space<vmem>>, vector<512x128xbf16>
    %cst = arith.constant dense<0.000000e+00> : vector<32x128xf32>
    %6 = tpu.matmul %4, %5, %cst {dimension_numbers = #tpu.dot_dimension_numbers<[1], [0], [0], [1], [0, 0, 1, 1], [], []>} : vector<32x512xbf16>, vector<512x128xbf16>, vector<32x128xf32> -> vector<32x128xf32>
    %7 = arith.addf %3, %6 : vector<32x128xf32>
    %c0_6 = arith.constant 0 : index
    %c0_7 = arith.constant 0 : index
    %8 = vector.load %arg7[%c0_6, %c0_7] : memref<32x128xf32, #tpu.memory_space<vmem>>, vector<32x128xf32>
    tpu.vector_store %arg7[%c0_6, %c0_7], %7 {strides = array<i32>} : memref<32x128xf32, #tpu.memory_space<vmem>>, vector<32x128xf32>,
    %c2_i32 = arith.constant 2 : i32
    %9 = arith.cmpi eq, %arg2, %c2_i32 : i32
    %10 = arith.extui %9 : i1 to i32
    %c0_i32_8 = arith.constant 0 : i32
    %11 = arith.cmpi ne, %10, %c0_i32_8 : i32
    scf.if %11 {
      %c0_9 = arith.constant 0 : index
      %c0_10 = arith.constant 0 : index
      %12 = vector.load %arg7[%c0_9, %c0_10] : memref<32x128xf32, #tpu.memory_space<vmem>>, vector<32x128xf32>
      %c0_11 = arith.constant 0 : index
      %c0_12 = arith.constant 0 : index
      %13 = vector.load %arg5[%c0_11, %c0_12] : memref<1x128xf32, #tpu.memory_space<vmem>>, vector<1x128xf32>
      %14 = vector.broadcast %13 : vector<1x128xf32> to vector<32x128xf32>
      %15 = arith.addf %12, %14 : vector<32x128xf32>
      %cst_13 = arith.constant 0.000000e+00 : f32
      %16 = vector.broadcast %cst_13 : f32 to vector<32x128xf32>
      %17 = arith.maximumf %15, %16 : vector<32x128xf32>
      %18 = arith.truncf %17 : vector<32x128xf32> to vector<32x128xbf16>
      %c0_14 = arith.constant 0 : index
      %c0_15 = arith.constant 0 : index
      %19 = vector.load %arg6[%c0_14, %c0_15] : memref<32x128xbf16, #tpu.memory_space<vmem>>, vector<32x128xbf16>
      tpu.vector_store %arg6[%c0_14, %c0_15], %18 {strides = array<i32>} : memref<32x128xbf16, #tpu.memory_space<vmem>>, vector<32x128xbf16>,
    } else {
    }
    return
  }
  func.func @transform_0(%arg0: i32, %arg1: i32, %arg2: i32) -> (i32, i32) {
    %c0_i32 = arith.constant 0 : i32
    return %arg0, %arg2 : i32, i32
  }
  func.func @transform_1(%arg0: i32, %arg1: i32, %arg2: i32) -> (i32, i32) {
    %c0_i32 = arith.constant 0 : i32
    return %arg2, %arg1 : i32, i32
  }
  func.func @transform_2(%arg0: i32, %arg1: i32, %arg2: i32) -> (i32, i32) {
    %c0_i32 = arith.constant 0 : i32
    %c0_i32_0 = arith.constant 0 : i32
    return %c0_i32, %arg1 : i32, i32
  }
  func.func @transform_3(%arg0: i32, %arg1: i32, %arg2: i32) -> (i32, i32) {
    %c0_i32 = arith.constant 0 : i32
    return %arg0, %arg1 : i32, i32
  }
}

module attributes {stable_mosaic.version = 11 : i64} {
  func.func @_matmul_epilogue_kernel(%arg0: i32, %arg1: i32, %arg2: i32, %arg3: memref<16x512xbf16, #tpu.memory_space<vmem>>, %arg4: memref<512x256xbf16, #tpu.memory_space<vmem>>, %arg5: memref<1x256xf32, #tpu.memory_space<vmem>>, %arg6: memref<16x256xbf16, #tpu.memory_space<vmem>>, %arg7: memref<16x256xf32, #tpu.memory_space<vmem>>) attributes {dimension_semantics = [#tpu.dimension_semantics<parallel>, #tpu.dimension_semantics<parallel>, #tpu.dimension_semantics<arbitrary>], iteration_bounds = array<i64: 1, 1, 3>, scalar_prefetch = 0 : i64, scratch_operands = 1 : i64, tpu.core_type = #tpu.core_type<tc>, window_params = [{transform_indices = @transform_0, window_bounds = array<i64: 16, 512>}, {transform_indices = @transform_1, window_bounds = array<i64: 512, 256>}, {transform_indices = @transform_2, window_bounds = array<i64: 1, 256>}, {transform_indices = @transform_3, window_bounds = array<i64: 16, 256>}]} {
    %c0_i32 = arith.constant 0 : i32
    %0 = arith.cmpi eq, %arg2, %c0_i32 : i32
    %1 = arith.extui %0 : i1 to i32
    %c0_i32_0 = arith.constant 0 : i32
    %2 = arith.cmpi ne, %1, %c0_i32_0 : i32
    scf.if %2 {
      %cst_9 = arith.constant 0.000000e+00 : f32
      %12 = vector.broadcast %cst_9 : f32 to vector<16x256xf32>
      %c0_10 = arith.constant 0 : index
      %c0_11 = arith.constant 0 : index
      %13 = vector.load %arg7[%c0_10, %c0_11] : memref<16x256xf32, #tpu.memory_space<vmem>>, vector<16x256xf32>
      tpu.vector_store %arg7[%c0_10, %c0_11], %12 {strides = array<i32>} : memref<16x256xf32, #tpu.memory_space<vmem>>, vector<16x256xf32>,
    } else {
    }
    %c0 = arith.constant 0 : index
    %c0_1 = arith.constant 0 : index
    %3 = vector.load %arg7[%c0, %c0_1] : memref<16x256xf32, #tpu.memory_space<vmem>>, vector<16x256xf32>
    %c0_2 = arith.constant 0 : index
    %c0_3 = arith.constant 0 : index
    %4 = vector.load %arg3[%c0_2, %c0_3] : memref<16x512xbf16, #tpu.memory_space<vmem>>, vector<16x512xbf16>
    %c0_4 = arith.constant 0 : index
    %c0_5 = arith.constant 0 : index
    %5 = vector.load %arg4[%c0_4, %c0_5] : memref<512x256xbf16, #tpu.memory_space<vmem>>, vector<512x256xbf16>
    %cst = arith.constant dense<0.000000e+00> : vector<16x256xf32>
    %6 = tpu.matmul %4, %5, %cst {dimension_numbers = #tpu.dot_dimension_numbers<[1], [0], [0], [1], [0, 0, 1, 1], [], []>} : vector<16x512xbf16>, vector<512x256xbf16>, vector<16x256xf32> -> vector<16x256xf32>
    %7 = arith.addf %3, %6 : vector<16x256xf32>
    %c0_6 = arith.constant 0 : index
    %c0_7 = arith.constant 0 : index
    %8 = vector.load %arg7[%c0_6, %c0_7] : memref<16x256xf32, #tpu.memory_space<vmem>>, vector<16x256xf32>
    tpu.vector_store %arg7[%c0_6, %c0_7], %7 {strides = array<i32>} : memref<16x256xf32, #tpu.memory_space<vmem>>, vector<16x256xf32>,
    %c2_i32 = arith.constant 2 : i32
    %9 = arith.cmpi eq, %arg2, %c2_i32 : i32
    %10 = arith.extui %9 : i1 to i32
    %c0_i32_8 = arith.constant 0 : i32
    %11 = arith.cmpi ne, %10, %c0_i32_8 : i32
    scf.if %11 {
      %c0_9 = arith.constant 0 : index
      %c0_10 = arith.constant 0 : index
      %12 = vector.load %arg7[%c0_9, %c0_10] : memref<16x256xf32, #tpu.memory_space<vmem>>, vector<16x256xf32>
      %c0_11 = arith.constant 0 : index
      %c0_12 = arith.constant 0 : index
      %13 = vector.load %arg5[%c0_11, %c0_12] : memref<1x256xf32, #tpu.memory_space<vmem>>, vector<1x256xf32>
      %14 = vector.broadcast %13 : vector<1x256xf32> to vector<16x256xf32>
      %15 = arith.addf %12, %14 : vector<16x256xf32>
      %cst_13 = arith.constant 0.000000e+00 : f32
      %16 = vector.broadcast %cst_13 : f32 to vector<16x256xf32>
      %17 = arith.maximumf %15, %16 : vector<16x256xf32>
      %18 = arith.truncf %17 : vector<16x256xf32> to vector<16x256xbf16>
      %c0_14 = arith.constant 0 : index
      %c0_15 = arith.constant 0 : index
      %19 = vector.load %arg6[%c0_14, %c0_15] : memref<16x256xbf16, #tpu.memory_space<vmem>>, vector<16x256xbf16>
      tpu.vector_store %arg6[%c0_14, %c0_15], %18 {strides = array<i32>} : memref<16x256xbf16, #tpu.memory_space<vmem>>, vector<16x256xbf16>,
    } else {
    }
    return
  }
  func.func @transform_0(%arg0: i32, %arg1: i32, %arg2: i32) -> (i32, i32) {
    %c0_i32 = arith.constant 0 : i32
    return %arg0, %arg2 : i32, i32
  }
  func.func @transform_1(%arg0: i32, %arg1: i32, %arg2: i32) -> (i32, i32) {
    %c0_i32 = arith.constant 0 : i32
    return %arg2, %arg1 : i32, i32
  }
  func.func @transform_2(%arg0: i32, %arg1: i32, %arg2: i32) -> (i32, i32) {
    %c0_i32 = arith.constant 0 : i32
    %c0_i32_0 = arith.constant 0 : i32
    return %c0_i32, %arg1 : i32, i32
  }
  func.func @transform_3(%arg0: i32, %arg1: i32, %arg2: i32) -> (i32, i32) {
    %c0_i32 = arith.constant 0 : i32
    return %arg0, %arg1 : i32, i32
  }
}

module attributes {stable_mosaic.version = 11 : i64} {
  func.func @_matmul_epilogue_kernel(%arg0: i32, %arg1: i32, %arg2: i32, %arg3: memref<16x512xbf16, #tpu.memory_space<vmem>>, %arg4: memref<512x256xbf16, #tpu.memory_space<vmem>>, %arg5: memref<1x256xf32, #tpu.memory_space<vmem>>, %arg6: memref<16x256xbf16, #tpu.memory_space<vmem>>, %arg7: memref<16x256xf32, #tpu.memory_space<vmem>>) attributes {dimension_semantics = [#tpu.dimension_semantics<parallel>, #tpu.dimension_semantics<parallel>, #tpu.dimension_semantics<arbitrary>], iteration_bounds = array<i64: 1, 2, 2>, scalar_prefetch = 0 : i64, scratch_operands = 1 : i64, tpu.core_type = #tpu.core_type<tc>, window_params = [{transform_indices = @transform_0, window_bounds = array<i64: 16, 512>}, {transform_indices = @transform_1, window_bounds = array<i64: 512, 256>}, {transform_indices = @transform_2, window_bounds = array<i64: 1, 256>}, {transform_indices = @transform_3, window_bounds = array<i64: 16, 256>}]} {
    %c0_i32 = arith.constant 0 : i32
    %0 = arith.cmpi eq, %arg2, %c0_i32 : i32
    %1 = arith.extui %0 : i1 to i32
    %c0_i32_0 = arith.constant 0 : i32
    %2 = arith.cmpi ne, %1, %c0_i32_0 : i32
    scf.if %2 {
      %cst_9 = arith.constant 0.000000e+00 : f32
      %12 = vector.broadcast %cst_9 : f32 to vector<16x256xf32>
      %c0_10 = arith.constant 0 : index
      %c0_11 = arith.constant 0 : index
      %13 = vector.load %arg7[%c0_10, %c0_11] : memref<16x256xf32, #tpu.memory_space<vmem>>, vector<16x256xf32>
      tpu.vector_store %arg7[%c0_10, %c0_11], %12 {strides = array<i32>} : memref<16x256xf32, #tpu.memory_space<vmem>>, vector<16x256xf32>,
    } else {
    }
    %c0 = arith.constant 0 : index
    %c0_1 = arith.constant 0 : index
    %3 = vector.load %arg7[%c0, %c0_1] : memref<16x256xf32, #tpu.memory_space<vmem>>, vector<16x256xf32>
    %c0_2 = arith.constant 0 : index
    %c0_3 = arith.constant 0 : index
    %4 = vector.load %arg3[%c0_2, %c0_3] : memref<16x512xbf16, #tpu.memory_space<vmem>>, vector<16x512xbf16>
    %c0_4 = arith.constant 0 : index
    %c0_5 = arith.constant 0 : index
    %5 = vector.load %arg4[%c0_4, %c0_5] : memref<512x256xbf16, #tpu.memory_space<vmem>>, vector<512x256xbf16>
    %cst = arith.constant dense<0.000000e+00> : vector<16x256xf32>
    %6 = tpu.matmul %4, %5, %cst {dimension_numbers = #tpu.dot_dimension_numbers<[1], [0], [0], [1], [0, 0, 1, 1], [], []>} : vector<16x512xbf16>, vector<512x256xbf16>, vector<16x256xf32> -> vector<16x256xf32>
    %7 = arith.addf %3, %6 : vector<16x256xf32>
    %c0_6 = arith.constant 0 : index
    %c0_7 = arith.constant 0 : index
    %8 = vector.load %arg7[%c0_6, %c0_7] : memref<16x256xf32, #tpu.memory_space<vmem>>, vector<16x256xf32>
    tpu.vector_store %arg7[%c0_6, %c0_7], %7 {strides = array<i32>} : memref<16x256xf32, #tpu.memory_space<vmem>>, vector<16x256xf32>,
    %c1_i32 = arith.constant 1 : i32
    %9 = arith.cmpi eq, %arg2, %c1_i32 : i32
    %10 = arith.extui %9 : i1 to i32
    %c0_i32_8 = arith.constant 0 : i32
    %11 = arith.cmpi ne, %10, %c0_i32_8 : i32
    scf.if %11 {
      %c0_9 = arith.constant 0 : index
      %c0_10 = arith.constant 0 : index
      %12 = vector.load %arg7[%c0_9, %c0_10] : memref<16x256xf32, #tpu.memory_space<vmem>>, vector<16x256xf32>
      %c0_11 = arith.constant 0 : index
      %c0_12 = arith.constant 0 : index
      %13 = vector.load %arg5[%c0_11, %c0_12] : memref<1x256xf32, #tpu.memory_space<vmem>>, vector<1x256xf32>
      %14 = vector.broadcast %13 : vector<1x256xf32> to vector<16x256xf32>
      %15 = arith.addf %12, %14 : vector<16x256xf32>
      %cst_13 = arith.constant 0.000000e+00 : f32
      %16 = vector.broadcast %cst_13 : f32 to vector<16x256xf32>
      %17 = arith.maximumf %15, %16 : vector<16x256xf32>
      %18 = arith.truncf %17 : vector<16x256xf32> to vector<16x256xbf16>
      %c0_14 = arith.constant 0 : index
      %c0_15 = arith.constant 0 : index
      %19 = vector.load %arg6[%c0_14, %c0_15] : memref<16x256xbf16, #tpu.memory_space<vmem>>, vector<16x256xbf16>
      tpu.vector_store %arg6[%c0_14, %c0_15], %18 {strides = array<i32>} : memref<16x256xbf16, #tpu.memory_space<vmem>>, vector<16x256xbf16>,
    } else {
    }
    return
  }
  func.func @transform_0(%arg0: i32, %arg1: i32, %arg2: i32) -> (i32, i32) {
    %c0_i32 = arith.constant 0 : i32
    return %arg0, %arg2 : i32, i32
  }
  func.func @transform_1(%arg0: i32, %arg1: i32, %arg2: i32) -> (i32, i32) {
    %c0_i32 = arith.constant 0 : i32
    return %arg2, %arg1 : i32, i32
  }
  func.func @transform_2(%arg0: i32, %arg1: i32, %arg2: i32) -> (i32, i32) {
    %c0_i32 = arith.constant 0 : i32
    %c0_i32_0 = arith.constant 0 : i32
    return %c0_i32, %arg1 : i32, i32
  }
  func.func @transform_3(%arg0: i32, %arg1: i32, %arg2: i32) -> (i32, i32) {
    %c0_i32 = arith.constant 0 : i32
    return %arg0, %arg1 : i32, i32
  }
}

module attributes {stable_mosaic.version = 11 : i64} {
  func.func @_matmul_epilogue_kernel(%arg0: i32, %arg1: i32, %arg2: i32, %arg3: memref<16x512xbf16, #tpu.memory_space<vmem>>, %arg4: memref<512x128xbf16, #tpu.memory_space<vmem>>, %arg5: memref<1x128xf32, #tpu.memory_space<vmem>>, %arg6: memref<16x128xf32, #tpu.memory_space<vmem>>, %arg7: memref<16x128xf32, #tpu.memory_space<vmem>>) attributes {dimension_semantics = [#tpu.dimension_semantics<parallel>, #tpu.dimension_semantics<parallel>, #tpu.dimension_semantics<arbitrary>], iteration_bounds = array<i64: 1, 1, 1>, scalar_prefetch = 0 : i64, scratch_operands = 1 : i64, tpu.core_type = #tpu.core_type<tc>, window_params = [{transform_indices = @transform_0, window_bounds = array<i64: 16, 512>}, {transform_indices = @transform_1, window_bounds = array<i64: 512, 128>}, {transform_indices = @transform_2, window_bounds = array<i64: 1, 128>}, {transform_indices = @transform_3, window_bounds = array<i64: 16, 128>}]} {
    %c0_i32 = arith.constant 0 : i32
    %0 = arith.cmpi eq, %arg2, %c0_i32 : i32
    %1 = arith.extui %0 : i1 to i32
    %c0_i32_0 = arith.constant 0 : i32
    %2 = arith.cmpi ne, %1, %c0_i32_0 : i32
    scf.if %2 {
      %cst_10 = arith.constant 0.000000e+00 : f32
      %12 = vector.broadcast %cst_10 : f32 to vector<16x128xf32>
      %c0_11 = arith.constant 0 : index
      %c0_12 = arith.constant 0 : index
      %13 = vector.load %arg7[%c0_11, %c0_12] : memref<16x128xf32, #tpu.memory_space<vmem>>, vector<16x128xf32>
      tpu.vector_store %arg7[%c0_11, %c0_12], %12 {strides = array<i32>} : memref<16x128xf32, #tpu.memory_space<vmem>>, vector<16x128xf32>,
    } else {
    }
    %c0 = arith.constant 0 : index
    %c0_1 = arith.constant 0 : index
    %3 = vector.load %arg7[%c0, %c0_1] : memref<16x128xf32, #tpu.memory_space<vmem>>, vector<16x128xf32>
    %c0_2 = arith.constant 0 : index
    %c0_3 = arith.constant 0 : index
    %4 = vector.load %arg3[%c0_2, %c0_3] : memref<16x512xbf16, #tpu.memory_space<vmem>>, vector<16x512xbf16>
    %c0_4 = arith.constant 0 : index
    %c0_5 = arith.constant 0 : index
    %5 = vector.load %arg4[%c0_4, %c0_5] : memref<512x128xbf16, #tpu.memory_space<vmem>>, vector<512x128xbf16>
    %cst = arith.constant dense<0.000000e+00> : vector<16x128xf32>
    %6 = tpu.matmul %4, %5, %cst {dimension_numbers = #tpu.dot_dimension_numbers<[1], [0], [0], [1], [0, 0, 1, 1], [], []>} : vector<16x512xbf16>, vector<512x128xbf16>, vector<16x128xf32> -> vector<16x128xf32>
    %7 = arith.addf %3, %6 : vector<16x128xf32>
    %c0_6 = arith.constant 0 : index
    %c0_7 = arith.constant 0 : index
    %8 = vector.load %arg7[%c0_6, %c0_7] : memref<16x128xf32, #tpu.memory_space<vmem>>, vector<16x128xf32>
    tpu.vector_store %arg7[%c0_6, %c0_7], %7 {strides = array<i32>} : memref<16x128xf32, #tpu.memory_space<vmem>>, vector<16x128xf32>,
    %c0_i32_8 = arith.constant 0 : i32
    %9 = arith.cmpi eq, %arg2, %c0_i32_8 : i32
    %10 = arith.extui %9 : i1 to i32
    %c0_i32_9 = arith.constant 0 : i32
    %11 = arith.cmpi ne, %10, %c0_i32_9 : i32
    scf.if %11 {
      %c0_10 = arith.constant 0 : index
      %c0_11 = arith.constant 0 : index
      %12 = vector.load %arg7[%c0_10, %c0_11] : memref<16x128xf32, #tpu.memory_space<vmem>>, vector<16x128xf32>
      %c0_12 = arith.constant 0 : index
      %c0_13 = arith.constant 0 : index
      %13 = vector.load %arg5[%c0_12, %c0_13] : memref<1x128xf32, #tpu.memory_space<vmem>>, vector<1x128xf32>
      %14 = vector.broadcast %13 : vector<1x128xf32> to vector<16x128xf32>
      %15 = arith.addf %12, %14 : vector<16x128xf32>
      %16 = arith.mulf %15, %15 : vector<16x128xf32>
      %cst_14 = arith.constant dense<0.000000e+00> : vector<16xf32>
      %17 = vector.multi_reduction <add>, %16, %cst_14 [1] : vector<16x128xf32> to vector<16xf32>
      %18 = vector.shape_cast %17 : vector<16xf32> to vector<16x1xf32>
      %cst_15 = arith.constant 1.000000e-24 : f32
      %19 = vector.broadcast %cst_15 : f32 to vector<16x1xf32>
      %20 = arith.maximumf %18, %19 : vector<16x1xf32>
      %21 = math.rsqrt %20 : vector<16x1xf32>
      %22 = vector.broadcast %21 : vector<16x1xf32> to vector<16x128xf32>
      %23 = arith.mulf %15, %22 : vector<16x128xf32>
      %c0_16 = arith.constant 0 : index
      %c0_17 = arith.constant 0 : index
      %24 = vector.load %arg6[%c0_16, %c0_17] : memref<16x128xf32, #tpu.memory_space<vmem>>, vector<16x128xf32>
      tpu.vector_store %arg6[%c0_16, %c0_17], %23 {strides = array<i32>} : memref<16x128xf32, #tpu.memory_space<vmem>>, vector<16x128xf32>,
    } else {
    }
    return
  }
  func.func @transform_0(%arg0: i32, %arg1: i32, %arg2: i32) -> (i32, i32) {
    %c0_i32 = arith.constant 0 : i32
    return %arg0, %arg2 : i32, i32
  }
  func.func @transform_1(%arg0: i32, %arg1: i32, %arg2: i32) -> (i32, i32) {
    %c0_i32 = arith.constant 0 : i32
    return %arg2, %arg1 : i32, i32
  }
  func.func @transform_2(%arg0: i32, %arg1: i32, %arg2: i32) -> (i32, i32) {
    %c0_i32 = arith.constant 0 : i32
    %c0_i32_0 = arith.constant 0 : i32
    return %c0_i32, %arg1 : i32, i32
  }
  func.func @transform_3(%arg0: i32, %arg1: i32, %arg2: i32) -> (i32, i32) {
    %c0_i32 = arith.constant 0 : i32
    return %arg0, %arg1 : i32, i32
  }
}

</mosaic_0001>

<bundles_post_ra>
// kernel: feature_extractor_forward.6
= control target key start
LH: loop header
LB: loop body
LE: loop exit
PB: predicated region body
PF: predicated region fallthrough
CT: control target
= control target key end

     0   :  { %8 = vsyncpa [#allocation4], 0  ;;  %s1744_s0 = inlined_call_operand.vmem [shape: bf16[512,128], index: 0, kind: input, shape index: {}]   ;;  %s1745_s1 = inlined_call_operand.hbm [shape: bf16[128,128], index: 1, kind: input, shape index: {}]   ;;  %s1746_s2 = inlined_call_operand.hbm [shape: f32[1,128], index: 2, kind: input, shape index: {}]   ;;  %s1747_s3 = inlined_call_operand.vmem [shape: bf16[512,128], index: 3, kind: output, shape index: {}]  }
   0x1   :  { %9 = vsyncpa [#allocation6], 0  ;;  %s1586_s12 = smov 0   ;;  %s1588_s13 = smov 0  }
   0x2   :  { %s1590_s14 = smov 0  }
   0x3 LB: > { %s1120_s15 = sadd.s32 4294967295, %s1560_s14   ;;  %s34_s16 = sadd.s32 1, %s1556_s13  ;;  %s1560_s14 = sphi %s1590_s14, %s15_s14   ;;  %s1556_s13 = sphi %s1588_s13, %s1752_s13   ;;  %s1552_s12 = sphi %s1586_s12, %s1751_s12  }
   0x4   : > { %p36_p0 = scmp.ge.s32.totalorder %s34_s16, 2  ;;  %p1122_p1 = scmp.ge.s32.totalorder %s1560_s14, 1 }
   0x5   : > { %p149_p2 = scmp.lt.s32.totalorder %s1560_s14, 3  ;;  %p1611_p4 = scmp.eq.s32.totalorder %s1120_s15, 0 }
   0x6   : > { %s1754_s16 = smov (%p36_p0, %s34_s16), 0  ;;  %s1562_s19 = smov [#allocation3]  }
   0x7   : > { %p1607_p3 = pnand %p1122_p1, %p149_p2  ;;  %s165_s20 = sshll.u32 %s1562_s19, 4  ;;  %s166_s20 = int_to_ptr.vmem [resolvable:$true] %s165_s20 }
   0x8   : > { %s1563_s22 = smov [#allocation5]   ;;  %s1489_s24 = scalar_lea.vmem %s166_s20, 1024 }
   0x9   : > { %p1415_p5 = pneg %p1607_p3  ;;  %s181_s23 = sshll.u32 %s1563_s22, 4  ;;  %s182_s23 = int_to_ptr.vmem [resolvable:$true] %s181_s23 }
   0xa   : > { %p1490_p8 = scmp.ne.s32.totalorder %s166_s20, %s1489_s24  ;;  %p1497_p11 = scmp.lt.s32.totalorder %s166_s20, %s166_s20 }
   0xb   : > { %p1619_p6 = pnand %p1611_p4, %p1415_p5  ;;  %p1498_p12 = scmp.lt.s32.totalorder %s1489_s24, %s1489_s24 }
   0xd   : > { %p1480_p7 = pneg %p1619_p6  ;;  %p1499_p13 = por %p1498_p12, %p1497_p11 }
   0xf   : > { %p1492_p9 = pnand %p1490_p8, %p1480_p7 }
  0x11   : > { %p1493_p10 = pneg %p1492_p9 }
  0x13   : > { %p1500_p0 = pnand %p1499_p13, %p1493_p10 }
  0x15   : > { %1503 = shalt.err (!%p1500_p0)
}
  0x16   : > { %s1564_s25 = smov 64   ;;  %s1565_s26 = smov 4  }
  0x17   : > { %1418 = dma.hbm_to_vmem [thread:$0]  (!%p1619_p6), %s1745_s1, 1024, %s166_s20, [#allocation4], %s1564_s25, %s1564_s25, %s1565_s26  }
  0x18   : > { %s1515_s29 = scalar_lea.vmem %s182_s23, 16  ;;  %s1522_s30 = scalar_lea.vmem %s182_s23, 32 }
  0x19   : > { %p1516_p1 = scmp.ne.s32.totalorder %s182_s23, %s1515_s29  ;;  %p1523_p8 = scmp.lt.s32.totalorder %s182_s23, %s182_s23 }
  0x1a   : > { %p1524_p9 = scmp.lt.s32.totalorder %s1522_s30, %s1515_s29 }
  0x1b   : > { %p1518_p2 = pnand %p1516_p1, %p1480_p7 }
  0x1c   : > { %p1525_p10 = por %p1524_p9, %p1523_p8 }
  0x1d   : > { %p1519_p5 = pneg %p1518_p2 }
  0x1f   : > { %p1526_p11 = pnand %p1525_p10, %p1519_p5 }
  0x21   : > { %1529 = shalt.err (!%p1526_p11)
}
  0x22   : > { %1421 = dma.hbm_to_vmem [thread:$0]  (!%p1619_p6), %s1746_s2, 16, %s182_s23, [#allocation6]  }
  0x23   : > { %206 = sbr.rel (%p1607_p3) target bundleno = 306 (0x132), region = 32 }
  0x28   : > { %1543 = dma.done.wait (%p1611_p4), [#allocation4], 1024  }
  0x29   : > { %1545 = vsyncadd (%p1611_p4), [#allocation4], 4294966272 }
  0x2a   : > { %1547 = dma.done.wait (%p1611_p4), [#allocation6], 16  }
  0x2b   : > { %1549 = vsyncadd (%p1611_p4), [#allocation6], 4294967280  ;;  %s1129_s6 = sshll.u32 %s1552_s12, 5  ;;  %v1454_v0 = vld [vmem:[#allocation3 + $0x38] sm:$0xff]   ;;  %v1455_v1 = vld [vmem:[#allocation3 + $0x30] sm:$0xff]  }
  0x2c   : > { %p241_p7 = scmp.lt.s32.totalorder %s1129_s6, 63  ;;  %1343 = vmatprep.subr.bf16.mxu0 %v1454_v0  ;;  %1391 = vmatprep.subr.bf16.mxu1 %v1454_v0  ;;  %v1456_v2 = vld [vmem:[#allocation3 + $0x28] sm:$0xff]   ;;  %v1457_v3 = vld [vmem:[#allocation3 + $0x20] sm:$0xff]   ;;  %v1458_v6 = vld [vmem:[#allocation3 + $0x18] sm:$0xff]  }
  0x2d   : > { %1344 = vmatpush3.bf16.msra.mxu0 %v1454_v0  ;;  %1399 = vmatpush3.bf16.msra.mxu1 %v1454_v0  ;;  %v1459_v7 = vld [vmem:[#allocation3 + $0x10] sm:$0xff]   ;;  %v1460_v8 = vld [vmem:[#allocation3 + $0x8] sm:$0xff]   ;;  %v1461_v9 = vld [vmem:[#allocation3] sm:$0xff]  }
  0x2e   : > { %s1756_s6 = smov (!%p241_p7, %s1129_s6), 63  ;;  %1345 = vmatprep.subr.bf16.mxu0 %v1455_v1  ;;  %1392 = vmatprep.subr.bf16.mxu1 %v1455_v1  ;;  %v1678_v24 = vld [vmem:[#allocation5] ss:$0 sm:$0xff] }
  0x2f   : > { %s1130_s7 = sshll.u32 %s1756_s6, 2 }
  0x30   : > { %s1660_s10 = scalar_lea.vmem %s1744_s0, %s1130_s7  ;;  %s1693_s15 = scalar_lea.vmem %s1747_s3, %s1130_s7 }
  0x31   : > { %1346 = vmatpush3.bf16.msra.mxu0 %v1455_v1  ;;  %1400 = vmatpush3.bf16.msra.mxu1 %v1455_v1  ;;  %v1462_v4 = vld [vmem:[%s1660_s10] sm:$0xff]   ;;  %v1464_v10 = vld [vmem:[%s1660_s10 + $0x8] sm:$0xff]   ;;  %v1466_v12 = vld [vmem:[%s1660_s10 + $0x10] sm:$0xff]  }
  0x32   : > { %1347 = vmatprep.subr.bf16.mxu0 %v1456_v2  ;;  %1393 = vmatprep.subr.bf16.mxu1 %v1456_v2  ;;  %v1463_v5 = vld [vmem:[%s1660_s10 + $0x40] sm:$0xff]   ;;  %v1465_v11 = vld [vmem:[%s1660_s10 + $0x48] sm:$0xff]   ;;  %v1467_v13 = vld [vmem:[%s1660_s10 + $0x50] sm:$0xff]  }
  0x33   : > { %1359 = vmatprep.mubr.bf16.mxu0 %v1462_v4  ;;  %1375 = vmatprep.mubr.bf16.mxu1 %v1463_v5  ;;  %v1468_v14 = vld [vmem:[%s1660_s10 + $0x18] sm:$0xff]   ;;  %v1470_v16 = vld [vmem:[%s1660_s10 + $0x20] sm:$0xff]   ;;  %v1472_v18 = vld [vmem:[%s1660_s10 + $0x28] sm:$0xff]  }
  0x34   : > { %v1469_v15 = vld [vmem:[%s1660_s10 + $0x58] sm:$0xff]   ;;  %v1471_v17 = vld [vmem:[%s1660_s10 + $0x60] sm:$0xff]   ;;  %v1473_v19 = vld [vmem:[%s1660_s10 + $0x68] sm:$0xff]  }
  0x35   : > { %1348 = vmatpush3.bf16.msra.mxu0 %v1456_v2  ;;  %1401 = vmatpush3.bf16.msra.mxu1 %v1456_v2  ;;  %v1474_v20 = vld [vmem:[%s1660_s10 + $0x30] sm:$0xff]   ;;  %v1476_v22 = vld [vmem:[%s1660_s10 + $0x38] sm:$0xff]  }
  0x36   : > { %1349 = vmatprep.subr.bf16.mxu0 %v1457_v3  ;;  %1394 = vmatprep.subr.bf16.mxu1 %v1457_v3  ;;  %v1475_v21 = vld [vmem:[%s1660_s10 + $0x70] sm:$0xff]   ;;  %v1477_v23 = vld [vmem:[%s1660_s10 + $0x78] sm:$0xff]  }
  0x39   : > { %1350 = vmatpush3.bf16.msra.mxu0 %v1457_v3  ;;  %1402 = vmatpush3.bf16.msra.mxu1 %v1457_v3 }
  0x3a   : > { %1351 = vmatprep.subr.bf16.mxu0 %v1458_v6  ;;  %1395 = vmatprep.subr.bf16.mxu1 %v1458_v6 }
  0x3d   : > { %1352 = vmatpush3.bf16.msra.mxu0 %v1458_v6  ;;  %1403 = vmatpush3.bf16.msra.mxu1 %v1458_v6 }
  0x3e   : > { %1353 = vmatprep.subr.bf16.mxu0 %v1459_v7  ;;  %1396 = vmatprep.subr.bf16.mxu1 %v1459_v7 }
  0x41   : > { %1354 = vmatpush3.bf16.msra.mxu0 %v1459_v7  ;;  %1404 = vmatpush3.bf16.msra.mxu1 %v1459_v7 }
  0x42   : > { %1355 = vmatprep.subr.bf16.mxu0 %v1460_v8  ;;  %1397 = vmatprep.subr.bf16.mxu1 %v1460_v8 }
  0x45   : > { %1356 = vmatpush3.bf16.msra.mxu0 %v1460_v8  ;;  %1405 = vmatpush3.bf16.msra.mxu1 %v1460_v8 }
  0x46   : > { %1357 = vmatprep.subr.bf16.mxu0 %v1461_v9  ;;  %1398 = vmatprep.subr.bf16.mxu1 %v1461_v9 }
  0x49   : > { %1358 = vmatpush3.bf16.msra.mxu0 %v1461_v9  ;;  %1406 = vmatpush3.bf16.msra.mxu1 %v1461_v9 }
  0x4c   : > { %1360 = vmatmul.mubr.bf16.vlgmr.msra.gmra.mxu0 %v1464_v10  ;;  %1376 = vmatmul.mubr.bf16.vlgmr.msra.gmra.mxu1 %v1465_v11 }
  0x4d   : > { %1363 = vmatprep.mubr.bf16.mxu0 %v1466_v12  ;;  %1379 = vmatprep.mubr.bf16.mxu1 %v1467_v13 }
  0x54   : > { %1364 = vmatmul.mubr.bf16.gmra.mxu0 %v1468_v14  ;;  %1380 = vmatmul.mubr.bf16.gmra.mxu1 %v1469_v15 }
  0x55   : > { %1367 = vmatprep.mubr.bf16.mxu0 %v1470_v16  ;;  %1383 = vmatprep.mubr.bf16.mxu1 %v1471_v17 }
  0x5c   : > { %1368 = vmatmul.mubr.bf16.gmra.mxu0 %v1472_v18  ;;  %1384 = vmatmul.mubr.bf16.gmra.mxu1 %v1473_v19 }
  0x5d   : > { %1371 = vmatprep.mubr.bf16.mxu0 %v1474_v20  ;;  %1387 = vmatprep.mubr.bf16.mxu1 %v1475_v21 }
  0x64   : > { %1372 = vmatmul.mubr.bf16.gmra.mxu0 %v1476_v22  ;;  %1388 = vmatmul.mubr.bf16.gmra.mxu1 %v1477_v23 }
 0x10c   : > { %v1361_v25 = vpop.f32.mrf.mxu0  ;;  %v1377_v26 = vpop.f32.mrf.mxu1 }
 0x10d   : > { %v789_v27 = vadd.f32 %v1361_v25, %v1678_v24  ;;  %v805_v28 = vadd.f32 %v1377_v26, %v1678_v24 }
 0x10e   : > { %v554_v29 = vpop.f32.mrf.mxu0  ;;  %v618_v30 = vpop.f32.mrf.mxu1 }
 0x10f   : > { %v787_v31 = vadd.f32 %v1678_v24, %v554_v29  ;;  %v803_v32 = vadd.f32 %v1678_v24, %v618_v30  ;;  %v821_v37 = vmax.f32 %v789_v27, 0.0  ;;  %v837_v38 = vmax.f32 %v805_v28, 0.0 }
 0x110   : > { %v1362_v33 = vpop.f32.mrf.mxu0  ;;  %v1378_v34 = vpop.f32.mrf.mxu1 }
 0x111   : > { %v790_v35 = vadd.f32 %v1362_v33, %v1678_v24  ;;  %v806_v36 = vadd.f32 %v1378_v34, %v1678_v24  ;;  %v819_v45 = vmax.f32 %v787_v31, 0.0  ;;  %v835_v46 = vmax.f32 %v803_v32, 0.0 }
 0x112   : > { %v557_v39 = vpop.f32.mrf.mxu0  ;;  %v621_v40 = vpop.f32.mrf.mxu1 }
 0x113   : > { %v822_v41 = vmax.f32 %v790_v35, 0.0  ;;  %v838_v42 = vmax.f32 %v806_v36, 0.0  ;;  %v788_v43 = vadd.f32 %v1678_v24, %v557_v39  ;;  %v804_v44 = vadd.f32 %v1678_v24, %v621_v40 }
 0x114   : > { %v1365_v47 = vpop.f32.mrf.mxu0  ;;  %v1381_v48 = vpop.f32.mrf.mxu1 }
 0x115   : > { %v1232_v49 = vpack.c.bf16 %v822_v41, %v821_v37  ;;  %v1272_v50 = vpack.c.bf16 %v838_v42, %v837_v38  ;;  %v820_v51 = vmax.f32 %v788_v43, 0.0  ;;  %v836_v52 = vmax.f32 %v804_v44, 0.0 }
 0x116   : > { %v793_v53 = vadd.f32 %v1365_v47, %v1678_v24  ;;  %v809_v54 = vadd.f32 %v1381_v48, %v1678_v24  ;;  %v570_v55 = vpop.f32.mrf.mxu0  ;;  %v634_v56 = vpop.f32.mrf.mxu1 }
 0x117   : > { %1304 = vst [vmem:[%s1693_s15 + $0x8] sm:$0xff] %v1232_v49   ;;  %1312 = vst [vmem:[%s1693_s15 + $0x48] sm:$0xff] %v1272_v50   ;;  %v1227_v57 = vpack.c.bf16 %v820_v51, %v819_v45  ;;  %v1267_v58 = vpack.c.bf16 %v836_v52, %v835_v46  ;;  %v791_v59 = vadd.f32 %v1678_v24, %v570_v55 }
 0x118   : > { %v807_v60 = vadd.f32 %v1678_v24, %v634_v56  ;;  %v1366_v61 = vpop.f32.mrf.mxu0  ;;  %v1382_v62 = vpop.f32.mrf.mxu1  ;;  %v825_v1 = vmax.f32 %v793_v53, 0.0  ;;  %v841_v2 = vmax.f32 %v809_v54, 0.0 }
 0x119   : > { %1228 = vst [vmem:[%s1693_s15] sm:$0xff] %v1227_v57   ;;  %1311 = vst [vmem:[%s1693_s15 + $0x40] sm:$0xff] %v1267_v58   ;;  %v794_v63 = vadd.f32 %v1366_v61, %v1678_v24  ;;  %v810_v0 = vadd.f32 %v1382_v62, %v1678_v24  ;;  %v823_v9 = vmax.f32 %v791_v59, 0.0 }
 0x11a   : > { %v573_v3 = vpop.f32.mrf.mxu0  ;;  %v637_v4 = vpop.f32.mrf.mxu1  ;;  %v839_v10 = vmax.f32 %v807_v60, 0.0 }
 0x11b   : > { %v826_v5 = vmax.f32 %v794_v63, 0.0  ;;  %v842_v6 = vmax.f32 %v810_v0, 0.0  ;;  %v792_v7 = vadd.f32 %v1678_v24, %v573_v3  ;;  %v808_v8 = vadd.f32 %v1678_v24, %v637_v4 }
 0x11c   : > { %v1369_v11 = vpop.f32.mrf.mxu0  ;;  %v1385_v12 = vpop.f32.mrf.mxu1 }
 0x11d   : > { %v1242_v13 = vpack.c.bf16 %v826_v5, %v825_v1  ;;  %v1282_v14 = vpack.c.bf16 %v842_v6, %v841_v2  ;;  %v824_v15 = vmax.f32 %v792_v7, 0.0  ;;  %v840_v16 = vmax.f32 %v808_v8, 0.0 }
 0x11e   : > { %v797_v17 = vadd.f32 %v1369_v11, %v1678_v24  ;;  %v813_v18 = vadd.f32 %v1385_v12, %v1678_v24  ;;  %v586_v19 = vpop.f32.mrf.mxu0  ;;  %v650_v20 = vpop.f32.mrf.mxu1 }
 0x11f   : > { %1306 = vst [vmem:[%s1693_s15 + $0x18] sm:$0xff] %v1242_v13   ;;  %1314 = vst [vmem:[%s1693_s15 + $0x58] sm:$0xff] %v1282_v14   ;;  %v1237_v21 = vpack.c.bf16 %v824_v15, %v823_v9  ;;  %v1277_v22 = vpack.c.bf16 %v840_v16, %v839_v10  ;;  %v795_v23 = vadd.f32 %v1678_v24, %v586_v19 }
 0x120   : > { %v811_v25 = vadd.f32 %v1678_v24, %v650_v20  ;;  %v1370_v26 = vpop.f32.mrf.mxu0  ;;  %v1386_v27 = vpop.f32.mrf.mxu1  ;;  %v829_v30 = vmax.f32 %v797_v17, 0.0  ;;  %v845_v31 = vmax.f32 %v813_v18, 0.0 }
 0x121   : > { %1305 = vst [vmem:[%s1693_s15 + $0x10] sm:$0xff] %v1237_v21   ;;  %1313 = vst [vmem:[%s1693_s15 + $0x50] sm:$0xff] %v1277_v22   ;;  %v798_v28 = vadd.f32 %v1370_v26, %v1678_v24  ;;  %v814_v29 = vadd.f32 %v1386_v27, %v1678_v24  ;;  %v827_v38 = vmax.f32 %v795_v23, 0.0 }
 0x122   : > { %v589_v32 = vpop.f32.mrf.mxu0  ;;  %v653_v33 = vpop.f32.mrf.mxu1  ;;  %v843_v39 = vmax.f32 %v811_v25, 0.0 }
 0x123   : > { %v830_v34 = vmax.f32 %v798_v28, 0.0  ;;  %v846_v35 = vmax.f32 %v814_v29, 0.0  ;;  %v796_v36 = vadd.f32 %v1678_v24, %v589_v32  ;;  %v812_v37 = vadd.f32 %v1678_v24, %v653_v33 }
 0x124   : > { %v1373_v40 = vpop.f32.mrf.mxu0  ;;  %v1389_v41 = vpop.f32.mrf.mxu1 }
 0x125   : > { %v1252_v42 = vpack.c.bf16 %v830_v34, %v829_v30  ;;  %v1292_v43 = vpack.c.bf16 %v846_v35, %v845_v31  ;;  %v828_v44 = vmax.f32 %v796_v36, 0.0  ;;  %v844_v45 = vmax.f32 %v812_v37, 0.0 }
 0x126   : > { %v801_v46 = vadd.f32 %v1373_v40, %v1678_v24  ;;  %v817_v47 = vadd.f32 %v1389_v41, %v1678_v24  ;;  %v602_v48 = vpop.f32.mrf.mxu0  ;;  %v666_v49 = vpop.f32.mrf.mxu1 }
 0x127   : > { %1308 = vst [vmem:[%s1693_s15 + $0x28] sm:$0xff] %v1252_v42   ;;  %1316 = vst [vmem:[%s1693_s15 + $0x68] sm:$0xff] %v1292_v43   ;;  %v1247_v50 = vpack.c.bf16 %v828_v44, %v827_v38  ;;  %v1287_v51 = vpack.c.bf16 %v844_v45, %v843_v39  ;;  %v799_v52 = vadd.f32 %v1678_v24, %v602_v48 }
 0x128   : > { %v815_v53 = vadd.f32 %v1678_v24, %v666_v49  ;;  %v1374_v54 = vpop.f32.mrf.mxu0  ;;  %v1390_v55 = vpop.f32.mrf.mxu1  ;;  %v833_v58 = vmax.f32 %v801_v46, 0.0  ;;  %v849_v59 = vmax.f32 %v817_v47, 0.0 }
 0x129   : > { %1307 = vst [vmem:[%s1693_s15 + $0x20] sm:$0xff] %v1247_v50   ;;  %1315 = vst [vmem:[%s1693_s15 + $0x60] sm:$0xff] %v1287_v51   ;;  %v802_v56 = vadd.f32 %v1374_v54, %v1678_v24  ;;  %v818_v57 = vadd.f32 %v1390_v55, %v1678_v24  ;;  %v831_v2 = vmax.f32 %v799_v52, 0.0 }
 0x12a   : > { %v605_v60 = vpop.f32.mrf.mxu0  ;;  %v669_v61 = vpop.f32.mrf.mxu1  ;;  %v847_v3 = vmax.f32 %v815_v53, 0.0 }
 0x12b   : > { %v834_v62 = vmax.f32 %v802_v56, 0.0  ;;  %v850_v63 = vmax.f32 %v818_v57, 0.0  ;;  %v800_v0 = vadd.f32 %v1678_v24, %v605_v60  ;;  %v816_v1 = vadd.f32 %v1678_v24, %v669_v61 }
 0x12d   : > { %v1262_v4 = vpack.c.bf16 %v834_v62, %v833_v58  ;;  %v1302_v5 = vpack.c.bf16 %v850_v63, %v849_v59  ;;  %v832_v6 = vmax.f32 %v800_v0, 0.0  ;;  %v848_v7 = vmax.f32 %v816_v1, 0.0 }
 0x12f   : > { %1310 = vst [vmem:[%s1693_s15 + $0x38] sm:$0xff] %v1262_v4   ;;  %1318 = vst [vmem:[%s1693_s15 + $0x78] sm:$0xff] %v1302_v5   ;;  %v1257_v8 = vpack.c.bf16 %v832_v6, %v831_v2  ;;  %v1297_v9 = vpack.c.bf16 %v848_v7, %v847_v3 }
 0x131   : > { %1309 = vst [vmem:[%s1693_s15 + $0x30] sm:$0xff] %v1257_v8   ;;  %1317 = vst [vmem:[%s1693_s15 + $0x70] sm:$0xff] %v1297_v9  }
 0x132 PF: > { %s15_s14 = sadd.s32 1, %s1560_s14   ;;  %s1751_s12 = smov %s1556_s13 }
 0x133   : > { %p12_p3 = scmp.ge.s32.totalorder %s15_s14, 4   ;;  %s1752_s13 = smov %s1754_s16 }
 0x135   :  { %14 = sbr.rel (!%p12_p3) target bundleno = 3 (0x3), region = 81 }
 0x13a   :  { %1039 = vsyncpa [#allocation4], 1 }
 0x13b   :  { %1041 = vsyncpa [#allocation4 + $0x1], 1 }
 0x13c   :  { %1042 = vsyncpa [#allocation6], 1 }

// kernel: feature_extractor_forward.7
= control target key start
LH: loop header
LB: loop body
LE: loop exit
PB: predicated region body
PF: predicated region fallthrough
CT: control target
= control target key end

     0   :  { %s1768_s12 = smov 0   ;;  %s1770_s13 = smov 0   ;;  %s1998_s0 = inlined_call_operand.vmem [shape: bf16[128,3584], index: 0, kind: input, shape index: {}]   ;;  %s1999_s1 = inlined_call_operand.vmem [shape: bf16[3584,128], index: 1, kind: input, shape index: {}]   ;;  %s2000_s2 = inlined_call_operand.vmem [shape: f32[1,128], index: 2, kind: input, shape index: {}]   ;;  %s2001_s3 = inlined_call_operand.vmem [shape: bf16[128,128], index: 3, kind: output, shape index: {}]  }
   0x1   :  { %s1772_s14 = smov 0   ;;  %s1774_s15 = smov 0  }
   0x2   :  { %s1776_s16 = smov 0  }
   0x3 LB: > { %s25_s17 = sadd.s32 1, %s1741_s15  ;;  %p48_p1 = scmp.ne.s32.totalorder %s1733_s13, %s1729_s12  ;;  %s1745_s16 = sphi %s1776_s16, %s13_s16   ;;  %s1741_s15 = sphi %s1774_s15, %s2005_s15   ;;  %s1737_s14 = sphi %s1772_s14, %s2004_s14   ;;  %s1733_s13 = sphi %s1770_s13, %s2003_s13   ;;  %s1729_s12 = sphi %s1768_s12, %s2002_s12  }
   0x4   : > { %p26_p0 = scmp.ge.s32.totalorder %s25_s17, 7  ;;  %p49_p2 = scmp.eq.s32.totalorder %s1745_s16, 0 }
   0x5   : > { %s41_s19 = sadd.s32 1, %s1733_s13  ;;  %p1299_p5 = scmp.ge.s32.totalorder %s1745_s16, 7 }
   0x6   : > { %s2007_s17 = smov (%p26_p0, %s25_s17), 0  ;;  %p50_p3 = por %p49_p2, %p48_p1 }
   0x7   : > { %s37_s18 = ssub.s32 %s1741_s15, %s2007_s17  ;;  %162 = sbr.rel (%p1299_p5) target bundleno = 32 (0x20), region = 20 }
   0x8   : > { %p39_p4 = scmp.eq.s32.totalorder %s37_s18, 0 }
   0xa   : > { %s1803_s20 = scalar_select %p39_p4, %s1733_s13, %s41_s19  }
   0xc   : > { %165 = sbr.rel (!%p50_p3) target bundleno = 32 (0x20), region = 24  ;;  %s167_s21 = sand.u32 (%p50_p3), 1, %s1733_s13  }
   0xd   : > { %s1394_s22 = sshll.u32 (%p50_p3), %s1741_s15, 4  ;;  %s1300_s23 = sshll.u32 (%p50_p3), %s167_s21, 8 }
   0xe   : > { %s1811_s26 = scalar_lea.vmem (%p50_p3), %s1998_s0, %s1394_s22  ;;  %s1816_s27 = scalar_lea.vmem (%p50_p3), [#allocation3], %s1300_s23 }
   0xf   : > { %v188_v0 = vld [vmem:[%s1811_s26] sm:$0xff] (%p50_p3)  ;;  %v190_v1 = vld [vmem:[%s1811_s26 + $0x8] sm:$0xff] (%p50_p3)  ;;  %v192_v2 = vld [vmem:[%s1811_s26 + $0x70] sm:$0xff] (%p50_p3) }
  0x10   : > { %189 = vst [vmem:[%s1816_s27] sm:$0xff] (%p50_p3), %v188_v0  ;;  %191 = vst [vmem:[%s1816_s27 + $0x8] sm:$0xff] (%p50_p3), %v190_v1  ;;  %v194_v3 = vld [vmem:[%s1811_s26 + $0x78] sm:$0xff] (%p50_p3)  ;;  %v196_v4 = vld [vmem:[%s1811_s26 + $0xe0] sm:$0xff] (%p50_p3) }
  0x11   : > { %193 = vst [vmem:[%s1816_s27 + $0x10] sm:$0xff] %v192_v2  ;;  %v198_v5 = vld [vmem:[%s1811_s26 + $0xe8] sm:$0xff]  ;;  %195 = vst [vmem:[%s1816_s27 + $0x18] sm:$0xff] %v194_v3  ;;  %v200_v6 = vld [vmem:[%s1811_s26 + $0x150] sm:$0xff] }
  0x12   : > { %197 = vst [vmem:[%s1816_s27 + $0x20] sm:$0xff] %v196_v4  ;;  %199 = vst [vmem:[%s1816_s27 + $0x28] sm:$0xff] %v198_v5  ;;  %v202_v7 = vld [vmem:[%s1811_s26 + $0x158] sm:$0xff]  ;;  %v204_v8 = vld [vmem:[%s1811_s26 + $0x1c0] sm:$0xff] }
  0x13   : > { %201 = vst [vmem:[%s1816_s27 + $0x30] sm:$0xff] %v200_v6  ;;  %203 = vst [vmem:[%s1816_s27 + $0x38] sm:$0xff] %v202_v7  ;;  %v206_v9 = vld [vmem:[%s1811_s26 + $0x1c8] sm:$0xff]  ;;  %v208_v10 = vld [vmem:[%s1811_s26 + $0x230] sm:$0xff] }
  0x14   : > { %205 = vst [vmem:[%s1816_s27 + $0x40] sm:$0xff] %v204_v8  ;;  %v210_v11 = vld [vmem:[%s1811_s26 + $0x238] sm:$0xff]  ;;  %207 = vst [vmem:[%s1816_s27 + $0x48] sm:$0xff] %v206_v9  ;;  %v212_v12 = vld [vmem:[%s1811_s26 + $0x2a0] sm:$0xff] }
  0x15   : > { %209 = vst [vmem:[%s1816_s27 + $0x50] sm:$0xff] %v208_v10  ;;  %211 = vst [vmem:[%s1816_s27 + $0x58] sm:$0xff] %v210_v11  ;;  %v214_v13 = vld [vmem:[%s1811_s26 + $0x2a8] sm:$0xff]  ;;  %v216_v14 = vld [vmem:[%s1811_s26 + $0x310] sm:$0xff] }
  0x16   : > { %213 = vst [vmem:[%s1816_s27 + $0x60] sm:$0xff] %v212_v12  ;;  %215 = vst [vmem:[%s1816_s27 + $0x68] sm:$0xff] %v214_v13  ;;  %v218_v15 = vld [vmem:[%s1811_s26 + $0x318] sm:$0xff]  ;;  %v220_v16 = vld [vmem:[%s1811_s26 + $0x380] sm:$0xff] }
  0x17   : > { %217 = vst [vmem:[%s1816_s27 + $0x70] sm:$0xff] %v216_v14  ;;  %v222_v17 = vld [vmem:[%s1811_s26 + $0x388] sm:$0xff]  ;;  %219 = vst [vmem:[%s1816_s27 + $0x78] sm:$0xff] %v218_v15  ;;  %v224_v18 = vld [vmem:[%s1811_s26 + $0x3f0] sm:$0xff] }
  0x18   : > { %221 = vst [vmem:[%s1816_s27 + $0x80] sm:$0xff] %v220_v16  ;;  %223 = vst [vmem:[%s1816_s27 + $0x88] sm:$0xff] %v222_v17  ;;  %v226_v19 = vld [vmem:[%s1811_s26 + $0x3f8] sm:$0xff]  ;;  %v228_v20 = vld [vmem:[%s1811_s26 + $0x460] sm:$0xff] }
  0x19   : > { %225 = vst [vmem:[%s1816_s27 + $0x90] sm:$0xff] %v224_v18  ;;  %227 = vst [vmem:[%s1816_s27 + $0x98] sm:$0xff] %v226_v19  ;;  %v230_v21 = vld [vmem:[%s1811_s26 + $0x468] sm:$0xff]  ;;  %v232_v22 = vld [vmem:[%s1811_s26 + $0x4d0] sm:$0xff] }
  0x1a   : > { %229 = vst [vmem:[%s1816_s27 + $0xa0] sm:$0xff] %v228_v20  ;;  %v234_v23 = vld [vmem:[%s1811_s26 + $0x4d8] sm:$0xff]  ;;  %231 = vst [vmem:[%s1816_s27 + $0xa8] sm:$0xff] %v230_v21  ;;  %v236_v24 = vld [vmem:[%s1811_s26 + $0x540] sm:$0xff] }
  0x1b   : > { %233 = vst [vmem:[%s1816_s27 + $0xb0] sm:$0xff] %v232_v22  ;;  %235 = vst [vmem:[%s1816_s27 + $0xb8] sm:$0xff] %v234_v23  ;;  %v238_v25 = vld [vmem:[%s1811_s26 + $0x548] sm:$0xff]  ;;  %v240_v26 = vld [vmem:[%s1811_s26 + $0x5b0] sm:$0xff] }
  0x1c   : > { %237 = vst [vmem:[%s1816_s27 + $0xc0] sm:$0xff] %v236_v24  ;;  %239 = vst [vmem:[%s1816_s27 + $0xc8] sm:$0xff] %v238_v25  ;;  %v242_v27 = vld [vmem:[%s1811_s26 + $0x5b8] sm:$0xff]  ;;  %v244_v28 = vld [vmem:[%s1811_s26 + $0x620] sm:$0xff] }
  0x1d   : > { %241 = vst [vmem:[%s1816_s27 + $0xd0] sm:$0xff] %v240_v26  ;;  %v246_v29 = vld [vmem:[%s1811_s26 + $0x628] sm:$0xff]  ;;  %243 = vst [vmem:[%s1816_s27 + $0xd8] sm:$0xff] %v242_v27  ;;  %v248_v30 = vld [vmem:[%s1811_s26 + $0x690] sm:$0xff] }
  0x1e   : > { %245 = vst [vmem:[%s1816_s27 + $0xe0] sm:$0xff] %v244_v28  ;;  %247 = vst [vmem:[%s1816_s27 + $0xe8] sm:$0xff] %v246_v29  ;;  %v250_v31 = vld [vmem:[%s1811_s26 + $0x698] sm:$0xff] }
  0x1f   : > { %249 = vst [vmem:[%s1816_s27 + $0xf0] sm:$0xff] %v248_v30  ;;  %251 = vst [vmem:[%s1816_s27 + $0xf8] sm:$0xff] %v250_v31 }
  0x20 PF: > { %p1303_p6 = scmp.ge.s32.totalorder %s1745_s16, 1  ;;  %p268_p7 = scmp.lt.s32.totalorder %s1745_s16, 8 }
  0x22   : > { %p269_p8 = pnand %p1303_p6, %p268_p7 }
  0x23   : > { %s275_s28 = sand.u32 (!%p269_p8), 1, %s1729_s12   ;;  %s1305_s29 = sshll.u32 (!%p269_p8), %s1737_s14, 6 }
  0x24   : > { %272 = sbr.rel (%p269_p8) target bundleno = 368 (0x170), region = 51  ;;  %s1304_s30 = sshll.u32 (!%p269_p8), %s275_s28, 8 }
  0x25   : > { %p315_p9 = scmp.lt.s32.totalorder (!%p269_p8), %s1305_s29, 447  ;;  %s1888_s8 = scalar_lea.vmem (!%p269_p8), [#allocation3], %s1304_s30 }
  0x26   : > { %p1307_p10 = scmp.ne.s32.totalorder (!%p269_p8), %s1737_s14, 0 }
  0x29   : > { %s2009_s29 = smov (!%p315_p9, %s1305_s29), 447  ;;  %339 = sbr.rel (%p1307_p10) target bundleno = 55 (0x37), region = 59 }
  0x2a   : > { %s1306_s4 = sshll.u32 %s2009_s29, 2 }
  0x2b   : > { %s1886_s7 = scalar_lea.vmem %s1999_s1, %s1306_s4 }
  0x2e   : > { %v1747_v32 = vmov 0.0  }
  0x2f   : > { %340 = vst [vmem:[#allocation2 + $0x30] sm:$0xff] %v1747_v32  ;;  %341 = vst [vmem:[#allocation2] sm:$0xff] %v1747_v32 }
  0x30   : > { %342 = vst [vmem:[#allocation2 + $0x58] sm:$0xff] %v1747_v32  ;;  %343 = vst [vmem:[#allocation2 + $0x18] sm:$0xff] %v1747_v32 }
  0x31   : > { %344 = vst [vmem:[#allocation2 + $0x50] sm:$0xff] %v1747_v32  ;;  %345 = vst [vmem:[#allocation2 + $0x68] sm:$0xff] %v1747_v32 }
  0x32   : > { %346 = vst [vmem:[#allocation2 + $0x8] sm:$0xff] %v1747_v32  ;;  %347 = vst [vmem:[#allocation2 + $0x48] sm:$0xff] %v1747_v32 }
  0x33   : > { %348 = vst [vmem:[#allocation2 + $0x40] sm:$0xff] %v1747_v32  ;;  %349 = vst [vmem:[#allocation2 + $0x20] sm:$0xff] %v1747_v32 }
  0x34   : > { %350 = vst [vmem:[#allocation2 + $0x10] sm:$0xff] %v1747_v32  ;;  %351 = vst [vmem:[#allocation2 + $0x38] sm:$0xff] %v1747_v32 }
  0x35   : > { %352 = vst [vmem:[#allocation2 + $0x60] sm:$0xff] %v1747_v32  ;;  %353 = vst [vmem:[#allocation2 + $0x70] sm:$0xff] %v1747_v32 }
  0x36   : > { %354 = vst [vmem:[#allocation2 + $0x78] sm:$0xff] %v1747_v32  ;;  %355 = vst [vmem:[#allocation2 + $0x28] sm:$0xff] %v1747_v32 }
  0x37 PF: > { %v1627_v33 = vld [vmem:[%s1886_s7 + $0x78] sm:$0xff]   ;;  %v1631_v37 = vld [vmem:[%s1886_s7 + $0x70] sm:$0xff]   ;;  %v1635_v41 = vld [vmem:[%s1886_s7 + $0x68] sm:$0xff]   ;;  %p1372_p11 = scmp.ne.s32.totalorder %s1737_s14, 6 }
  0x38   : > { %v1628_v34 = vld [vmem:[%s1886_s7 + $0xf8] sm:$0xff]   ;;  %1458 = vmatprep.subr.bf16.mxu0 %v1627_v33  ;;  %v1632_v38 = vld [vmem:[%s1886_s7 + $0xf0] sm:$0xff]   ;;  %v1636_v42 = vld [vmem:[%s1886_s7 + $0xe8] sm:$0xff]  }
  0x39   : > { %v1629_v35 = vld [vmem:[%s1886_s7 + $0x38] sm:$0xff]   ;;  %1522 = vmatprep.subr.bf16.mxu1 %v1628_v34  ;;  %v1633_v39 = vld [vmem:[%s1886_s7 + $0x30] sm:$0xff]   ;;  %v1637_v43 = vld [vmem:[%s1886_s7 + $0x28] sm:$0xff]  }
  0x3a   : > { %v1630_v36 = vld [vmem:[%s1886_s7 + $0xb8] sm:$0xff]   ;;  %1459 = vmatpush3.bf16.msra.mxu0 %v1629_v35  ;;  %v1634_v40 = vld [vmem:[%s1886_s7 + $0xb0] sm:$0xff]   ;;  %v1638_v44 = vld [vmem:[%s1886_s7 + $0xa8] sm:$0xff]  }
  0x3b   : > { %1523 = vmatpush3.bf16.msra.mxu1 %v1630_v36  ;;  %1460 = vmatprep.subr.bf16.mxu0 %v1631_v37  ;;  %v1639_v45 = vld [vmem:[%s1886_s7 + $0x60] sm:$0xff]   ;;  %v1643_v49 = vld [vmem:[%s1886_s7 + $0x58] sm:$0xff]   ;;  %v1647_v53 = vld [vmem:[%s1886_s7 + $0x50] sm:$0xff]  }
  0x3c   : > { %1524 = vmatprep.subr.bf16.mxu1 %v1632_v38  ;;  %v1640_v46 = vld [vmem:[%s1886_s7 + $0xe0] sm:$0xff]   ;;  %v1644_v50 = vld [vmem:[%s1886_s7 + $0xd8] sm:$0xff]   ;;  %v1648_v54 = vld [vmem:[%s1886_s7 + $0xd0] sm:$0xff]  }
  0x3d   : > { %v1641_v47 = vld [vmem:[%s1886_s7 + $0x20] sm:$0xff]   ;;  %v1645_v51 = vld [vmem:[%s1886_s7 + $0x18] sm:$0xff]   ;;  %v1649_v55 = vld [vmem:[%s1886_s7 + $0x10] sm:$0xff]  }
  0x3e   : > { %1461 = vmatpush3.bf16.msra.mxu0 %v1633_v39  ;;  %v1642_v48 = vld [vmem:[%s1886_s7 + $0xa0] sm:$0xff]   ;;  %v1646_v52 = vld [vmem:[%s1886_s7 + $0x98] sm:$0xff]   ;;  %v1650_v56 = vld [vmem:[%s1886_s7 + $0x90] sm:$0xff]  }
  0x3f   : > { %1525 = vmatpush3.bf16.msra.mxu1 %v1634_v40  ;;  %1462 = vmatprep.subr.bf16.mxu0 %v1635_v41  ;;  %v1651_v57 = vld [vmem:[%s1886_s7 + $0x48] sm:$0xff]   ;;  %v1655_v61 = vld [vmem:[%s1886_s7 + $0x40] sm:$0xff]   ;;  %v356_v40 = vld [vmem:[#allocation2 + $0x30] sm:$0xff] }
  0x40   : > { %1526 = vmatprep.subr.bf16.mxu1 %v1636_v42  ;;  %v1652_v58 = vld [vmem:[%s1886_s7 + $0xc8] sm:$0xff]   ;;  %v1656_v62 = vld [vmem:[%s1886_s7 + $0xc0] sm:$0xff]  }
  0x41   : > { %v1653_v59 = vld [vmem:[%s1886_s7 + $0x8] sm:$0xff]   ;;  %v1657_v63 = vld [vmem:[%s1886_s7] sm:$0xff]  }
  0x42   : > { %1463 = vmatpush3.bf16.msra.mxu0 %v1637_v43  ;;  %v1654_v60 = vld [vmem:[%s1886_s7 + $0x88] sm:$0xff]   ;;  %v1658_v0 = vld [vmem:[%s1886_s7 + $0x80] sm:$0xff]  }
  0x43   : > { %1527 = vmatpush3.bf16.msra.mxu1 %v1638_v44  ;;  %1464 = vmatprep.subr.bf16.mxu0 %v1639_v45  ;;  %v1659_v1 = vld [vmem:[%s1888_s8] ss:$16 sps:$4 sm:$0xff]   ;;  %v1661_v2 = vld [vmem:[%s1888_s8 + $0x4] ss:$16 sps:$4 sm:$0xff]   ;;  %v1662_v3 = vld [vmem:[%s1888_s8 + $0x8] ss:$16 sps:$4 sm:$0xff]  }
  0x44   : > { %1528 = vmatprep.subr.bf16.mxu1 %v1640_v46  ;;  %v1664_v4 = vld [vmem:[%s1888_s8 + $0xc] ss:$16 sps:$4 sm:$0xff]   ;;  %852 = vmatprep.mubr.bf16.mxu0 %v1661_v2  ;;  %v1665_v5 = vld [vmem:[%s1888_s8 + $0x24] ss:$16 sps:$4 sm:$0xff]   ;;  %v1669_v7 = vld [vmem:[%s1888_s8 + $0x20] ss:$16 sps:$4 sm:$0xff]  }
  0x45   : > { %949 = vmatprep.mubr.bf16.mxu1 %v1664_v4  ;;  %v1667_v6 = vld [vmem:[%s1888_s8 + $0x2c] ss:$16 sps:$4 sm:$0xff]   ;;  %v1670_v8 = vld [vmem:[%s1888_s8 + $0x28] ss:$16 sps:$4 sm:$0xff]   ;;  %v1671_v9 = vld [vmem:[%s1888_s8 + $0x44] ss:$16 sps:$4 sm:$0xff]  }
  0x46   : > { %1465 = vmatpush3.bf16.msra.mxu0 %v1641_v47  ;;  %v1673_v10 = vld [vmem:[%s1888_s8 + $0x4c] ss:$16 sps:$4 sm:$0xff]   ;;  %v1675_v11 = vld [vmem:[%s1888_s8 + $0x40] ss:$16 sps:$4 sm:$0xff]   ;;  %v1676_v12 = vld [vmem:[%s1888_s8 + $0x48] ss:$16 sps:$4 sm:$0xff]  }
  0x47   : > { %1529 = vmatpush3.bf16.msra.mxu1 %v1642_v48  ;;  %1466 = vmatprep.subr.bf16.mxu0 %v1643_v49  ;;  %v1677_v13 = vld [vmem:[%s1888_s8 + $0x64] ss:$16 sps:$4 sm:$0xff]   ;;  %v1679_v14 = vld [vmem:[%s1888_s8 + $0x6c] ss:$16 sps:$4 sm:$0xff]   ;;  %v1681_v15 = vld [vmem:[%s1888_s8 + $0x60] ss:$16 sps:$4 sm:$0xff]  }
  0x48   : > { %1530 = vmatprep.subr.bf16.mxu1 %v1644_v50  ;;  %v1682_v16 = vld [vmem:[%s1888_s8 + $0x68] ss:$16 sps:$4 sm:$0xff]   ;;  %v1683_v17 = vld [vmem:[%s1888_s8 + $0x84] ss:$16 sps:$4 sm:$0xff]   ;;  %v1685_v18 = vld [vmem:[%s1888_s8 + $0x8c] ss:$16 sps:$4 sm:$0xff]  }
  0x49   : > { %v1687_v19 = vld [vmem:[%s1888_s8 + $0x80] ss:$16 sps:$4 sm:$0xff]   ;;  %v1688_v20 = vld [vmem:[%s1888_s8 + $0x88] ss:$16 sps:$4 sm:$0xff]   ;;  %v1689_v21 = vld [vmem:[%s1888_s8 + $0xa4] ss:$16 sps:$4 sm:$0xff]  }
  0x4a   : > { %1467 = vmatpush3.bf16.msra.mxu0 %v1645_v51  ;;  %v1691_v22 = vld [vmem:[%s1888_s8 + $0xac] ss:$16 sps:$4 sm:$0xff]   ;;  %v1693_v23 = vld [vmem:[%s1888_s8 + $0xa0] ss:$16 sps:$4 sm:$0xff]   ;;  %v1694_v24 = vld [vmem:[%s1888_s8 + $0xa8] ss:$16 sps:$4 sm:$0xff]  }
  0x4b   : > { %1531 = vmatpush3.bf16.msra.mxu1 %v1646_v52  ;;  %1468 = vmatprep.subr.bf16.mxu0 %v1647_v53  ;;  %v1695_v25 = vld [vmem:[%s1888_s8 + $0xc4] ss:$16 sps:$4 sm:$0xff]   ;;  %v1697_v26 = vld [vmem:[%s1888_s8 + $0xcc] ss:$16 sps:$4 sm:$0xff]   ;;  %v1699_v27 = vld [vmem:[%s1888_s8 + $0xc0] ss:$16 sps:$4 sm:$0xff]  }
  0x4c   : > { %1532 = vmatprep.subr.bf16.mxu1 %v1648_v54  ;;  %v1700_v28 = vld [vmem:[%s1888_s8 + $0xc8] ss:$16 sps:$4 sm:$0xff]   ;;  %v1701_v29 = vld [vmem:[%s1888_s8 + $0xe4] ss:$16 sps:$4 sm:$0xff]   ;;  %v1703_v30 = vld [vmem:[%s1888_s8 + $0xec] ss:$16 sps:$4 sm:$0xff]  }
  0x4d   : > { %v1705_v31 = vld [vmem:[%s1888_s8 + $0xe0] ss:$16 sps:$4 sm:$0xff]   ;;  %v1706_v32 = vld [vmem:[%s1888_s8 + $0xe8] ss:$16 sps:$4 sm:$0xff]  }
  0x4e   : > { %1469 = vmatpush3.bf16.msra.mxu0 %v1649_v55  ;;  %v357_v49 = vld [vmem:[#allocation2] sm:$0xff] }
  0x4f   : > { %1533 = vmatpush3.bf16.msra.mxu1 %v1650_v56  ;;  %1470 = vmatprep.subr.bf16.mxu0 %v1651_v57 }
  0x50   : > { %1534 = vmatprep.subr.bf16.mxu1 %v1652_v58  ;;  %v358_v58 = vld [vmem:[#allocation2 + $0x58] sm:$0xff] }
  0x52   : > { %1471 = vmatpush3.bf16.msra.mxu0 %v1653_v59 }
  0x53   : > { %1535 = vmatpush3.bf16.msra.mxu1 %v1654_v60  ;;  %1472 = vmatprep.subr.bf16.mxu0 %v1655_v61 }
  0x54   : > { %1536 = vmatprep.subr.bf16.mxu1 %v1656_v62 }
  0x56   : > { %1473 = vmatpush3.bf16.msra.mxu0 %v1657_v63 }
  0x57   : > { %1537 = vmatpush3.bf16.msra.mxu1 %v1658_v0 }
  0x59   : > { %853 = vmatmul.mubr.bf16.vlgmr.msra.gmra.mxu0 %v1659_v1 }
  0x5a   : > { %950 = vmatmul.mubr.bf16.vlgmr.msra.gmra.mxu1 %v1662_v3  ;;  %860 = vmatprep.mubr.bf16.mxu0 %v1665_v5  ;;  %v359_v3 = vld [vmem:[#allocation2 + $0x18] sm:$0xff] }
  0x5b   : > { %957 = vmatprep.mubr.bf16.mxu1 %v1667_v6 }
  0x61   : > { %861 = vmatmul.mubr.bf16.gmra.mxu0 %v1669_v7 }
  0x62   : > { %958 = vmatmul.mubr.bf16.gmra.mxu1 %v1670_v8  ;;  %868 = vmatprep.mubr.bf16.mxu0 %v1671_v9 }
  0x63   : > { %965 = vmatprep.mubr.bf16.mxu1 %v1673_v10 }
  0x69   : > { %869 = vmatmul.mubr.bf16.gmra.mxu0 %v1675_v11 }
  0x6a   : > { %966 = vmatmul.mubr.bf16.gmra.mxu1 %v1676_v12  ;;  %876 = vmatprep.mubr.bf16.mxu0 %v1677_v13  ;;  %v360_v12 = vld [vmem:[#allocation2 + $0x50] sm:$0xff] }
  0x6b   : > { %973 = vmatprep.mubr.bf16.mxu1 %v1679_v14 }
  0x71   : > { %877 = vmatmul.mubr.bf16.gmra.mxu0 %v1681_v15 }
  0x72   : > { %974 = vmatmul.mubr.bf16.gmra.mxu1 %v1682_v16  ;;  %884 = vmatprep.mubr.bf16.mxu0 %v1683_v17 }
  0x73   : > { %981 = vmatprep.mubr.bf16.mxu1 %v1685_v18 }
  0x79   : > { %885 = vmatmul.mubr.bf16.gmra.mxu0 %v1687_v19 }
  0x7a   : > { %982 = vmatmul.mubr.bf16.gmra.mxu1 %v1688_v20  ;;  %892 = vmatprep.mubr.bf16.mxu0 %v1689_v21  ;;  %v361_v21 = vld [vmem:[#allocation2 + $0x68] sm:$0xff] }
  0x7b   : > { %989 = vmatprep.mubr.bf16.mxu1 %v1691_v22 }
  0x81   : > { %893 = vmatmul.mubr.bf16.gmra.mxu0 %v1693_v23 }
  0x82   : > { %990 = vmatmul.mubr.bf16.gmra.mxu1 %v1694_v24  ;;  %900 = vmatprep.mubr.bf16.mxu0 %v1695_v25 }
  0x83   : > { %997 = vmatprep.mubr.bf16.mxu1 %v1697_v26 }
  0x89   : > { %901 = vmatmul.mubr.bf16.gmra.mxu0 %v1699_v27 }
  0x8a   : > { %998 = vmatmul.mubr.bf16.gmra.mxu1 %v1700_v28  ;;  %908 = vmatprep.mubr.bf16.mxu0 %v1701_v29 }
  0x8b   : > { %1005 = vmatprep.mubr.bf16.mxu1 %v1703_v30  ;;  %v362_v30 = vld [vmem:[#allocation2 + $0x8] sm:$0xff] }
  0x91   : > { %909 = vmatmul.mubr.bf16.gmra.mxu0 %v1705_v31 }
  0x92   : > { %1006 = vmatmul.mubr.bf16.gmra.mxu1 %v1706_v32 }
 0x119   : > { %v1474_v33 = vpop.f32.mrf.mxu0 }
 0x11a   : > { %v1538_v34 = vpop.f32.mrf.mxu1 }
 0x11b   : > { %v1475_v35 = vpop.f32.mrf.mxu0 }
 0x11c   : > { %v1476_v36 = vadd.f32 %v1475_v35, %v1474_v33  ;;  %v1539_v37 = vpop.f32.mrf.mxu1 }
 0x11d   : > { %v1540_v38 = vadd.f32 %v1539_v37, %v1538_v34  ;;  %v1477_v39 = vpop.f32.mrf.mxu0 }
 0x11e   : > { %v1541_v41 = vpop.f32.mrf.mxu1 }
 0x11f   : > { %v952_v42 = vadd.f32 %v1540_v38, %v1476_v36  ;;  %v1478_v43 = vpop.f32.mrf.mxu0 }
 0x120   : > { %v1479_v44 = vadd.f32 %v1478_v43, %v1477_v39  ;;  %v1542_v45 = vpop.f32.mrf.mxu1  ;;  %v363_v39 = vld [vmem:[#allocation2 + $0x48] sm:$0xff] }
 0x121   : > { %v1014_v46 = vadd.f32 %v952_v42, %v356_v40  ;;  %v1543_v47 = vadd.f32 %v1542_v45, %v1541_v41  ;;  %v1480_v48 = vpop.f32.mrf.mxu0 }
 0x122   : > { %v1544_v50 = vpop.f32.mrf.mxu1 }
 0x123   : > { %1030 = vst [vmem:[#allocation2 + $0x30] sm:$0xff] %v1014_v46  ;;  %v955_v51 = vadd.f32 %v1543_v47, %v1479_v44  ;;  %v1481_v52 = vpop.f32.mrf.mxu0 }
 0x124   : > { %v1482_v53 = vadd.f32 %v1481_v52, %v1480_v48  ;;  %v1545_v54 = vpop.f32.mrf.mxu1  ;;  %v364_v48 = vld [vmem:[#allocation2 + $0x40] sm:$0xff] }
 0x125   : > { %v1015_v55 = vadd.f32 %v955_v51, %v357_v49  ;;  %v1546_v56 = vadd.f32 %v1545_v54, %v1544_v50  ;;  %v1483_v57 = vpop.f32.mrf.mxu0 }
 0x126   : > { %v1547_v59 = vpop.f32.mrf.mxu1 }
 0x127   : > { %1031 = vst [vmem:[#allocation2] sm:$0xff] %v1015_v55  ;;  %v960_v60 = vadd.f32 %v1546_v56, %v1482_v53  ;;  %v1484_v61 = vpop.f32.mrf.mxu0 }
 0x128   : > { %v1485_v62 = vadd.f32 %v1484_v61, %v1483_v57  ;;  %v1548_v63 = vpop.f32.mrf.mxu1  ;;  %v365_v57 = vld [vmem:[#allocation2 + $0x20] sm:$0xff] }
 0x129   : > { %v1016_v0 = vadd.f32 %v960_v60, %v358_v58  ;;  %v1549_v1 = vadd.f32 %v1548_v63, %v1547_v59  ;;  %v1486_v2 = vpop.f32.mrf.mxu0 }
 0x12a   : > { %v1550_v4 = vpop.f32.mrf.mxu1 }
 0x12b   : > { %1032 = vst [vmem:[#allocation2 + $0x58] sm:$0xff] %v1016_v0  ;;  %v963_v5 = vadd.f32 %v1549_v1, %v1485_v62  ;;  %v1487_v6 = vpop.f32.mrf.mxu0 }
 0x12c   : > { %v1488_v7 = vadd.f32 %v1487_v6, %v1486_v2  ;;  %v1551_v8 = vpop.f32.mrf.mxu1  ;;  %v366_v2 = vld [vmem:[#allocation2 + $0x10] sm:$0xff] }
 0x12d   : > { %v1017_v9 = vadd.f32 %v963_v5, %v359_v3  ;;  %v1552_v10 = vadd.f32 %v1551_v8, %v1550_v4  ;;  %v1489_v11 = vpop.f32.mrf.mxu0 }
 0x12e   : > { %v1553_v13 = vpop.f32.mrf.mxu1 }
 0x12f   : > { %1033 = vst [vmem:[#allocation2 + $0x18] sm:$0xff] %v1017_v9  ;;  %v968_v14 = vadd.f32 %v1552_v10, %v1488_v7  ;;  %v1490_v15 = vpop.f32.mrf.mxu0 }
 0x130   : > { %v1491_v16 = vadd.f32 %v1490_v15, %v1489_v11  ;;  %v1554_v17 = vpop.f32.mrf.mxu1  ;;  %v367_v11 = vld [vmem:[#allocation2 + $0x38] sm:$0xff] }
 0x131   : > { %v1018_v18 = vadd.f32 %v968_v14, %v360_v12  ;;  %v1555_v19 = vadd.f32 %v1554_v17, %v1553_v13  ;;  %v1492_v20 = vpop.f32.mrf.mxu0 }
 0x132   : > { %v1556_v22 = vpop.f32.mrf.mxu1 }
 0x133   : > { %1034 = vst [vmem:[#allocation2 + $0x50] sm:$0xff] %v1018_v18  ;;  %v971_v23 = vadd.f32 %v1555_v19, %v1491_v16  ;;  %v1493_v24 = vpop.f32.mrf.mxu0 }
 0x134   : > { %v1494_v25 = vadd.f32 %v1493_v24, %v1492_v20  ;;  %v1557_v26 = vpop.f32.mrf.mxu1  ;;  %v368_v20 = vld [vmem:[#allocation2 + $0x60] sm:$0xff] }
 0x135   : > { %v1019_v27 = vadd.f32 %v971_v23, %v361_v21  ;;  %v1558_v28 = vadd.f32 %v1557_v26, %v1556_v22  ;;  %v1495_v29 = vpop.f32.mrf.mxu0 }
 0x136   : > { %v1559_v31 = vpop.f32.mrf.mxu1 }
 0x137   : > { %1035 = vst [vmem:[#allocation2 + $0x68] sm:$0xff] %v1019_v27  ;;  %v976_v32 = vadd.f32 %v1558_v28, %v1494_v25  ;;  %v1496_v33 = vpop.f32.mrf.mxu0 }
 0x138   : > { %v1497_v34 = vadd.f32 %v1496_v33, %v1495_v29  ;;  %v1560_v35 = vpop.f32.mrf.mxu1  ;;  %v369_v29 = vld [vmem:[#allocation2 + $0x70] sm:$0xff] }
 0x139   : > { %v1020_v36 = vadd.f32 %v976_v32, %v362_v30  ;;  %v1561_v37 = vadd.f32 %v1560_v35, %v1559_v31  ;;  %v1498_v38 = vpop.f32.mrf.mxu0 }
 0x13a   : > { %v1562_v40 = vpop.f32.mrf.mxu1 }
 0x13b   : > { %1036 = vst [vmem:[#allocation2 + $0x8] sm:$0xff] %v1020_v36  ;;  %v979_v41 = vadd.f32 %v1561_v37, %v1497_v34  ;;  %v1499_v42 = vpop.f32.mrf.mxu0 }
 0x13c   : > { %v1500_v43 = vadd.f32 %v1499_v42, %v1498_v38  ;;  %v1563_v44 = vpop.f32.mrf.mxu1  ;;  %v370_v38 = vld [vmem:[#allocation2 + $0x78] sm:$0xff] }
 0x13d   : > { %v1021_v45 = vadd.f32 %v979_v41, %v363_v39  ;;  %v1564_v46 = vadd.f32 %v1563_v44, %v1562_v40  ;;  %v1501_v47 = vpop.f32.mrf.mxu0 }
 0x13e   : > { %v1565_v49 = vpop.f32.mrf.mxu1 }
 0x13f   : > { %1037 = vst [vmem:[#allocation2 + $0x48] sm:$0xff] %v1021_v45  ;;  %v984_v50 = vadd.f32 %v1564_v46, %v1500_v43  ;;  %v1502_v51 = vpop.f32.mrf.mxu0  ;;  %v371_v46 = vld [vmem:[#allocation2 + $0x28] sm:$0xff] }
 0x140   : > { %v1503_v52 = vadd.f32 %v1502_v51, %v1501_v47  ;;  %v1566_v53 = vpop.f32.mrf.mxu1 }
 0x141   : > { %v1022_v54 = vadd.f32 %v984_v50, %v364_v48  ;;  %v1567_v55 = vadd.f32 %v1566_v53, %v1565_v49  ;;  %v1504_v56 = vpop.f32.mrf.mxu0 }
 0x142   : > { %v1568_v58 = vpop.f32.mrf.mxu1 }
 0x143   : > { %1038 = vst [vmem:[#allocation2 + $0x40] sm:$0xff] %v1022_v54  ;;  %v987_v59 = vadd.f32 %v1567_v55, %v1503_v52  ;;  %v1505_v60 = vpop.f32.mrf.mxu0 }
 0x144   : > { %v1506_v61 = vadd.f32 %v1505_v60, %v1504_v56  ;;  %v1569_v62 = vpop.f32.mrf.mxu1 }
 0x145   : > { %v1023_v63 = vadd.f32 %v987_v59, %v365_v57  ;;  %v1570_v0 = vadd.f32 %v1569_v62, %v1568_v58  ;;  %v1507_v1 = vpop.f32.mrf.mxu0 }
 0x146   : > { %v1571_v3 = vpop.f32.mrf.mxu1 }
 0x147   : > { %1039 = vst [vmem:[#allocation2 + $0x20] sm:$0xff] %v1023_v63  ;;  %v992_v4 = vadd.f32 %v1570_v0, %v1506_v61  ;;  %v1508_v5 = vpop.f32.mrf.mxu0 }
 0x148   : > { %v1509_v6 = vadd.f32 %v1508_v5, %v1507_v1  ;;  %v1572_v7 = vpop.f32.mrf.mxu1 }
 0x149   : > { %v1024_v8 = vadd.f32 %v992_v4, %v366_v2  ;;  %v1573_v9 = vadd.f32 %v1572_v7, %v1571_v3  ;;  %v1510_v10 = vpop.f32.mrf.mxu0 }
 0x14a   : > { %v1574_v12 = vpop.f32.mrf.mxu1 }
 0x14b   : > { %1040 = vst [vmem:[#allocation2 + $0x10] sm:$0xff] %v1024_v8  ;;  %v995_v13 = vadd.f32 %v1573_v9, %v1509_v6  ;;  %v1511_v14 = vpop.f32.mrf.mxu0 }
 0x14c   : > { %v1512_v15 = vadd.f32 %v1511_v14, %v1510_v10  ;;  %v1575_v16 = vpop.f32.mrf.mxu1 }
 0x14d   : > { %v1025_v17 = vadd.f32 %v995_v13, %v367_v11  ;;  %v1576_v18 = vadd.f32 %v1575_v16, %v1574_v12  ;;  %v1513_v19 = vpop.f32.mrf.mxu0 }
 0x14e   : > { %v1577_v21 = vpop.f32.mrf.mxu1 }
 0x14f   : > { %1041 = vst [vmem:[#allocation2 + $0x38] sm:$0xff] %v1025_v17  ;;  %v1000_v22 = vadd.f32 %v1576_v18, %v1512_v15  ;;  %v1514_v23 = vpop.f32.mrf.mxu0 }
 0x150   : > { %v1515_v24 = vadd.f32 %v1514_v23, %v1513_v19  ;;  %v1578_v25 = vpop.f32.mrf.mxu1 }
 0x151   : > { %v1026_v26 = vadd.f32 %v1000_v22, %v368_v20  ;;  %v1579_v27 = vadd.f32 %v1578_v25, %v1577_v21  ;;  %v1516_v28 = vpop.f32.mrf.mxu0 }
 0x152   : > { %v1580_v30 = vpop.f32.mrf.mxu1 }
 0x153   : > { %1042 = vst [vmem:[#allocation2 + $0x60] sm:$0xff] %v1026_v26  ;;  %v1003_v31 = vadd.f32 %v1579_v27, %v1515_v24  ;;  %v1517_v32 = vpop.f32.mrf.mxu0 }
 0x154   : > { %v1518_v33 = vadd.f32 %v1517_v32, %v1516_v28  ;;  %v1581_v34 = vpop.f32.mrf.mxu1 }
 0x155   : > { %v1027_v35 = vadd.f32 %v1003_v31, %v369_v29  ;;  %v1582_v36 = vadd.f32 %v1581_v34, %v1580_v30  ;;  %v1519_v37 = vpop.f32.mrf.mxu0 }
 0x156   : > { %v1583_v39 = vpop.f32.mrf.mxu1 }
 0x157   : > { %1043 = vst [vmem:[#allocation2 + $0x70] sm:$0xff] %v1027_v35  ;;  %v1008_v40 = vadd.f32 %v1582_v36, %v1518_v33  ;;  %v1520_v41 = vpop.f32.mrf.mxu0 }
 0x158   : > { %v1521_v42 = vadd.f32 %v1520_v41, %v1519_v37  ;;  %v1584_v43 = vpop.f32.mrf.mxu1 }
 0x159   : > { %v1028_v44 = vadd.f32 %v1008_v40, %v370_v38  ;;  %v1585_v45 = vadd.f32 %v1584_v43, %v1583_v39 }
 0x15b   : > { %1044 = vst [vmem:[#allocation2 + $0x78] sm:$0xff] %v1028_v44  ;;  %v1011_v47 = vadd.f32 %v1585_v45, %v1521_v42  ;;  %1049 = sbr.rel (%p1372_p11) target bundleno = 368 (0x170), region = 63 }
 0x15d   : > { %v1029_v48 = vadd.f32 %v1011_v47, %v371_v46 }
 0x15f   : > { %1045 = vst [vmem:[#allocation2 + $0x28] sm:$0xff] %v1029_v48 }
 0x160   : > { %v1050_v49 = vld [vmem:[#allocation2 + $0x30] sm:$0xff]  ;;  %v1051_v50 = vld [vmem:[#allocation2] sm:$0xff]  ;;  %v1052_v54 = vld [vmem:[#allocation2 + $0x58] sm:$0xff] }
 0x161   : > { %v1373_v51 = vld [vmem:[%s2000_s2] ss:$0 sm:$0xff]  ;;  %v1053_v55 = vld [vmem:[#allocation2 + $0x18] sm:$0xff]  ;;  %v1054_v56 = vld [vmem:[#allocation2 + $0x50] sm:$0xff] }
 0x162   : > { %v1073_v52 = vadd.f32 %v1373_v51, %v1050_v49  ;;  %v1074_v53 = vadd.f32 %v1373_v51, %v1051_v50  ;;  %v1075_v57 = vadd.f32 %v1373_v51, %v1052_v54  ;;  %v1076_v58 = vadd.f32 %v1373_v51, %v1053_v55  ;;  %v1055_v59 = vld [vmem:[#allocation2 + $0x68] sm:$0xff]  ;;  %v1058_v3 = vld [vmem:[#allocation2 + $0x40] sm:$0xff]  ;;  %v1060_v5 = vld [vmem:[#allocation2 + $0x10] sm:$0xff] }
 0x163   : > { %v1077_v60 = vadd.f32 %v1373_v51, %v1054_v56  ;;  %v1056_v61 = vld [vmem:[#allocation2 + $0x8] sm:$0xff]  ;;  %v1078_v1 = vadd.f32 %v1373_v51, %v1055_v59  ;;  %v1059_v4 = vld [vmem:[#allocation2 + $0x20] sm:$0xff]  ;;  %v1061_v10 = vld [vmem:[#allocation2 + $0x38] sm:$0xff]  ;;  %v1081_v15 = vadd.f32 %v1373_v51, %v1058_v3  ;;  %v1083_v20 = vadd.f32 %v1373_v51, %v1060_v5 }
 0x164   : > { %v1057_v62 = vld [vmem:[#allocation2 + $0x48] sm:$0xff]  ;;  %v1089_v63 = vmax.f32 %v1073_v52, 0.0  ;;  %v1090_v0 = vmax.f32 %v1074_v53, 0.0  ;;  %v1079_v2 = vadd.f32 %v1373_v51, %v1056_v61  ;;  %v1091_v6 = vmax.f32 %v1075_v57, 0.0  ;;  %v1062_v11 = vld [vmem:[#allocation2 + $0x60] sm:$0xff]  ;;  %v1063_v16 = vld [vmem:[#allocation2 + $0x70] sm:$0xff] }
 0x165   : > { %v1092_v7 = vmax.f32 %v1076_v58, 0.0  ;;  %v1093_v8 = vmax.f32 %v1077_v60, 0.0  ;;  %v1080_v9 = vadd.f32 %v1373_v51, %v1057_v62  ;;  %v1094_v13 = vmax.f32 %v1078_v1, 0.0  ;;  %v1064_v21 = vld [vmem:[#allocation2 + $0x78] sm:$0xff] }
 0x166   : > { %v1414_v12 = vpack.c.bf16 %v1090_v0, %v1089_v63  ;;  %v1095_v14 = vmax.f32 %v1079_v2, 0.0  ;;  %v1082_v19 = vadd.f32 %v1373_v51, %v1059_v4  ;;  %v1065_v22 = vld [vmem:[#allocation2 + $0x28] sm:$0xff]  ;;  %v1097_v24 = vmax.f32 %v1081_v15, 0.0 }
 0x167   : > { %v1419_v17 = vpack.c.bf16 %v1092_v7, %v1091_v6  ;;  %v1096_v18 = vmax.f32 %v1080_v9, 0.0  ;;  %v1424_v23 = vpack.c.bf16 %v1094_v13, %v1093_v8  ;;  %v1084_v25 = vadd.f32 %v1373_v51, %v1061_v10 }
 0x168   : > { %1415 = vst [vmem:[%s2001_s3] sm:$0xff] %v1414_v12   ;;  %v1085_v26 = vadd.f32 %v1373_v51, %v1062_v11  ;;  %v1098_v28 = vmax.f32 %v1082_v19, 0.0  ;;  %v1099_v29 = vmax.f32 %v1083_v20, 0.0  ;;  %v1086_v30 = vadd.f32 %v1373_v51, %v1063_v16 }
 0x169   : > { %1451 = vst [vmem:[%s2001_s3 + $0x8] sm:$0xff] %v1419_v17   ;;  %v1429_v27 = vpack.c.bf16 %v1096_v18, %v1095_v14  ;;  %1452 = vst [vmem:[%s2001_s3 + $0x10] sm:$0xff] %v1424_v23   ;;  %v1100_v31 = vmax.f32 %v1084_v25, 0.0  ;;  %v1087_v33 = vadd.f32 %v1373_v51, %v1064_v21  ;;  %v1088_v34 = vadd.f32 %v1373_v51, %v1065_v22 }
 0x16a   : > { %v1101_v32 = vmax.f32 %v1085_v26, 0.0  ;;  %v1434_v35 = vpack.c.bf16 %v1098_v28, %v1097_v24  ;;  %v1102_v36 = vmax.f32 %v1086_v30, 0.0 }
 0x16b   : > { %1453 = vst [vmem:[%s2001_s3 + $0x18] sm:$0xff] %v1429_v27   ;;  %v1439_v37 = vpack.c.bf16 %v1100_v31, %v1099_v29  ;;  %v1103_v38 = vmax.f32 %v1087_v33, 0.0  ;;  %v1104_v39 = vmax.f32 %v1088_v34, 0.0 }
 0x16c   : > { %1454 = vst [vmem:[%s2001_s3 + $0x20] sm:$0xff] %v1434_v35   ;;  %v1444_v40 = vpack.c.bf16 %v1102_v36, %v1101_v32 }
 0x16d   : > { %1455 = vst [vmem:[%s2001_s3 + $0x28] sm:$0xff] %v1439_v37   ;;  %v1449_v41 = vpack.c.bf16 %v1104_v39, %v1103_v38 }
 0x16e   : > { %1456 = vst [vmem:[%s2001_s3 + $0x30] sm:$0xff] %v1444_v40  }
 0x16f   : > { %1457 = vst [vmem:[%s2001_s3 + $0x38] sm:$0xff] %v1449_v41  }
 0x170 PF: > { %s13_s16 = sadd.s32 1, %s1745_s16   ;;  %s2002_s12 = smov %s1733_s13 }
 0x171   : > { %p10_p12 = scmp.ge.s32.totalorder %s13_s16, 9   ;;  %s2003_s13 = smov %s1803_s20 }
 0x172   : > { %s2004_s14 = smov %s1741_s15  ;;  %s2005_s15 = smov %s2007_s17 }
 0x173   :  { %12 = sbr.rel (!%p10_p12) target bundleno = 3 (0x3), region = 104 }

// kernel: feature_extractor_forward.8
= control target key start
LH: loop header
LB: loop body
LE: loop exit
PB: predicated region body
PF: predicated region fallthrough
CT: control target
= control target key end

     0   :  { %s1144_s12 = smov 0   ;;  %s1146_s13 = smov 0   ;;  %s1264_s0 = inlined_call_operand.vmem [shape: bf16[32,1536], index: 0, kind: input, shape index: {}]   ;;  %s1265_s1 = inlined_call_operand.vmem [shape: bf16[1536,128], index: 1, kind: input, shape index: {}]   ;;  %s1266_s2 = inlined_call_operand.vmem [shape: f32[1,128], index: 2, kind: input, shape index: {}]   ;;  %s1267_s3 = inlined_call_operand.vmem [shape: bf16[32,128], index: 3, kind: output, shape index: {}]  }
   0x1   :  { %s1148_s14 = smov 0   ;;  %s1150_s15 = smov 0  }
   0x2   :  { %s1152_s16 = smov 0  }
   0x3 LB: > { %s25_s17 = sadd.s32 1, %s1117_s15  ;;  %p48_p1 = scmp.ne.s32.totalorder %s1109_s13, %s1105_s12  ;;  %s1121_s16 = sphi %s1152_s16, %s13_s16   ;;  %s1117_s15 = sphi %s1150_s15, %s1271_s15   ;;  %s1113_s14 = sphi %s1148_s14, %s1270_s14   ;;  %s1109_s13 = sphi %s1146_s13, %s1269_s13   ;;  %s1105_s12 = sphi %s1144_s12, %s1268_s12  }
   0x4   : > { %p26_p0 = scmp.ge.s32.totalorder %s25_s17, 3  ;;  %p49_p2 = scmp.eq.s32.totalorder %s1121_s16, 0 }
   0x5   : > { %s41_s19 = sadd.s32 1, %s1109_s13  ;;  %p867_p5 = scmp.ge.s32.totalorder %s1121_s16, 3 }
   0x6   : > { %s1273_s17 = smov (%p26_p0, %s25_s17), 0  ;;  %p50_p3 = por %p49_p2, %p48_p1 }
   0x7   : > { %s37_s18 = ssub.s32 %s1117_s15, %s1273_s17  ;;  %162 = sbr.rel (%p867_p5) target bundleno = 20 (0x14), region = 20 }
   0x8   : > { %p39_p4 = scmp.eq.s32.totalorder %s37_s18, 0 }
   0xa   : > { %s1179_s20 = scalar_select %p39_p4, %s1109_s13, %s41_s19  }
   0xc   : > { %165 = sbr.rel (!%p50_p3) target bundleno = 20 (0x14), region = 24  ;;  %s167_s21 = sand.u32 (%p50_p3), 1, %s1109_s13  }
   0xd   : > { %s926_s22 = sshll.u32 (%p50_p3), %s1117_s15, 4  ;;  %s868_s23 = sshll.u32 (%p50_p3), %s167_s21, 6 }
   0xe   : > { %s175_s26 = scalar_lea.vmem (%p50_p3), %s1264_s0, %s926_s22  ;;  %s169_s27 = scalar_lea.vmem (%p50_p3), [#allocation3], %s868_s23 }
   0xf   : > { %v188_v0 = vld [vmem:[%s175_s26] sm:$0xff] (%p50_p3)  ;;  %v190_v1 = vld [vmem:[%s175_s26 + $0x8] sm:$0xff] (%p50_p3)  ;;  %v192_v2 = vld [vmem:[%s175_s26 + $0x30] sm:$0xff] (%p50_p3) }
  0x10   : > { %189 = vst [vmem:[%s169_s27] sm:$0xff] (%p50_p3), %v188_v0  ;;  %191 = vst [vmem:[%s169_s27 + $0x8] sm:$0xff] (%p50_p3), %v190_v1  ;;  %v194_v3 = vld [vmem:[%s175_s26 + $0x38] sm:$0xff] (%p50_p3)  ;;  %v196_v4 = vld [vmem:[%s175_s26 + $0x60] sm:$0xff] (%p50_p3) }
  0x11   : > { %193 = vst [vmem:[%s169_s27 + $0x10] sm:$0xff] %v192_v2  ;;  %v198_v5 = vld [vmem:[%s175_s26 + $0x68] sm:$0xff]  ;;  %195 = vst [vmem:[%s169_s27 + $0x18] sm:$0xff] %v194_v3  ;;  %v200_v6 = vld [vmem:[%s175_s26 + $0x90] sm:$0xff] }
  0x12   : > { %197 = vst [vmem:[%s169_s27 + $0x20] sm:$0xff] %v196_v4  ;;  %199 = vst [vmem:[%s169_s27 + $0x28] sm:$0xff] %v198_v5  ;;  %v202_v7 = vld [vmem:[%s175_s26 + $0x98] sm:$0xff] }
  0x13   : > { %201 = vst [vmem:[%s169_s27 + $0x30] sm:$0xff] %v200_v6  ;;  %203 = vst [vmem:[%s169_s27 + $0x38] sm:$0xff] %v202_v7 }
  0x14 PF: > { %p871_p6 = scmp.ge.s32.totalorder %s1121_s16, 1  ;;  %p220_p7 = scmp.lt.s32.totalorder %s1121_s16, 4 }
  0x16   : > { %p221_p8 = pnand %p871_p6, %p220_p7 }
  0x17   : > { %s227_s28 = sand.u32 (!%p221_p8), 1, %s1105_s12   ;;  %s873_s29 = sshll.u32 (!%p221_p8), %s1113_s14, 6 }
  0x18   : > { %224 = sbr.rel (%p221_p8) target bundleno = 300 (0x12c), region = 51  ;;  %s872_s30 = sshll.u32 (!%p221_p8), %s227_s28, 6 }
  0x19   : > { %p267_p9 = scmp.lt.s32.totalorder (!%p221_p8), %s873_s29, 191  ;;  %s1196_s8 = scalar_lea.vmem (!%p221_p8), [#allocation3], %s872_s30 }
  0x1a   : > { %p875_p10 = scmp.ne.s32.totalorder (!%p221_p8), %s1113_s14, 0 }
  0x1d   : > { %s1275_s29 = smov (!%p267_p9, %s873_s29), 191  ;;  %291 = sbr.rel (%p875_p10) target bundleno = 37 (0x25), region = 59 }
  0x1e   : > { %s874_s4 = sshll.u32 %s1275_s29, 2 }
  0x1f   : > { %s1194_s7 = scalar_lea.vmem %s1265_s1, %s874_s4 }
  0x22   : > { %v1123_v8 = vmov 0.0  }
  0x23   : > { %292 = vst [vmem:[#allocation2 + $0x10] sm:$0xff] %v1123_v8  ;;  %293 = vst [vmem:[#allocation2] sm:$0xff] %v1123_v8 }
  0x24   : > { %294 = vst [vmem:[#allocation2 + $0x18] sm:$0xff] %v1123_v8  ;;  %295 = vst [vmem:[#allocation2 + $0x8] sm:$0xff] %v1123_v8 }
  0x25 PF: > { %v1039_v9 = vld [vmem:[%s1194_s7 + $0x78] sm:$0xff]   ;;  %v1043_v13 = vld [vmem:[%s1194_s7 + $0x70] sm:$0xff]   ;;  %v1047_v17 = vld [vmem:[%s1194_s7 + $0x68] sm:$0xff]   ;;  %p916_p11 = scmp.ne.s32.totalorder %s1113_s14, 2 }
  0x26   : > { %v1040_v10 = vld [vmem:[%s1194_s7 + $0xf8] sm:$0xff]   ;;  %942 = vmatprep.subr.bf16.mxu0 %v1039_v9  ;;  %v1044_v14 = vld [vmem:[%s1194_s7 + $0xf0] sm:$0xff]   ;;  %v1048_v18 = vld [vmem:[%s1194_s7 + $0xe8] sm:$0xff]  }
  0x27   : > { %v1041_v11 = vld [vmem:[%s1194_s7 + $0x38] sm:$0xff]   ;;  %970 = vmatprep.subr.bf16.mxu1 %v1040_v10  ;;  %v1045_v15 = vld [vmem:[%s1194_s7 + $0x30] sm:$0xff]   ;;  %v1049_v19 = vld [vmem:[%s1194_s7 + $0x28] sm:$0xff]  }
  0x28   : > { %v1042_v12 = vld [vmem:[%s1194_s7 + $0xb8] sm:$0xff]   ;;  %943 = vmatpush3.bf16.msra.mxu0 %v1041_v11  ;;  %v1046_v16 = vld [vmem:[%s1194_s7 + $0xb0] sm:$0xff]   ;;  %v1050_v20 = vld [vmem:[%s1194_s7 + $0xa8] sm:$0xff]  }
  0x29   : > { %971 = vmatpush3.bf16.msra.mxu1 %v1042_v12  ;;  %944 = vmatprep.subr.bf16.mxu0 %v1043_v13  ;;  %v1051_v21 = vld [vmem:[%s1194_s7 + $0x60] sm:$0xff]   ;;  %v1055_v25 = vld [vmem:[%s1194_s7 + $0x58] sm:$0xff]   ;;  %v1059_v29 = vld [vmem:[%s1194_s7 + $0x50] sm:$0xff]  }
  0x2a   : > { %972 = vmatprep.subr.bf16.mxu1 %v1044_v14  ;;  %v1052_v22 = vld [vmem:[%s1194_s7 + $0xe0] sm:$0xff]   ;;  %v1056_v26 = vld [vmem:[%s1194_s7 + $0xd8] sm:$0xff]   ;;  %v1060_v30 = vld [vmem:[%s1194_s7 + $0xd0] sm:$0xff]  }
  0x2b   : > { %v1053_v23 = vld [vmem:[%s1194_s7 + $0x20] sm:$0xff]   ;;  %v1057_v27 = vld [vmem:[%s1194_s7 + $0x18] sm:$0xff]   ;;  %v1061_v31 = vld [vmem:[%s1194_s7 + $0x10] sm:$0xff]  }
  0x2c   : > { %945 = vmatpush3.bf16.msra.mxu0 %v1045_v15  ;;  %v1054_v24 = vld [vmem:[%s1194_s7 + $0xa0] sm:$0xff]   ;;  %v1058_v28 = vld [vmem:[%s1194_s7 + $0x98] sm:$0xff]   ;;  %v1062_v32 = vld [vmem:[%s1194_s7 + $0x90] sm:$0xff]  }
  0x2d   : > { %973 = vmatpush3.bf16.msra.mxu1 %v1046_v16  ;;  %946 = vmatprep.subr.bf16.mxu0 %v1047_v17  ;;  %v1063_v33 = vld [vmem:[%s1194_s7 + $0x48] sm:$0xff]   ;;  %v1067_v37 = vld [vmem:[%s1194_s7 + $0x40] sm:$0xff]   ;;  %v296_v56 = vld [vmem:[#allocation2 + $0x10] sm:$0xff] }
  0x2e   : > { %974 = vmatprep.subr.bf16.mxu1 %v1048_v18  ;;  %v1064_v34 = vld [vmem:[%s1194_s7 + $0xc8] sm:$0xff]   ;;  %v1068_v38 = vld [vmem:[%s1194_s7 + $0xc0] sm:$0xff]   ;;  %v298_v10 = vld [vmem:[#allocation2 + $0x18] sm:$0xff] }
  0x2f   : > { %v1065_v35 = vld [vmem:[%s1194_s7 + $0x8] sm:$0xff]   ;;  %v1069_v39 = vld [vmem:[%s1194_s7] sm:$0xff]  }
  0x30   : > { %947 = vmatpush3.bf16.msra.mxu0 %v1049_v19  ;;  %v1066_v36 = vld [vmem:[%s1194_s7 + $0x88] sm:$0xff]   ;;  %v1070_v40 = vld [vmem:[%s1194_s7 + $0x80] sm:$0xff]  }
  0x31   : > { %975 = vmatpush3.bf16.msra.mxu1 %v1050_v20  ;;  %948 = vmatprep.subr.bf16.mxu0 %v1051_v21  ;;  %v1071_v41 = vld [vmem:[%s1196_s8] ss:$16 sps:$4 sm:$0xff]   ;;  %v1073_v42 = vld [vmem:[%s1196_s8 + $0x4] ss:$16 sps:$4 sm:$0xff]   ;;  %v1074_v43 = vld [vmem:[%s1196_s8 + $0x8] ss:$16 sps:$4 sm:$0xff]  }
  0x32   : > { %976 = vmatprep.subr.bf16.mxu1 %v1052_v22  ;;  %v1076_v44 = vld [vmem:[%s1196_s8 + $0xc] ss:$16 sps:$4 sm:$0xff]   ;;  %636 = vmatprep.mubr.bf16.mxu0 %v1073_v42  ;;  %v1077_v45 = vld [vmem:[%s1196_s8 + $0x24] ss:$16 sps:$4 sm:$0xff]   ;;  %v1081_v47 = vld [vmem:[%s1196_s8 + $0x20] ss:$16 sps:$4 sm:$0xff]  }
  0x33   : > { %685 = vmatprep.mubr.bf16.mxu1 %v1076_v44  ;;  %v1079_v46 = vld [vmem:[%s1196_s8 + $0x2c] ss:$16 sps:$4 sm:$0xff]   ;;  %v1082_v48 = vld [vmem:[%s1196_s8 + $0x28] ss:$16 sps:$4 sm:$0xff]   ;;  %v297_v1 = vld [vmem:[#allocation2] sm:$0xff] }
  0x34   : > { %949 = vmatpush3.bf16.msra.mxu0 %v1053_v23  ;;  %v299_v18 = vld [vmem:[#allocation2 + $0x8] sm:$0xff] }
  0x35   : > { %977 = vmatpush3.bf16.msra.mxu1 %v1054_v24  ;;  %950 = vmatprep.subr.bf16.mxu0 %v1055_v25 }
  0x36   : > { %978 = vmatprep.subr.bf16.mxu1 %v1056_v26 }
  0x38   : > { %951 = vmatpush3.bf16.msra.mxu0 %v1057_v27 }
  0x39   : > { %979 = vmatpush3.bf16.msra.mxu1 %v1058_v28  ;;  %952 = vmatprep.subr.bf16.mxu0 %v1059_v29 }
  0x3a   : > { %980 = vmatprep.subr.bf16.mxu1 %v1060_v30 }
  0x3c   : > { %953 = vmatpush3.bf16.msra.mxu0 %v1061_v31 }
  0x3d   : > { %981 = vmatpush3.bf16.msra.mxu1 %v1062_v32  ;;  %954 = vmatprep.subr.bf16.mxu0 %v1063_v33 }
  0x3e   : > { %982 = vmatprep.subr.bf16.mxu1 %v1064_v34 }
  0x40   : > { %955 = vmatpush3.bf16.msra.mxu0 %v1065_v35 }
  0x41   : > { %983 = vmatpush3.bf16.msra.mxu1 %v1066_v36  ;;  %956 = vmatprep.subr.bf16.mxu0 %v1067_v37 }
  0x42   : > { %984 = vmatprep.subr.bf16.mxu1 %v1068_v38 }
  0x44   : > { %957 = vmatpush3.bf16.msra.mxu0 %v1069_v39 }
  0x45   : > { %985 = vmatpush3.bf16.msra.mxu1 %v1070_v40 }
  0x47   : > { %637 = vmatmul.mubr.bf16.vlgmr.msra.gmra.mxu0 %v1071_v41 }
  0x48   : > { %686 = vmatmul.mubr.bf16.vlgmr.msra.gmra.mxu1 %v1074_v43  ;;  %644 = vmatprep.mubr.bf16.mxu0 %v1077_v45 }
  0x49   : > { %693 = vmatprep.mubr.bf16.mxu1 %v1079_v46 }
  0x4f   : > { %645 = vmatmul.mubr.bf16.gmra.mxu0 %v1081_v47 }
  0x50   : > { %694 = vmatmul.mubr.bf16.gmra.mxu1 %v1082_v48 }
 0x107   : > { %v958_v49 = vpop.f32.mrf.mxu0 }
 0x108   : > { %v986_v50 = vpop.f32.mrf.mxu1 }
 0x109   : > { %v959_v51 = vpop.f32.mrf.mxu0 }
 0x10a   : > { %v960_v52 = vadd.f32 %v959_v51, %v958_v49  ;;  %v987_v53 = vpop.f32.mrf.mxu1 }
 0x10b   : > { %v988_v54 = vadd.f32 %v987_v53, %v986_v50  ;;  %v961_v55 = vpop.f32.mrf.mxu0 }
 0x10c   : > { %v989_v57 = vpop.f32.mrf.mxu1 }
 0x10d   : > { %v688_v58 = vadd.f32 %v988_v54, %v960_v52  ;;  %v962_v59 = vpop.f32.mrf.mxu0 }
 0x10e   : > { %v963_v60 = vadd.f32 %v962_v59, %v961_v55  ;;  %v990_v61 = vpop.f32.mrf.mxu1 }
 0x10f   : > { %v702_v62 = vadd.f32 %v688_v58, %v296_v56  ;;  %v991_v63 = vadd.f32 %v990_v61, %v989_v57  ;;  %v964_v0 = vpop.f32.mrf.mxu0 }
 0x110   : > { %v992_v2 = vpop.f32.mrf.mxu1 }
 0x111   : > { %706 = vst [vmem:[#allocation2 + $0x10] sm:$0xff] %v702_v62  ;;  %v691_v3 = vadd.f32 %v991_v63, %v963_v60  ;;  %v965_v4 = vpop.f32.mrf.mxu0 }
 0x112   : > { %v966_v5 = vadd.f32 %v965_v4, %v964_v0  ;;  %v993_v6 = vpop.f32.mrf.mxu1 }
 0x113   : > { %v703_v7 = vadd.f32 %v691_v3, %v297_v1  ;;  %v994_v8 = vadd.f32 %v993_v6, %v992_v2  ;;  %v967_v9 = vpop.f32.mrf.mxu0 }
 0x114   : > { %v995_v11 = vpop.f32.mrf.mxu1 }
 0x115   : > { %707 = vst [vmem:[#allocation2] sm:$0xff] %v703_v7  ;;  %v696_v12 = vadd.f32 %v994_v8, %v966_v5  ;;  %v968_v13 = vpop.f32.mrf.mxu0 }
 0x116   : > { %v969_v14 = vadd.f32 %v968_v13, %v967_v9  ;;  %v996_v15 = vpop.f32.mrf.mxu1 }
 0x117   : > { %v704_v16 = vadd.f32 %v696_v12, %v298_v10  ;;  %v997_v17 = vadd.f32 %v996_v15, %v995_v11 }
 0x119   : > { %708 = vst [vmem:[#allocation2 + $0x18] sm:$0xff] %v704_v16  ;;  %v699_v19 = vadd.f32 %v997_v17, %v969_v14  ;;  %713 = sbr.rel (%p916_p11) target bundleno = 300 (0x12c), region = 63 }
 0x11b   : > { %v705_v20 = vadd.f32 %v699_v19, %v299_v18 }
 0x11d   : > { %709 = vst [vmem:[#allocation2 + $0x8] sm:$0xff] %v705_v20 }
 0x11e   : > { %v714_v21 = vld [vmem:[#allocation2 + $0x10] sm:$0xff]  ;;  %v715_v22 = vld [vmem:[#allocation2] sm:$0xff] }
 0x11f   : > { %v917_v23 = vld [vmem:[%s1266_s2] ss:$0 sm:$0xff] }
 0x120   : > { %v725_v24 = vadd.f32 %v917_v23, %v714_v21  ;;  %v726_v25 = vadd.f32 %v917_v23, %v715_v22  ;;  %v716_v26 = vld [vmem:[#allocation2 + $0x18] sm:$0xff] }
 0x121   : > { %v727_v28 = vadd.f32 %v917_v23, %v716_v26 }
 0x122   : > { %v729_v30 = vmax.f32 %v725_v24, 0.0  ;;  %v730_v31 = vmax.f32 %v726_v25, 0.0 }
 0x123   : > { %v731_v32 = vmax.f32 %v727_v28, 0.0 }
 0x124   : > { %v717_v27 = vld [vmem:[#allocation2 + $0x8] sm:$0xff]  ;;  %v934_v34 = vpack.c.bf16 %v730_v31, %v729_v30 }
 0x125   : > { %v728_v29 = vadd.f32 %v917_v23, %v717_v27 }
 0x126   : > { %935 = vst [vmem:[%s1267_s3] sm:$0xff] %v934_v34  }
 0x127   : > { %v732_v33 = vmax.f32 %v728_v29, 0.0 }
 0x129   : > { %v939_v35 = vpack.c.bf16 %v732_v33, %v731_v32 }
 0x12b   : > { %941 = vst [vmem:[%s1267_s3 + $0x8] sm:$0xff] %v939_v35  }
 0x12c PF: > { %s13_s16 = sadd.s32 1, %s1121_s16   ;;  %s1268_s12 = smov %s1109_s13 }
 0x12d   : > { %p10_p12 = scmp.ge.s32.totalorder %s13_s16, 5   ;;  %s1269_s13 = smov %s1179_s20 }
 0x12e   : > { %s1270_s14 = smov %s1117_s15  ;;  %s1271_s15 = smov %s1273_s17 }
 0x12f   :  { %12 = sbr.rel (!%p10_p12) target bundleno = 3 (0x3), region = 104 }

// kernel: feature_extractor_forward.9
= control target key start
LH: loop header
LB: loop body
LE: loop exit
PB: predicated region body
PF: predicated region fallthrough
CT: control target
= control target key end

     0   :  { %s1272_s12 = smov 0   ;;  %s1274_s13 = smov 0   ;;  %s1420_s0 = inlined_call_operand.vmem [shape: bf16[16,1536], index: 0, kind: input, shape index: {}]   ;;  %s1421_s1 = inlined_call_operand.vmem [shape: bf16[1536,256], index: 1, kind: input, shape index: {}]   ;;  %s1422_s2 = inlined_call_operand.vmem [shape: f32[1,256], index: 2, kind: input, shape index: {}]   ;;  %s1423_s3 = inlined_call_operand.vmem [shape: bf16[16,256], index: 3, kind: output, shape index: {}]  }
   0x1   :  { %s1276_s14 = smov 0   ;;  %s1278_s15 = smov 0  }
   0x2   :  { %s1280_s16 = smov 0  }
   0x3 LB: > { %s25_s17 = sadd.s32 1, %s1245_s15  ;;  %p48_p1 = scmp.ne.s32.totalorder %s1237_s13, %s1233_s12  ;;  %s1249_s16 = sphi %s1280_s16, %s13_s16   ;;  %s1245_s15 = sphi %s1278_s15, %s1427_s15   ;;  %s1241_s14 = sphi %s1276_s14, %s1426_s14   ;;  %s1237_s13 = sphi %s1274_s13, %s1425_s13   ;;  %s1233_s12 = sphi %s1272_s12, %s1424_s12  }
   0x4   : > { %p26_p0 = scmp.ge.s32.totalorder %s25_s17, 3  ;;  %p49_p2 = scmp.eq.s32.totalorder %s1249_s16, 0 }
   0x5   : > { %s41_s19 = sadd.s32 1, %s1237_s13  ;;  %p979_p5 = scmp.ge.s32.totalorder %s1249_s16, 3 }
   0x6   : > { %s1429_s17 = smov (%p26_p0, %s25_s17), 0  ;;  %p50_p3 = por %p49_p2, %p48_p1 }
   0x7   : > { %s37_s18 = ssub.s32 %s1245_s15, %s1429_s17  ;;  %164 = sbr.rel (%p979_p5) target bundleno = 18 (0x12), region = 20 }
   0x8   : > { %p39_p4 = scmp.eq.s32.totalorder %s37_s18, 0 }
   0xa   : > { %s1307_s20 = scalar_select %p39_p4, %s1237_s13, %s41_s19  }
   0xc   : > { %167 = sbr.rel (!%p50_p3) target bundleno = 18 (0x12), region = 24  ;;  %s169_s21 = sand.u32 (%p50_p3), 1, %s1237_s13  }
   0xd   : > { %s1064_s22 = sshll.u32 (%p50_p3), %s1245_s15, 4  ;;  %s980_s23 = sshll.u32 (%p50_p3), %s169_s21, 5 }
   0xe   : > { %s177_s26 = scalar_lea.vmem (%p50_p3), %s1420_s0, %s1064_s22  ;;  %s171_s27 = scalar_lea.vmem (%p50_p3), [#allocation3], %s980_s23 }
   0xf   : > { %v190_v0 = vld [vmem:[%s177_s26] sm:$0xff] (%p50_p3)  ;;  %v192_v1 = vld [vmem:[%s177_s26 + $0x8] sm:$0xff] (%p50_p3)  ;;  %v194_v2 = vld [vmem:[%s177_s26 + $0x30] sm:$0xff] (%p50_p3) }
  0x10   : > { %191 = vst [vmem:[%s171_s27] sm:$0xff] (%p50_p3), %v190_v0  ;;  %193 = vst [vmem:[%s171_s27 + $0x8] sm:$0xff] (%p50_p3), %v192_v1  ;;  %v196_v3 = vld [vmem:[%s177_s26 + $0x38] sm:$0xff] (%p50_p3) }
  0x11   : > { %195 = vst [vmem:[%s171_s27 + $0x10] sm:$0xff] %v194_v2  ;;  %197 = vst [vmem:[%s171_s27 + $0x18] sm:$0xff] %v196_v3 }
  0x12 PF: > { %p983_p6 = scmp.ge.s32.totalorder %s1249_s16, 1  ;;  %p217_p7 = scmp.lt.s32.totalorder %s1249_s16, 4 }
  0x14   : > { %p218_p8 = pnand %p983_p6, %p217_p7 }
  0x15   : > { %s224_s28 = sand.u32 (!%p218_p8), 1, %s1233_s12   ;;  %s985_s29 = sshll.u32 (!%p218_p8), %s1241_s14, 6 }
  0x16   : > { %221 = sbr.rel (%p218_p8) target bundleno = 320 (0x140), region = 51  ;;  %s984_s30 = sshll.u32 (!%p218_p8), %s224_s28, 5 }
  0x17   : > { %p270_p9 = scmp.lt.s32.totalorder (!%p218_p8), %s985_s29, 191  ;;  %s1324_s8 = scalar_lea.vmem (!%p218_p8), [#allocation3], %s984_s30 }
  0x18   : > { %p988_p10 = scmp.ne.s32.totalorder (!%p218_p8), %s1241_s14, 0 }
  0x1b   : > { %s1431_s29 = smov (!%p270_p9, %s985_s29), 191  ;;  %300 = sbr.rel (%p988_p10) target bundleno = 35 (0x23), region = 59 }
  0x1c   : > { %s1065_s4 = sshll.u32 %s1431_s29, 3 }
  0x1d   : > { %s1322_s7 = scalar_lea.vmem %s1421_s1, %s1065_s4 }
  0x20   : > { %v1251_v4 = vmov 0.0  }
  0x21   : > { %301 = vst [vmem:[#allocation2 + $0x10] sm:$0xff] %v1251_v4  ;;  %302 = vst [vmem:[#allocation2] sm:$0xff] %v1251_v4 }
  0x22   : > { %303 = vst [vmem:[#allocation2 + $0x18] sm:$0xff] %v1251_v4  ;;  %304 = vst [vmem:[#allocation2 + $0x8] sm:$0xff] %v1251_v4 }
  0x23 PF: > { %v1109_v5 = vld [vmem:[%s1322_s7 + $0x74] ss:$8 sps:$4 sm:$0xff]   ;;  %v1113_v7 = vld [vmem:[%s1322_s7 + $0x70] ss:$8 sps:$4 sm:$0xff]   ;;  %v1115_v9 = vld [vmem:[%s1322_s7 + $0x64] ss:$8 sps:$4 sm:$0xff]  }
  0x24   : > { %v1111_v6 = vld [vmem:[%s1322_s7 + $0x174] ss:$8 sps:$4 sm:$0xff]   ;;  %717 = vmatprep.subr.bf16.mxu0 %v1109_v5  ;;  %v1114_v8 = vld [vmem:[%s1322_s7 + $0x170] ss:$8 sps:$4 sm:$0xff]   ;;  %v1117_v10 = vld [vmem:[%s1322_s7 + $0x164] ss:$8 sps:$4 sm:$0xff]  }
  0x25   : > { %760 = vmatprep.subr.bf16.mxu1 %v1111_v6  ;;  %718 = vmatpush1.bf16.msra.mxu0 %v1113_v7  ;;  %v1119_v11 = vld [vmem:[%s1322_s7 + $0x60] ss:$8 sps:$4 sm:$0xff]   ;;  %v1121_v13 = vld [vmem:[%s1322_s7 + $0x54] ss:$8 sps:$4 sm:$0xff]   ;;  %v1125_v15 = vld [vmem:[%s1322_s7 + $0x50] ss:$8 sps:$4 sm:$0xff]  }
  0x26   : > { %761 = vmatpush1.bf16.msra.mxu1 %v1114_v8  ;;  %719 = vmatprep.subr.bf16.mxu0 %v1115_v9  ;;  %v1120_v12 = vld [vmem:[%s1322_s7 + $0x160] ss:$8 sps:$4 sm:$0xff]   ;;  %v1123_v14 = vld [vmem:[%s1322_s7 + $0x154] ss:$8 sps:$4 sm:$0xff]   ;;  %v1126_v16 = vld [vmem:[%s1322_s7 + $0x150] ss:$8 sps:$4 sm:$0xff]  }
  0x27   : > { %762 = vmatprep.subr.bf16.mxu1 %v1117_v10  ;;  %v1127_v17 = vld [vmem:[%s1322_s7 + $0x44] ss:$8 sps:$4 sm:$0xff]   ;;  %v1131_v19 = vld [vmem:[%s1322_s7 + $0x40] ss:$8 sps:$4 sm:$0xff]   ;;  %v1133_v21 = vld [vmem:[%s1322_s7 + $0x34] ss:$8 sps:$4 sm:$0xff]  }
  0x28   : > { %v1129_v18 = vld [vmem:[%s1322_s7 + $0x144] ss:$8 sps:$4 sm:$0xff]   ;;  %v1132_v20 = vld [vmem:[%s1322_s7 + $0x140] ss:$8 sps:$4 sm:$0xff]   ;;  %v1135_v22 = vld [vmem:[%s1322_s7 + $0x134] ss:$8 sps:$4 sm:$0xff]  }
  0x29   : > { %720 = vmatpush1.bf16.msra.mxu0 %v1119_v11  ;;  %v1137_v23 = vld [vmem:[%s1322_s7 + $0x30] ss:$8 sps:$4 sm:$0xff]   ;;  %v1139_v25 = vld [vmem:[%s1322_s7 + $0x24] ss:$8 sps:$4 sm:$0xff]   ;;  %v1143_v27 = vld [vmem:[%s1322_s7 + $0x20] ss:$8 sps:$4 sm:$0xff]  }
  0x2a   : > { %763 = vmatpush1.bf16.msra.mxu1 %v1120_v12  ;;  %721 = vmatprep.subr.bf16.mxu0 %v1121_v13  ;;  %v1138_v24 = vld [vmem:[%s1322_s7 + $0x130] ss:$8 sps:$4 sm:$0xff]   ;;  %v1141_v26 = vld [vmem:[%s1322_s7 + $0x124] ss:$8 sps:$4 sm:$0xff]   ;;  %v1144_v28 = vld [vmem:[%s1322_s7 + $0x120] ss:$8 sps:$4 sm:$0xff]  }
  0x2b   : > { %764 = vmatprep.subr.bf16.mxu1 %v1123_v14  ;;  %v1145_v29 = vld [vmem:[%s1322_s7 + $0x14] ss:$8 sps:$4 sm:$0xff]   ;;  %v1149_v31 = vld [vmem:[%s1322_s7 + $0x10] ss:$8 sps:$4 sm:$0xff]   ;;  %v1151_v33 = vld [vmem:[%s1322_s7 + $0x4] ss:$8 sps:$4 sm:$0xff]  }
  0x2c   : > { %v1147_v30 = vld [vmem:[%s1322_s7 + $0x114] ss:$8 sps:$4 sm:$0xff]   ;;  %v1150_v32 = vld [vmem:[%s1322_s7 + $0x110] ss:$8 sps:$4 sm:$0xff]   ;;  %v1153_v34 = vld [vmem:[%s1322_s7 + $0x104] ss:$8 sps:$4 sm:$0xff]  }
  0x2d   : > { %722 = vmatpush1.bf16.msra.mxu0 %v1125_v15  ;;  %v1155_v35 = vld [vmem:[%s1322_s7] ss:$8 sps:$4 sm:$0xff]   ;;  %v1157_v37 = vld [vmem:[%s1322_s7 + $0xf4] ss:$8 sps:$4 sm:$0xff]   ;;  %v1161_v39 = vld [vmem:[%s1322_s7 + $0xf0] ss:$8 sps:$4 sm:$0xff]  }
  0x2e   : > { %765 = vmatpush1.bf16.msra.mxu1 %v1126_v16  ;;  %723 = vmatprep.subr.bf16.mxu0 %v1127_v17  ;;  %v1156_v36 = vld [vmem:[%s1322_s7 + $0x100] ss:$8 sps:$4 sm:$0xff]   ;;  %v1159_v38 = vld [vmem:[%s1322_s7 + $0x1f4] ss:$8 sps:$4 sm:$0xff]   ;;  %v1162_v40 = vld [vmem:[%s1322_s7 + $0x1f0] ss:$8 sps:$4 sm:$0xff]  }
  0x2f   : > { %766 = vmatprep.subr.bf16.mxu1 %v1129_v18  ;;  %v1163_v41 = vld [vmem:[%s1322_s7 + $0xe4] ss:$8 sps:$4 sm:$0xff]   ;;  %v1167_v43 = vld [vmem:[%s1322_s7 + $0xe0] ss:$8 sps:$4 sm:$0xff]   ;;  %v1169_v45 = vld [vmem:[%s1322_s7 + $0xd4] ss:$8 sps:$4 sm:$0xff]  }
  0x30   : > { %v1165_v42 = vld [vmem:[%s1322_s7 + $0x1e4] ss:$8 sps:$4 sm:$0xff]   ;;  %v1168_v44 = vld [vmem:[%s1322_s7 + $0x1e0] ss:$8 sps:$4 sm:$0xff]   ;;  %v1171_v46 = vld [vmem:[%s1322_s7 + $0x1d4] ss:$8 sps:$4 sm:$0xff]  }
  0x31   : > { %724 = vmatpush1.bf16.msra.mxu0 %v1131_v19  ;;  %v1173_v47 = vld [vmem:[%s1322_s7 + $0xd0] ss:$8 sps:$4 sm:$0xff]   ;;  %v1175_v49 = vld [vmem:[%s1322_s7 + $0xc4] ss:$8 sps:$4 sm:$0xff]   ;;  %v1179_v51 = vld [vmem:[%s1322_s7 + $0xc0] ss:$8 sps:$4 sm:$0xff]  }
  0x32   : > { %767 = vmatpush1.bf16.msra.mxu1 %v1132_v20  ;;  %725 = vmatprep.subr.bf16.mxu0 %v1133_v21  ;;  %v1174_v48 = vld [vmem:[%s1322_s7 + $0x1d0] ss:$8 sps:$4 sm:$0xff]   ;;  %v1177_v50 = vld [vmem:[%s1322_s7 + $0x1c4] ss:$8 sps:$4 sm:$0xff]   ;;  %v1180_v53 = vld [vmem:[%s1322_s7 + $0x1c0] ss:$8 sps:$4 sm:$0xff]  }
  0x33   : > { %768 = vmatprep.subr.bf16.mxu1 %v1135_v22  ;;  %v1207_v52 = vld [vmem:[%s1324_s8 + $0x4] ss:$16 sps:$4 sm:$0xff]   ;;  %v1210_v56 = vld [vmem:[%s1324_s8 + $0xc] ss:$16 sps:$4 sm:$0xff]   ;;  %v1185_v57 = vld [vmem:[%s1322_s7 + $0xb0] ss:$8 sps:$4 sm:$0xff]  }
  0x34   : > { %v1181_v54 = vld [vmem:[%s1322_s7 + $0xb4] ss:$8 sps:$4 sm:$0xff]   ;;  %749 = vmatprep.mubr.bf16.mxu0 %v1207_v52  ;;  %792 = vmatprep.mubr.bf16.mxu1 %v1210_v56  ;;  %v1186_v58 = vld [vmem:[%s1322_s7 + $0x1b0] ss:$8 sps:$4 sm:$0xff]   ;;  %v1187_v59 = vld [vmem:[%s1322_s7 + $0xa4] ss:$8 sps:$4 sm:$0xff]  }
  0x35   : > { %726 = vmatpush1.bf16.msra.mxu0 %v1137_v23  ;;  %v1183_v55 = vld [vmem:[%s1322_s7 + $0x1b4] ss:$8 sps:$4 sm:$0xff]   ;;  %v1189_v60 = vld [vmem:[%s1322_s7 + $0x1a4] ss:$8 sps:$4 sm:$0xff]   ;;  %v1191_v61 = vld [vmem:[%s1322_s7 + $0xa0] ss:$8 sps:$4 sm:$0xff]  }
  0x36   : > { %769 = vmatpush1.bf16.msra.mxu1 %v1138_v24  ;;  %727 = vmatprep.subr.bf16.mxu0 %v1139_v25  ;;  %v1192_v62 = vld [vmem:[%s1322_s7 + $0x1a0] ss:$8 sps:$4 sm:$0xff]   ;;  %v1193_v63 = vld [vmem:[%s1322_s7 + $0x94] ss:$8 sps:$4 sm:$0xff]   ;;  %v1197_v1 = vld [vmem:[%s1322_s7 + $0x90] ss:$8 sps:$4 sm:$0xff]  }
  0x37   : > { %770 = vmatprep.subr.bf16.mxu1 %v1141_v26  ;;  %v1195_v0 = vld [vmem:[%s1322_s7 + $0x194] ss:$8 sps:$4 sm:$0xff]   ;;  %v1198_v2 = vld [vmem:[%s1322_s7 + $0x190] ss:$8 sps:$4 sm:$0xff]   ;;  %v1199_v3 = vld [vmem:[%s1322_s7 + $0x84] ss:$8 sps:$4 sm:$0xff]  }
  0x38   : > { %v1201_v4 = vld [vmem:[%s1322_s7 + $0x184] ss:$8 sps:$4 sm:$0xff]   ;;  %v1203_v5 = vld [vmem:[%s1322_s7 + $0x80] ss:$8 sps:$4 sm:$0xff]   ;;  %v305_v10 = vld [vmem:[#allocation2 + $0x10] sm:$0xff]  ;;  %p1057_p11 = scmp.ne.s32.totalorder %s1241_s14, 2 }
  0x39   : > { %728 = vmatpush1.bf16.msra.mxu0 %v1143_v27  ;;  %v1204_v6 = vld [vmem:[%s1322_s7 + $0x180] ss:$8 sps:$4 sm:$0xff]   ;;  %v307_v19 = vld [vmem:[#allocation2 + $0x18] sm:$0xff] }
  0x3a   : > { %771 = vmatpush1.bf16.msra.mxu1 %v1144_v28  ;;  %729 = vmatprep.subr.bf16.mxu0 %v1145_v29  ;;  %v1205_v7 = vld [vmem:[%s1324_s8] ss:$16 sps:$4 sm:$0xff]   ;;  %v1208_v8 = vld [vmem:[%s1324_s8 + $0x8] ss:$16 sps:$4 sm:$0xff]  }
  0x3b   : > { %772 = vmatprep.subr.bf16.mxu1 %v1147_v30  ;;  %v306_v14 = vld [vmem:[#allocation2] sm:$0xff]  ;;  %v308_v24 = vld [vmem:[#allocation2 + $0x8] sm:$0xff] }
  0x3d   : > { %730 = vmatpush1.bf16.msra.mxu0 %v1149_v31 }
  0x3e   : > { %773 = vmatpush1.bf16.msra.mxu1 %v1150_v32  ;;  %731 = vmatprep.subr.bf16.mxu0 %v1151_v33 }
  0x3f   : > { %774 = vmatprep.subr.bf16.mxu1 %v1153_v34 }
  0x41   : > { %732 = vmatpush1.bf16.msra.mxu0 %v1155_v35 }
  0x42   : > { %775 = vmatpush1.bf16.msra.mxu1 %v1156_v36  ;;  %733 = vmatprep.subr.bf16.mxu0 %v1157_v37 }
  0x43   : > { %776 = vmatprep.subr.bf16.mxu1 %v1159_v38 }
  0x45   : > { %734 = vmatpush2.bf16.msra.mxu0 %v1161_v39 }
  0x46   : > { %777 = vmatpush2.bf16.msra.mxu1 %v1162_v40  ;;  %735 = vmatprep.subr.bf16.mxu0 %v1163_v41 }
  0x47   : > { %778 = vmatprep.subr.bf16.mxu1 %v1165_v42 }
  0x49   : > { %736 = vmatpush2.bf16.msra.mxu0 %v1167_v43 }
  0x4a   : > { %779 = vmatpush2.bf16.msra.mxu1 %v1168_v44  ;;  %737 = vmatprep.subr.bf16.mxu0 %v1169_v45 }
  0x4b   : > { %780 = vmatprep.subr.bf16.mxu1 %v1171_v46 }
  0x4d   : > { %738 = vmatpush2.bf16.msra.mxu0 %v1173_v47 }
  0x4e   : > { %781 = vmatpush2.bf16.msra.mxu1 %v1174_v48  ;;  %739 = vmatprep.subr.bf16.mxu0 %v1175_v49 }
  0x4f   : > { %782 = vmatprep.subr.bf16.mxu1 %v1177_v50 }
  0x51   : > { %740 = vmatpush2.bf16.msra.mxu0 %v1179_v51 }
  0x52   : > { %783 = vmatpush2.bf16.msra.mxu1 %v1180_v53  ;;  %741 = vmatprep.subr.bf16.mxu0 %v1181_v54 }
  0x53   : > { %784 = vmatprep.subr.bf16.mxu1 %v1183_v55 }
  0x55   : > { %742 = vmatpush2.bf16.msra.mxu0 %v1185_v57 }
  0x56   : > { %785 = vmatpush2.bf16.msra.mxu1 %v1186_v58  ;;  %743 = vmatprep.subr.bf16.mxu0 %v1187_v59 }
  0x57   : > { %786 = vmatprep.subr.bf16.mxu1 %v1189_v60 }
  0x59   : > { %744 = vmatpush2.bf16.msra.mxu0 %v1191_v61 }
  0x5a   : > { %787 = vmatpush2.bf16.msra.mxu1 %v1192_v62  ;;  %745 = vmatprep.subr.bf16.mxu0 %v1193_v63 }
  0x5b   : > { %788 = vmatprep.subr.bf16.mxu1 %v1195_v0 }
  0x5d   : > { %746 = vmatpush2.bf16.msra.mxu0 %v1197_v1 }
  0x5e   : > { %789 = vmatpush2.bf16.msra.mxu1 %v1198_v2  ;;  %747 = vmatprep.subr.bf16.mxu0 %v1199_v3 }
  0x5f   : > { %790 = vmatprep.subr.bf16.mxu1 %v1201_v4 }
  0x61   : > { %748 = vmatpush2.bf16.msra.mxu0 %v1203_v5 }
  0x62   : > { %791 = vmatpush2.bf16.msra.mxu1 %v1204_v6 }
  0x64   : > { %750 = vmatmul.mubr.bf16.vlgmr.msra.gmra.mxu0 %v1205_v7 }
  0x65   : > { %793 = vmatmul.mubr.bf16.vlgmr.msra.gmra.mxu1 %v1208_v8 }
 0x124   : > { %v751_v9 = vpop.f32.mrf.mxu0 }
 0x125   : > { %v794_v11 = vpop.f32.mrf.mxu1 }
 0x126   : > { %v795_v12 = vadd.f32 %v794_v11, %v751_v9  ;;  %v753_v13 = vpop.f32.mrf.mxu0 }
 0x127   : > { %v796_v15 = vpop.f32.mrf.mxu1 }
 0x128   : > { %v803_v16 = vadd.f32 %v795_v12, %v305_v10  ;;  %v797_v17 = vadd.f32 %v796_v15, %v753_v13  ;;  %v755_v18 = vpop.f32.mrf.mxu0 }
 0x129   : > { %v798_v20 = vpop.f32.mrf.mxu1 }
 0x12a   : > { %807 = vst [vmem:[#allocation2 + $0x10] sm:$0xff] %v803_v16  ;;  %v804_v21 = vadd.f32 %v797_v17, %v306_v14  ;;  %v799_v22 = vadd.f32 %v798_v20, %v755_v18  ;;  %v757_v23 = vpop.f32.mrf.mxu0 }
 0x12b   : > { %v800_v25 = vpop.f32.mrf.mxu1 }
 0x12c   : > { %808 = vst [vmem:[#allocation2] sm:$0xff] %v804_v21  ;;  %v805_v26 = vadd.f32 %v799_v22, %v307_v19  ;;  %v801_v27 = vadd.f32 %v800_v25, %v757_v23  ;;  %814 = sbr.rel (%p1057_p11) target bundleno = 320 (0x140), region = 63 }
 0x12e   : > { %809 = vst [vmem:[#allocation2 + $0x18] sm:$0xff] %v805_v26  ;;  %v806_v28 = vadd.f32 %v801_v27, %v308_v24 }
 0x130   : > { %810 = vst [vmem:[#allocation2 + $0x8] sm:$0xff] %v806_v28 }
 0x131   : > { %v821_v29 = vlaneseq  ;;  %v819_v31 = vld [vmem:[%s1422_s2] sm:$0x3]  ;;  %v815_v32 = vld [vmem:[#allocation2 + $0x10] sm:$0xff] }
 0x133   : > { %v822_v30 = vshrl.u32 %v821_v29, 7  ;;  %v816_v35 = vld [vmem:[#allocation2] sm:$0xff] }
 0x135   : > { %v823_v33 = vsub.s32 0, %v822_v30  ;;  %v827_v34 = vsub.s32 1, %v822_v30  ;;  %v817_v36 = vld [vmem:[#allocation2 + $0x18] sm:$0xff] }
 0x137   : > { %v818_v37 = vld [vmem:[#allocation2 + $0x8] sm:$0xff]  ;;  %v824_v38 = vrot.slane %v819_v31, %v823_v33  ;;  %v828_v39 = vrot.slane %v819_v31, %v827_v34 }
 0x139   : > { %v831_v40 = vadd.f32 %v824_v38, %v815_v32  ;;  %v832_v41 = vadd.f32 %v828_v39, %v816_v35  ;;  %v833_v42 = vadd.f32 %v824_v38, %v817_v36  ;;  %v834_v43 = vadd.f32 %v828_v39, %v818_v37 }
 0x13b   : > { %v835_v44 = vmax.f32 %v831_v40, 0.0  ;;  %v836_v45 = vmax.f32 %v832_v41, 0.0  ;;  %v837_v46 = vmax.f32 %v833_v42, 0.0  ;;  %v838_v47 = vmax.f32 %v834_v43, 0.0 }
 0x13d   : > { %v1066_v48 = vpack.c.bf16 %v836_v45, %v835_v44  ;;  %v1067_v49 = vpack.c.bf16 %v838_v47, %v837_v46 }
 0x13f   : > { %851 = vst [vmem:[%s1423_s3] sm:$0xff] %v1066_v48  ;;  %852 = vst [vmem:[%s1423_s3 + $0x8] sm:$0xff] %v1067_v49 }
 0x140 PF: > { %s13_s16 = sadd.s32 1, %s1249_s16   ;;  %s1424_s12 = smov %s1237_s13 }
 0x141   : > { %p10_p12 = scmp.ge.s32.totalorder %s13_s16, 5   ;;  %s1425_s13 = smov %s1307_s20 }
 0x142   : > { %s1426_s14 = smov %s1245_s15  ;;  %s1427_s15 = smov %s1429_s17 }
 0x143   :  { %12 = sbr.rel (!%p10_p12) target bundleno = 3 (0x3), region = 104 }

// kernel: feature_extractor_forward.11
= control target key start
LH: loop header
LB: loop body
LE: loop exit
PB: predicated region body
PF: predicated region fallthrough
CT: control target
= control target key end

     0   :  { %s681_s1 = inlined_call_operand.vmem [shape: bf16[512,128], index: 1, kind: input, shape index: {}]   ;;  %s682_s0 = inlined_call_operand.vmem [shape: bf16[16,512], index: 0, kind: input, shape index: {}]   ;;  %s683_s2 = inlined_call_operand.vmem [shape: f32[1,128], index: 2, kind: input, shape index: {}]   ;;  %s684_s3 = inlined_call_operand.vmem [shape: f32[16,128], index: 3, kind: output, shape index: {}]  }
   0x1   :  { %v502_v0 = vld [vmem:[%s681_s1 + $0x78] sm:$0xff]   ;;  %v506_v4 = vld [vmem:[%s681_s1 + $0x70] sm:$0xff]   ;;  %v510_v8 = vld [vmem:[%s681_s1 + $0x68] sm:$0xff]  }
   0x2   :  { %v503_v1 = vld [vmem:[%s681_s1 + $0xf8] sm:$0xff]   ;;  %458 = vmatprep.subr.bf16.mxu0 %v502_v0  ;;  %v507_v5 = vld [vmem:[%s681_s1 + $0xf0] sm:$0xff]   ;;  %v511_v9 = vld [vmem:[%s681_s1 + $0xe8] sm:$0xff]  }
   0x3   :  { %v504_v2 = vld [vmem:[%s681_s1 + $0x38] sm:$0xff]   ;;  %480 = vmatprep.subr.bf16.mxu1 %v503_v1  ;;  %v508_v6 = vld [vmem:[%s681_s1 + $0x30] sm:$0xff]   ;;  %v512_v10 = vld [vmem:[%s681_s1 + $0x28] sm:$0xff]  }
   0x4   :  { %v505_v3 = vld [vmem:[%s681_s1 + $0xb8] sm:$0xff]   ;;  %459 = vmatpush3.bf16.msra.mxu0 %v504_v2  ;;  %v509_v7 = vld [vmem:[%s681_s1 + $0xb0] sm:$0xff]   ;;  %v513_v11 = vld [vmem:[%s681_s1 + $0xa8] sm:$0xff]  }
   0x5   :  { %481 = vmatpush3.bf16.msra.mxu1 %v505_v3  ;;  %460 = vmatprep.subr.bf16.mxu0 %v506_v4  ;;  %v514_v12 = vld [vmem:[%s681_s1 + $0x60] sm:$0xff]   ;;  %v518_v16 = vld [vmem:[%s681_s1 + $0x58] sm:$0xff]   ;;  %v522_v20 = vld [vmem:[%s681_s1 + $0x50] sm:$0xff]  }
   0x6   :  { %482 = vmatprep.subr.bf16.mxu1 %v507_v5  ;;  %v515_v13 = vld [vmem:[%s681_s1 + $0xe0] sm:$0xff]   ;;  %v519_v17 = vld [vmem:[%s681_s1 + $0xd8] sm:$0xff]   ;;  %v523_v21 = vld [vmem:[%s681_s1 + $0xd0] sm:$0xff]  }
   0x7   :  { %v516_v14 = vld [vmem:[%s681_s1 + $0x20] sm:$0xff]   ;;  %v520_v18 = vld [vmem:[%s681_s1 + $0x18] sm:$0xff]   ;;  %v524_v22 = vld [vmem:[%s681_s1 + $0x10] sm:$0xff]  }
   0x8   :  { %461 = vmatpush3.bf16.msra.mxu0 %v508_v6  ;;  %v517_v15 = vld [vmem:[%s681_s1 + $0xa0] sm:$0xff]   ;;  %v521_v19 = vld [vmem:[%s681_s1 + $0x98] sm:$0xff]   ;;  %v525_v23 = vld [vmem:[%s681_s1 + $0x90] sm:$0xff]  }
   0x9   :  { %483 = vmatpush3.bf16.msra.mxu1 %v509_v7  ;;  %462 = vmatprep.subr.bf16.mxu0 %v510_v8  ;;  %v526_v24 = vld [vmem:[%s681_s1 + $0x48] sm:$0xff]   ;;  %v530_v28 = vld [vmem:[%s681_s1 + $0x40] sm:$0xff]  }
   0xa   :  { %484 = vmatprep.subr.bf16.mxu1 %v511_v9  ;;  %v527_v25 = vld [vmem:[%s681_s1 + $0xc8] sm:$0xff]   ;;  %v531_v29 = vld [vmem:[%s681_s1 + $0xc0] sm:$0xff]  }
   0xb   :  { %v528_v26 = vld [vmem:[%s681_s1 + $0x8] sm:$0xff]   ;;  %v532_v30 = vld [vmem:[%s681_s1] sm:$0xff]  }
   0xc   :  { %463 = vmatpush3.bf16.msra.mxu0 %v512_v10  ;;  %v529_v27 = vld [vmem:[%s681_s1 + $0x88] sm:$0xff]   ;;  %v533_v31 = vld [vmem:[%s681_s1 + $0x80] sm:$0xff]  }
   0xd   :  { %485 = vmatpush3.bf16.msra.mxu1 %v513_v11  ;;  %464 = vmatprep.subr.bf16.mxu0 %v514_v12  ;;  %v534_v32 = vld [vmem:[%s682_s0] ss:$16 sps:$4 sm:$0xff]   ;;  %v536_v33 = vld [vmem:[%s682_s0 + $0x4] ss:$16 sps:$4 sm:$0xff]   ;;  %v537_v34 = vld [vmem:[%s682_s0 + $0x8] ss:$16 sps:$4 sm:$0xff]  }
   0xe   :  { %486 = vmatprep.subr.bf16.mxu1 %v515_v13  ;;  %v539_v35 = vld [vmem:[%s682_s0 + $0xc] ss:$16 sps:$4 sm:$0xff]   ;;  %335 = vmatprep.mubr.bf16.mxu0 %v536_v33  ;;  %v457_v44 = vld [vmem:[%s683_s2] ss:$0 sm:$0xff] }
   0xf   :  { %376 = vmatprep.mubr.bf16.mxu1 %v539_v35 }
  0x10   :  { %465 = vmatpush3.bf16.msra.mxu0 %v516_v14 }
  0x11   :  { %487 = vmatpush3.bf16.msra.mxu1 %v517_v15  ;;  %466 = vmatprep.subr.bf16.mxu0 %v518_v16 }
  0x12   :  { %488 = vmatprep.subr.bf16.mxu1 %v519_v17 }
  0x14   :  { %467 = vmatpush3.bf16.msra.mxu0 %v520_v18 }
  0x15   :  { %489 = vmatpush3.bf16.msra.mxu1 %v521_v19  ;;  %468 = vmatprep.subr.bf16.mxu0 %v522_v20 }
  0x16   :  { %490 = vmatprep.subr.bf16.mxu1 %v523_v21 }
  0x18   :  { %469 = vmatpush3.bf16.msra.mxu0 %v524_v22 }
  0x19   :  { %491 = vmatpush3.bf16.msra.mxu1 %v525_v23  ;;  %470 = vmatprep.subr.bf16.mxu0 %v526_v24 }
  0x1a   :  { %492 = vmatprep.subr.bf16.mxu1 %v527_v25 }
  0x1c   :  { %471 = vmatpush3.bf16.msra.mxu0 %v528_v26 }
  0x1d   :  { %493 = vmatpush3.bf16.msra.mxu1 %v529_v27  ;;  %472 = vmatprep.subr.bf16.mxu0 %v530_v28 }
  0x1e   :  { %494 = vmatprep.subr.bf16.mxu1 %v531_v29 }
  0x20   :  { %473 = vmatpush3.bf16.msra.mxu0 %v532_v30 }
  0x21   :  { %495 = vmatpush3.bf16.msra.mxu1 %v533_v31 }
  0x23   :  { %336 = vmatmul.mubr.bf16.vlgmr.msra.gmra.mxu0 %v534_v32 }
  0x24   :  { %377 = vmatmul.mubr.bf16.vlgmr.msra.gmra.mxu1 %v537_v34 }
  0xe3   :  { %v474_v36 = vpop.f32.mrf.mxu0 }
  0xe4   :  { %v496_v37 = vpop.f32.mrf.mxu1 }
  0xe5   :  { %v475_v38 = vpop.f32.mrf.mxu0 }
  0xe6   :  { %v476_v39 = vadd.f32 %v475_v38, %v474_v36  ;;  %v497_v40 = vpop.f32.mrf.mxu1 }
  0xe7   :  { %v498_v41 = vadd.f32 %v497_v40, %v496_v37  ;;  %v477_v42 = vpop.f32.mrf.mxu0 }
  0xe8   :  { %v499_v43 = vpop.f32.mrf.mxu1 }
  0xe9   :  { %v379_v45 = vadd.f32 %v498_v41, %v476_v39  ;;  %v478_v46 = vpop.f32.mrf.mxu0 }
  0xea   :  { %v479_v47 = vadd.f32 %v478_v46, %v477_v42  ;;  %v500_v48 = vpop.f32.mrf.mxu1 }
  0xeb   :  { %v501_v49 = vadd.f32 %v500_v48, %v499_v43  ;;  %v401_v50 = vadd.f32 %v457_v44, %v379_v45 }
  0xed   :  { %v382_v51 = vadd.f32 %v501_v49, %v479_v47  ;;  %v403_v52 = vmul.f32 %v401_v50, %v401_v50 }
  0xef   :  { %405 = vadd.xlane.f32.xlu0 %v403_v52  ;;  %v402_v53 = vadd.f32 %v457_v44, %v382_v51 }
  0xf1   :  { %v404_v54 = vmul.f32 %v402_v53, %v402_v53 }
  0xf3   :  { %407 = vadd.xlane.f32.xlu0 %v404_v54 }
 0x178   :  { %v406_v55 = vpop.xlane.xlu0 %405 }
 0x179   :  { %v409_v56 = vmax.f32 %v406_v55, 1e-24 }
 0x17b   :  { %540 = vrsqrt.f32 %v409_v56 }
 0x17c   :  { %v408_v57 = vpop.xlane.xlu0 %407 }
 0x17d   :  { %v410_v58 = vmax.f32 %v408_v57, 1e-24 }
 0x17f   :  { %542 = vrsqrt.f32 %v410_v58 }
 0x188   :  { %v541_v59 = vpop.eup %540 }
 0x189   :  { %v413_v60 = vmul.f32 %v541_v59, %v401_v50 }
 0x18b   :  { %415 = vst [vmem:[%s684_s3] sm:$0xff] %v413_v60 }
 0x18c   :  { %v543_v61 = vpop.eup %542 }
 0x18d   :  { %v414_v62 = vmul.f32 %v543_v61, %v402_v53 }
 0x18f   :  { %416 = vst [vmem:[%s684_s3 + $0x8] sm:$0xff] %v414_v62 }

// kernel: feature_extractor_forward.10
= control target key start
LH: loop header
LB: loop body
LE: loop exit
PB: predicated region body
PF: predicated region fallthrough
CT: control target
= control target key end

     0   :  { %s2049_s0 = inlined_call_operand.vmem [shape: bf16[16,1024], index: 0, kind: input, shape index: {}]   ;;  %s2050_s1 = inlined_call_operand.vmem [shape: bf16[1024,512], index: 1, kind: input, shape index: {}]   ;;  %s2051_s2 = inlined_call_operand.vmem [shape: f32[1,512], index: 2, kind: input, shape index: {}]   ;;  %s2052_s3 = inlined_call_operand.vmem [shape: bf16[16,512], index: 3, kind: output, shape index: {}]  }
   0x1   :  { %2054 = sst [smem:[#allocation7_spill]] %s2049_s0 }
   0x2   :  { %2055 = sst [smem:[#allocation8_spill]] %s2050_s1 }
   0x3   :  { %s1667_s12 = smov 0   ;;  %s1669_s13 = smov 0  }
   0x4   :  { %s1671_s14 = smov 0   ;;  %s1673_s15 = smov 0  }
   0x5   :  { %s1675_s16 = smov 0   ;;  %s1677_s17 = smov 0  }
   0x6   :  { %s1679_s18 = smov 0   ;;  %s1681_s19 = smov 0  }
   0x7   :  { %s1683_s20 = smov 0   ;;  %s1685_s21 = smov 0  }
   0x8   :  { %s1687_s22 = smov 0  }
   0x9 LB: > { %s1268_s23 = sadd.s32 4294967295, %s1644_s22   ;;  %s25_s24 = sadd.s32 1, %s1636_s20  ;;  %s1644_s22 = sphi %s1687_s22, %s13_s22   ;;  %s1640_s21 = sphi %s1685_s21, %s2072_s21   ;;  %s1636_s20 = sphi %s1683_s20, %s2071_s20   ;;  %s1632_s19 = sphi %s1681_s19, %s2070_s19   ;;  %s1628_s18 = sphi %s1679_s18, %s2069_s18   ;;  %s1624_s17 = sphi %s1677_s17, %s2068_s17   ;;  %s1620_s16 = sphi %s1675_s16, %s2067_s16   ;;  %s1616_s15 = sphi %s1673_s15, %s2066_s15   ;;  %s1612_s14 = sphi %s1671_s14, %s2065_s14   ;;  %s1608_s13 = sphi %s1669_s13, %s2064_s13   ;;  %s1604_s12 = sphi %s1667_s12, %s2063_s12  }
   0xa   : > { %p26_p0 = scmp.ge.s32.totalorder %s25_s24, 2  ;;  %s28_s25 = sadd.s32 1, %s1640_s21 }
   0xb   : > { %s41_s26 = sadd.s32 1, %s1624_s17  ;;  %p48_p1 = scmp.ne.s32.totalorder %s1624_s17, %s1620_s16 }
   0xc   : > { %s2074_s24 = smov (%p26_p0, %s25_s24), 0  ;;  %s2076_s25 = smov (!%p26_p0, %s28_s25), %s1640_s21 }
   0xd   : > { %s37_s27 = ssub.s32 %s1636_s20, %s2074_s24  ;;  %p49_p2 = scmp.eq.s32.totalorder %s1644_s22, 0 }
   0xe   : > { %p30_p3 = scmp.ge.s32.totalorder %s2076_s25, 2  ;;  %p39_p4 = scmp.eq.s32.totalorder %s37_s27, 0 }
   0xf   : > { %p1734_p5 = por %p49_p2, %p48_p1  ;;  %s69_s29 = sadd.s32 1, %s1616_s15 }
  0x10   : > { %s2078_s25 = smov (%p30_p3, %s2076_s25), 0  ;;  %p76_p6 = scmp.ne.s32.totalorder %s1616_s15, %s1612_s14 }
  0x11   : > { %2057 = sst [smem:[#allocation6_spill]] %s2078_s25  ;;  %s65_s4 = ssub.s32 %s1640_s21, %s2078_s25 }
  0x12   : > { %s1742_s30 = scalar_select %p39_p4, %s1624_s17, %s41_s26  }
  0x13   : > { %s66_s5 = sor.u32 %s65_s4, %s37_s27  ;;  %p121_p7 = scmp.eq.s32.totalorder %s65_s4, 0 }
  0x14   : > { %p67_p8 = scmp.eq.s32.totalorder %s66_s5, 0  ;;  %p1748_p9 = por %p76_p6, %p49_p2 }
  0x15   : > { %s123_s7 = sadd.s32 1, %s1608_s13  ;;  %p133_p10 = scmp.ne.s32.totalorder %s1608_s13, %s1604_s12 }
  0x16   : > { %s1756_s8 = scalar_select %p67_p8, %s1616_s15, %s69_s29  }
  0x17   : > { %s1759_s9 = scalar_select %p121_p7, %s1608_s13, %s123_s7  }
  0x18   : > { %p134_p11 = scmp.eq.s32.totalorder %s1268_s23, 3  ;;  %p1271_p13 = scmp.ge.s32.totalorder %s1644_s22, 4 }
  0x1a   : > { %p1761_p12 = por %p134_p11, %p133_p10  ;;  %156 = sbr.rel (%p1271_p13) target bundleno = 85 (0x55), region = 16 }
  0x1f   : > { %159 = sbr.rel (!%p1734_p5) target bundleno = 43 (0x2b), region = 20  ;;  %s161_s11 = sand.u32 (%p1734_p5), 1, %s1624_s17  }
  0x20   : > { %s1362_s26 = sshll.u32 (%p1734_p5), %s1636_s20, 4  ;;  %s1272_s27 = sshll.u32 (%p1734_p5), %s161_s11, 5 }
  0x21   : > { %s2060_s0 = sld [smem:[#allocation7_spill]] (%p1734_p5)  ;;  %s163_s23 = scalar_lea.vmem (%p1734_p5), [#allocation3], %s1272_s27 }
  0x27   : > { %s169_s5 = scalar_lea.vmem %s2060_s0, %s1362_s26 }
  0x28   : > { %v182_v0 = vld [vmem:[%s169_s5] sm:$0xff]  ;;  %v184_v1 = vld [vmem:[%s169_s5 + $0x8] sm:$0xff] }
  0x29   : > { %v186_v2 = vld [vmem:[%s169_s5 + $0x20] sm:$0xff]  ;;  %183 = vst [vmem:[%s163_s23] sm:$0xff] %v182_v0  ;;  %185 = vst [vmem:[%s163_s23 + $0x8] sm:$0xff] %v184_v1  ;;  %v188_v3 = vld [vmem:[%s169_s5 + $0x28] sm:$0xff] }
  0x2a   : > { %187 = vst [vmem:[%s163_s23 + $0x10] sm:$0xff] %v186_v2  ;;  %189 = vst [vmem:[%s163_s23 + $0x18] sm:$0xff] %v188_v3 }
  0x2b PF: > { %195 = sbr.rel (!%p1748_p9) target bundleno = 85 (0x55), region = 43  ;;  %s197_s28 = sand.u32 (%p1748_p9), 1, %s1616_s15  }
  0x2c   : > { %s1277_s7 = sshll.u32 (%p1748_p9), %s1640_s21, 1  ;;  %s1275_s11 = sshll.u32 (%p1748_p9), %s197_s28, 9 }
  0x2d   : > { %s1363_s26 = sshll.u32 (%p1748_p9), %s1636_s20, 8  ;;  %s2061_s1 = sld [smem:[#allocation8_spill]] (%p1748_p9) }
  0x2e   : > { %s203_s29 = sadd.s32 (%p1748_p9), %s1363_s26, %s1277_s7  ;;  %s1786_s6 = scalar_lea.vmem (%p1748_p9), [#allocation4], %s1275_s11 }
  0x2f   : > { %s1279_s4 = sshll.u32 (%p1748_p9), %s203_s29, 2 }
  0x33   : > { %s1781_s25 = scalar_lea.vmem %s2061_s1, %s1279_s4 }
  0x34   : > { %v360_v4 = vld [vmem:[%s1781_s25] sm:$0xff]  ;;  %v362_v5 = vld [vmem:[%s1781_s25 + $0x10] sm:$0xff] }
  0x35   : > { %v364_v6 = vld [vmem:[%s1781_s25 + $0x20] sm:$0xff]  ;;  %361 = vst [vmem:[%s1786_s6] sm:$0xff] %v360_v4  ;;  %363 = vst [vmem:[%s1786_s6 + $0x8] sm:$0xff] %v362_v5  ;;  %v366_v7 = vld [vmem:[%s1781_s25 + $0x30] sm:$0xff] }
  0x36   : > { %365 = vst [vmem:[%s1786_s6 + $0x10] sm:$0xff] %v364_v6  ;;  %v368_v8 = vld [vmem:[%s1781_s25 + $0x40] sm:$0xff]  ;;  %v370_v9 = vld [vmem:[%s1781_s25 + $0x50] sm:$0xff]  ;;  %367 = vst [vmem:[%s1786_s6 + $0x18] sm:$0xff] %v366_v7 }
  0x37   : > { %369 = vst [vmem:[%s1786_s6 + $0x20] sm:$0xff] %v368_v8  ;;  %371 = vst [vmem:[%s1786_s6 + $0x28] sm:$0xff] %v370_v9  ;;  %v372_v10 = vld [vmem:[%s1781_s25 + $0x60] sm:$0xff]  ;;  %v374_v11 = vld [vmem:[%s1781_s25 + $0x70] sm:$0xff] }
  0x38   : > { %v376_v12 = vld [vmem:[%s1781_s25 + $0x80] sm:$0xff]  ;;  %373 = vst [vmem:[%s1786_s6 + $0x30] sm:$0xff] %v372_v10  ;;  %375 = vst [vmem:[%s1786_s6 + $0x38] sm:$0xff] %v374_v11  ;;  %v378_v13 = vld [vmem:[%s1781_s25 + $0x90] sm:$0xff] }
  0x39   : > { %377 = vst [vmem:[%s1786_s6 + $0x40] sm:$0xff] %v376_v12  ;;  %v380_v14 = vld [vmem:[%s1781_s25 + $0xa0] sm:$0xff]  ;;  %v382_v15 = vld [vmem:[%s1781_s25 + $0xb0] sm:$0xff]  ;;  %379 = vst [vmem:[%s1786_s6 + $0x48] sm:$0xff] %v378_v13 }
  0x3a   : > { %381 = vst [vmem:[%s1786_s6 + $0x50] sm:$0xff] %v380_v14  ;;  %383 = vst [vmem:[%s1786_s6 + $0x58] sm:$0xff] %v382_v15  ;;  %v384_v16 = vld [vmem:[%s1781_s25 + $0xc0] sm:$0xff]  ;;  %v386_v17 = vld [vmem:[%s1781_s25 + $0xd0] sm:$0xff] }
  0x3b   : > { %v388_v18 = vld [vmem:[%s1781_s25 + $0xe0] sm:$0xff]  ;;  %385 = vst [vmem:[%s1786_s6 + $0x60] sm:$0xff] %v384_v16  ;;  %387 = vst [vmem:[%s1786_s6 + $0x68] sm:$0xff] %v386_v17  ;;  %v390_v19 = vld [vmem:[%s1781_s25 + $0xf0] sm:$0xff] }
  0x3c   : > { %389 = vst [vmem:[%s1786_s6 + $0x70] sm:$0xff] %v388_v18  ;;  %v392_v20 = vld [vmem:[%s1781_s25 + $0x100] sm:$0xff]  ;;  %v394_v21 = vld [vmem:[%s1781_s25 + $0x110] sm:$0xff]  ;;  %391 = vst [vmem:[%s1786_s6 + $0x78] sm:$0xff] %v390_v19 }
  0x3d   : > { %393 = vst [vmem:[%s1786_s6 + $0x80] sm:$0xff] %v392_v20  ;;  %395 = vst [vmem:[%s1786_s6 + $0x88] sm:$0xff] %v394_v21  ;;  %v396_v22 = vld [vmem:[%s1781_s25 + $0x120] sm:$0xff]  ;;  %v398_v23 = vld [vmem:[%s1781_s25 + $0x130] sm:$0xff] }
  0x3e   : > { %v400_v24 = vld [vmem:[%s1781_s25 + $0x140] sm:$0xff]  ;;  %397 = vst [vmem:[%s1786_s6 + $0x90] sm:$0xff] %v396_v22  ;;  %399 = vst [vmem:[%s1786_s6 + $0x98] sm:$0xff] %v398_v23  ;;  %v402_v25 = vld [vmem:[%s1781_s25 + $0x150] sm:$0xff] }
  0x3f   : > { %401 = vst [vmem:[%s1786_s6 + $0xa0] sm:$0xff] %v400_v24  ;;  %v404_v26 = vld [vmem:[%s1781_s25 + $0x160] sm:$0xff]  ;;  %v406_v27 = vld [vmem:[%s1781_s25 + $0x170] sm:$0xff]  ;;  %403 = vst [vmem:[%s1786_s6 + $0xa8] sm:$0xff] %v402_v25 }
  0x40   : > { %405 = vst [vmem:[%s1786_s6 + $0xb0] sm:$0xff] %v404_v26  ;;  %407 = vst [vmem:[%s1786_s6 + $0xb8] sm:$0xff] %v406_v27  ;;  %v408_v28 = vld [vmem:[%s1781_s25 + $0x180] sm:$0xff]  ;;  %v410_v29 = vld [vmem:[%s1781_s25 + $0x190] sm:$0xff] }
  0x41   : > { %v412_v30 = vld [vmem:[%s1781_s25 + $0x1a0] sm:$0xff]  ;;  %409 = vst [vmem:[%s1786_s6 + $0xc0] sm:$0xff] %v408_v28  ;;  %411 = vst [vmem:[%s1786_s6 + $0xc8] sm:$0xff] %v410_v29  ;;  %v414_v31 = vld [vmem:[%s1781_s25 + $0x1b0] sm:$0xff] }
  0x42   : > { %413 = vst [vmem:[%s1786_s6 + $0xd0] sm:$0xff] %v412_v30  ;;  %v416_v32 = vld [vmem:[%s1781_s25 + $0x1c0] sm:$0xff]  ;;  %v418_v33 = vld [vmem:[%s1781_s25 + $0x1d0] sm:$0xff]  ;;  %415 = vst [vmem:[%s1786_s6 + $0xd8] sm:$0xff] %v414_v31 }
  0x43   : > { %417 = vst [vmem:[%s1786_s6 + $0xe0] sm:$0xff] %v416_v32  ;;  %419 = vst [vmem:[%s1786_s6 + $0xe8] sm:$0xff] %v418_v33  ;;  %v420_v34 = vld [vmem:[%s1781_s25 + $0x1e0] sm:$0xff]  ;;  %v422_v35 = vld [vmem:[%s1781_s25 + $0x1f0] sm:$0xff] }
  0x44   : > { %v424_v36 = vld [vmem:[%s1781_s25 + $0x200] sm:$0xff]  ;;  %421 = vst [vmem:[%s1786_s6 + $0xf0] sm:$0xff] %v420_v34  ;;  %423 = vst [vmem:[%s1786_s6 + $0xf8] sm:$0xff] %v422_v35  ;;  %v426_v37 = vld [vmem:[%s1781_s25 + $0x210] sm:$0xff] }
  0x45   : > { %425 = vst [vmem:[%s1786_s6 + $0x100] sm:$0xff] %v424_v36  ;;  %v428_v38 = vld [vmem:[%s1781_s25 + $0x220] sm:$0xff]  ;;  %v430_v39 = vld [vmem:[%s1781_s25 + $0x230] sm:$0xff]  ;;  %427 = vst [vmem:[%s1786_s6 + $0x108] sm:$0xff] %v426_v37 }
  0x46   : > { %429 = vst [vmem:[%s1786_s6 + $0x110] sm:$0xff] %v428_v38  ;;  %431 = vst [vmem:[%s1786_s6 + $0x118] sm:$0xff] %v430_v39  ;;  %v432_v40 = vld [vmem:[%s1781_s25 + $0x240] sm:$0xff]  ;;  %v434_v41 = vld [vmem:[%s1781_s25 + $0x250] sm:$0xff] }
  0x47   : > { %v436_v42 = vld [vmem:[%s1781_s25 + $0x260] sm:$0xff]  ;;  %433 = vst [vmem:[%s1786_s6 + $0x120] sm:$0xff] %v432_v40  ;;  %435 = vst [vmem:[%s1786_s6 + $0x128] sm:$0xff] %v434_v41  ;;  %v438_v43 = vld [vmem:[%s1781_s25 + $0x270] sm:$0xff] }
  0x48   : > { %437 = vst [vmem:[%s1786_s6 + $0x130] sm:$0xff] %v436_v42  ;;  %v440_v44 = vld [vmem:[%s1781_s25 + $0x280] sm:$0xff]  ;;  %v442_v45 = vld [vmem:[%s1781_s25 + $0x290] sm:$0xff]  ;;  %439 = vst [vmem:[%s1786_s6 + $0x138] sm:$0xff] %v438_v43 }
  0x49   : > { %441 = vst [vmem:[%s1786_s6 + $0x140] sm:$0xff] %v440_v44  ;;  %443 = vst [vmem:[%s1786_s6 + $0x148] sm:$0xff] %v442_v45  ;;  %v444_v46 = vld [vmem:[%s1781_s25 + $0x2a0] sm:$0xff]  ;;  %v446_v47 = vld [vmem:[%s1781_s25 + $0x2b0] sm:$0xff] }
  0x4a   : > { %v448_v48 = vld [vmem:[%s1781_s25 + $0x2c0] sm:$0xff]  ;;  %445 = vst [vmem:[%s1786_s6 + $0x150] sm:$0xff] %v444_v46  ;;  %447 = vst [vmem:[%s1786_s6 + $0x158] sm:$0xff] %v446_v47  ;;  %v450_v49 = vld [vmem:[%s1781_s25 + $0x2d0] sm:$0xff] }
  0x4b   : > { %449 = vst [vmem:[%s1786_s6 + $0x160] sm:$0xff] %v448_v48  ;;  %v452_v50 = vld [vmem:[%s1781_s25 + $0x2e0] sm:$0xff]  ;;  %v454_v51 = vld [vmem:[%s1781_s25 + $0x2f0] sm:$0xff]  ;;  %451 = vst [vmem:[%s1786_s6 + $0x168] sm:$0xff] %v450_v49 }
  0x4c   : > { %453 = vst [vmem:[%s1786_s6 + $0x170] sm:$0xff] %v452_v50  ;;  %455 = vst [vmem:[%s1786_s6 + $0x178] sm:$0xff] %v454_v51  ;;  %v456_v52 = vld [vmem:[%s1781_s25 + $0x300] sm:$0xff]  ;;  %v458_v53 = vld [vmem:[%s1781_s25 + $0x310] sm:$0xff] }
  0x4d   : > { %v460_v54 = vld [vmem:[%s1781_s25 + $0x320] sm:$0xff]  ;;  %457 = vst [vmem:[%s1786_s6 + $0x180] sm:$0xff] %v456_v52  ;;  %459 = vst [vmem:[%s1786_s6 + $0x188] sm:$0xff] %v458_v53  ;;  %v462_v55 = vld [vmem:[%s1781_s25 + $0x330] sm:$0xff] }
  0x4e   : > { %461 = vst [vmem:[%s1786_s6 + $0x190] sm:$0xff] %v460_v54  ;;  %v464_v56 = vld [vmem:[%s1781_s25 + $0x340] sm:$0xff]  ;;  %v466_v57 = vld [vmem:[%s1781_s25 + $0x350] sm:$0xff]  ;;  %463 = vst [vmem:[%s1786_s6 + $0x198] sm:$0xff] %v462_v55 }
  0x4f   : > { %465 = vst [vmem:[%s1786_s6 + $0x1a0] sm:$0xff] %v464_v56  ;;  %467 = vst [vmem:[%s1786_s6 + $0x1a8] sm:$0xff] %v466_v57  ;;  %v468_v58 = vld [vmem:[%s1781_s25 + $0x360] sm:$0xff]  ;;  %v470_v59 = vld [vmem:[%s1781_s25 + $0x370] sm:$0xff] }
  0x50   : > { %v472_v60 = vld [vmem:[%s1781_s25 + $0x380] sm:$0xff]  ;;  %469 = vst [vmem:[%s1786_s6 + $0x1b0] sm:$0xff] %v468_v58  ;;  %471 = vst [vmem:[%s1786_s6 + $0x1b8] sm:$0xff] %v470_v59  ;;  %v474_v61 = vld [vmem:[%s1781_s25 + $0x390] sm:$0xff] }
  0x51   : > { %473 = vst [vmem:[%s1786_s6 + $0x1c0] sm:$0xff] %v472_v60  ;;  %v476_v62 = vld [vmem:[%s1781_s25 + $0x3a0] sm:$0xff]  ;;  %v478_v63 = vld [vmem:[%s1781_s25 + $0x3b0] sm:$0xff]  ;;  %475 = vst [vmem:[%s1786_s6 + $0x1c8] sm:$0xff] %v474_v61 }
  0x52   : > { %477 = vst [vmem:[%s1786_s6 + $0x1d0] sm:$0xff] %v476_v62  ;;  %479 = vst [vmem:[%s1786_s6 + $0x1d8] sm:$0xff] %v478_v63  ;;  %v480_v0 = vld [vmem:[%s1781_s25 + $0x3c0] sm:$0xff]  ;;  %v482_v1 = vld [vmem:[%s1781_s25 + $0x3d0] sm:$0xff] }
  0x53   : > { %v484_v2 = vld [vmem:[%s1781_s25 + $0x3e0] sm:$0xff]  ;;  %481 = vst [vmem:[%s1786_s6 + $0x1e0] sm:$0xff] %v480_v0  ;;  %483 = vst [vmem:[%s1786_s6 + $0x1e8] sm:$0xff] %v482_v1  ;;  %v486_v3 = vld [vmem:[%s1781_s25 + $0x3f0] sm:$0xff] }
  0x54   : > { %485 = vst [vmem:[%s1786_s6 + $0x1f0] sm:$0xff] %v484_v2  ;;  %487 = vst [vmem:[%s1786_s6 + $0x1f8] sm:$0xff] %v486_v3 }
  0x55 PF: > { %p1280_p0 = scmp.ge.s32.totalorder %s1644_s22, 1  ;;  %p500_p1 = scmp.lt.s32.totalorder %s1644_s22, 5 }
  0x57   : > { %p501_p2 = pnand %p1280_p0, %p500_p1 }
  0x58   : > { %s507_s0 = sand.u32 (!%p501_p2), 1, %s1620_s16   ;;  %s514_s5 = sand.u32 (!%p501_p2), 1, %s1612_s14  }
  0x59   : > { %504 = sbr.rel (%p501_p2) target bundleno = 397 (0x18d), region = 85  ;;  %s1281_s23 = sshll.u32 (!%p501_p2), %s507_s0, 5 }
  0x5a   : > { %s1282_s28 = sshll.u32 (!%p501_p2), %s514_s5, 9  ;;  %s541_s7 = sand.u32 (!%p501_p2), 1, %s1604_s12  }
  0x5b   : > { %s1284_s11 = sshll.u32 (!%p501_p2), %s1632_s19, 1  ;;  %s1283_s25 = sshll.u32 (!%p501_p2), %s541_s7, 4 }
  0x5c   : > { %p549_p3 = scmp.lt.s32.totalorder (!%p501_p2), %s1284_s11, 3  ;;  %s1925_s27 = scalar_lea.vmem (!%p501_p2), [#allocation3], %s1281_s23 }
  0x5d   : > { %s1927_s6 = scalar_lea.vmem (!%p501_p2), [#allocation4], %s1282_s28  ;;  %s1929_s1 = scalar_lea.vmem (!%p501_p2), [#allocation5], %s1283_s25 }
  0x5e   : > { %s2080_s11 = smov (!%p549_p3, %s1284_s11), 3  ;;  %p1285_p4 = scmp.ne.s32.totalorder %s1628_s18, 0 }
  0x5f   : > { %s551_s4 = scalar_lea.vmem %s2051_s2, %s2080_s11 }
  0x60   : > { %558 = sbr.rel (%p1285_p4) target bundleno = 104 (0x68), region = 97 }
  0x65   : > { %v1646_v4 = vmov 0.0  }
  0x66   : > { %559 = vst [vmem:[#allocation2 + $0x10] sm:$0xff] %v1646_v4  ;;  %560 = vst [vmem:[#allocation2] sm:$0xff] %v1646_v4 }
  0x67   : > { %561 = vst [vmem:[#allocation2 + $0x18] sm:$0xff] %v1646_v4  ;;  %562 = vst [vmem:[#allocation2 + $0x8] sm:$0xff] %v1646_v4 }
  0x68 PF: > { %v1456_v5 = vld [vmem:[%s1927_s6 + $0x74] ss:$8 sps:$4 sm:$0xff]   ;;  %v1460_v7 = vld [vmem:[%s1927_s6 + $0x70] ss:$8 sps:$4 sm:$0xff]   ;;  %v1462_v9 = vld [vmem:[%s1927_s6 + $0x64] ss:$8 sps:$4 sm:$0xff]  }
  0x69   : > { %v1458_v6 = vld [vmem:[%s1927_s6 + $0x174] ss:$8 sps:$4 sm:$0xff]   ;;  %975 = vmatprep.subr.bf16.mxu0 %v1456_v5  ;;  %v1461_v8 = vld [vmem:[%s1927_s6 + $0x170] ss:$8 sps:$4 sm:$0xff]   ;;  %v1464_v10 = vld [vmem:[%s1927_s6 + $0x164] ss:$8 sps:$4 sm:$0xff]  }
  0x6a   : > { %1018 = vmatprep.subr.bf16.mxu1 %v1458_v6  ;;  %976 = vmatpush1.bf16.msra.mxu0 %v1460_v7  ;;  %v1466_v11 = vld [vmem:[%s1927_s6 + $0x60] ss:$8 sps:$4 sm:$0xff]   ;;  %v1468_v13 = vld [vmem:[%s1927_s6 + $0x54] ss:$8 sps:$4 sm:$0xff]   ;;  %v1472_v15 = vld [vmem:[%s1927_s6 + $0x50] ss:$8 sps:$4 sm:$0xff]  }
  0x6b   : > { %1019 = vmatpush1.bf16.msra.mxu1 %v1461_v8  ;;  %977 = vmatprep.subr.bf16.mxu0 %v1462_v9  ;;  %v1467_v12 = vld [vmem:[%s1927_s6 + $0x160] ss:$8 sps:$4 sm:$0xff]   ;;  %v1470_v14 = vld [vmem:[%s1927_s6 + $0x154] ss:$8 sps:$4 sm:$0xff]   ;;  %v1473_v16 = vld [vmem:[%s1927_s6 + $0x150] ss:$8 sps:$4 sm:$0xff]  }
  0x6c   : > { %1020 = vmatprep.subr.bf16.mxu1 %v1464_v10  ;;  %v1474_v17 = vld [vmem:[%s1927_s6 + $0x44] ss:$8 sps:$4 sm:$0xff]   ;;  %v1478_v19 = vld [vmem:[%s1927_s6 + $0x40] ss:$8 sps:$4 sm:$0xff]   ;;  %v1480_v21 = vld [vmem:[%s1927_s6 + $0x34] ss:$8 sps:$4 sm:$0xff]  }
  0x6d   : > { %v1476_v18 = vld [vmem:[%s1927_s6 + $0x144] ss:$8 sps:$4 sm:$0xff]   ;;  %v1479_v20 = vld [vmem:[%s1927_s6 + $0x140] ss:$8 sps:$4 sm:$0xff]   ;;  %v1482_v22 = vld [vmem:[%s1927_s6 + $0x134] ss:$8 sps:$4 sm:$0xff]  }
  0x6e   : > { %978 = vmatpush1.bf16.msra.mxu0 %v1466_v11  ;;  %v1484_v23 = vld [vmem:[%s1927_s6 + $0x30] ss:$8 sps:$4 sm:$0xff]   ;;  %v1486_v25 = vld [vmem:[%s1927_s6 + $0x24] ss:$8 sps:$4 sm:$0xff]   ;;  %v1490_v27 = vld [vmem:[%s1927_s6 + $0x20] ss:$8 sps:$4 sm:$0xff]  }
  0x6f   : > { %1021 = vmatpush1.bf16.msra.mxu1 %v1467_v12  ;;  %979 = vmatprep.subr.bf16.mxu0 %v1468_v13  ;;  %v1485_v24 = vld [vmem:[%s1927_s6 + $0x130] ss:$8 sps:$4 sm:$0xff]   ;;  %v1488_v26 = vld [vmem:[%s1927_s6 + $0x124] ss:$8 sps:$4 sm:$0xff]   ;;  %v1491_v28 = vld [vmem:[%s1927_s6 + $0x120] ss:$8 sps:$4 sm:$0xff]  }
  0x70   : > { %1022 = vmatprep.subr.bf16.mxu1 %v1470_v14  ;;  %v1492_v29 = vld [vmem:[%s1927_s6 + $0x14] ss:$8 sps:$4 sm:$0xff]   ;;  %v1496_v31 = vld [vmem:[%s1927_s6 + $0x10] ss:$8 sps:$4 sm:$0xff]   ;;  %v1498_v33 = vld [vmem:[%s1927_s6 + $0x4] ss:$8 sps:$4 sm:$0xff]  }
  0x71   : > { %v1494_v30 = vld [vmem:[%s1927_s6 + $0x114] ss:$8 sps:$4 sm:$0xff]   ;;  %v1497_v32 = vld [vmem:[%s1927_s6 + $0x110] ss:$8 sps:$4 sm:$0xff]   ;;  %v1500_v34 = vld [vmem:[%s1927_s6 + $0x104] ss:$8 sps:$4 sm:$0xff]  }
  0x72   : > { %980 = vmatpush1.bf16.msra.mxu0 %v1472_v15  ;;  %v1502_v35 = vld [vmem:[%s1927_s6] ss:$8 sps:$4 sm:$0xff]   ;;  %v1504_v37 = vld [vmem:[%s1927_s6 + $0xf4] ss:$8 sps:$4 sm:$0xff]   ;;  %v1508_v39 = vld [vmem:[%s1927_s6 + $0xf0] ss:$8 sps:$4 sm:$0xff]  }
  0x73   : > { %1023 = vmatpush1.bf16.msra.mxu1 %v1473_v16  ;;  %981 = vmatprep.subr.bf16.mxu0 %v1474_v17  ;;  %v1503_v36 = vld [vmem:[%s1927_s6 + $0x100] ss:$8 sps:$4 sm:$0xff]   ;;  %v1506_v38 = vld [vmem:[%s1927_s6 + $0x1f4] ss:$8 sps:$4 sm:$0xff]   ;;  %v1509_v40 = vld [vmem:[%s1927_s6 + $0x1f0] ss:$8 sps:$4 sm:$0xff]  }
  0x74   : > { %1024 = vmatprep.subr.bf16.mxu1 %v1476_v18  ;;  %v1510_v41 = vld [vmem:[%s1927_s6 + $0xe4] ss:$8 sps:$4 sm:$0xff]   ;;  %v1514_v43 = vld [vmem:[%s1927_s6 + $0xe0] ss:$8 sps:$4 sm:$0xff]   ;;  %v1516_v45 = vld [vmem:[%s1927_s6 + $0xd4] ss:$8 sps:$4 sm:$0xff]  }
  0x75   : > { %v1512_v42 = vld [vmem:[%s1927_s6 + $0x1e4] ss:$8 sps:$4 sm:$0xff]   ;;  %v1515_v44 = vld [vmem:[%s1927_s6 + $0x1e0] ss:$8 sps:$4 sm:$0xff]   ;;  %v1518_v46 = vld [vmem:[%s1927_s6 + $0x1d4] ss:$8 sps:$4 sm:$0xff]  }
  0x76   : > { %982 = vmatpush1.bf16.msra.mxu0 %v1478_v19  ;;  %v1520_v47 = vld [vmem:[%s1927_s6 + $0xd0] ss:$8 sps:$4 sm:$0xff]   ;;  %v1522_v49 = vld [vmem:[%s1927_s6 + $0xc4] ss:$8 sps:$4 sm:$0xff]   ;;  %v1526_v51 = vld [vmem:[%s1927_s6 + $0xc0] ss:$8 sps:$4 sm:$0xff]  }
  0x77   : > { %1025 = vmatpush1.bf16.msra.mxu1 %v1479_v20  ;;  %983 = vmatprep.subr.bf16.mxu0 %v1480_v21  ;;  %v1521_v48 = vld [vmem:[%s1927_s6 + $0x1d0] ss:$8 sps:$4 sm:$0xff]   ;;  %v1524_v50 = vld [vmem:[%s1927_s6 + $0x1c4] ss:$8 sps:$4 sm:$0xff]   ;;  %v1527_v53 = vld [vmem:[%s1927_s6 + $0x1c0] ss:$8 sps:$4 sm:$0xff]  }
  0x78   : > { %1026 = vmatprep.subr.bf16.mxu1 %v1482_v22  ;;  %v1554_v52 = vld [vmem:[%s1925_s27 + $0x4] ss:$16 sps:$4 sm:$0xff]   ;;  %v1557_v56 = vld [vmem:[%s1925_s27 + $0xc] ss:$16 sps:$4 sm:$0xff]   ;;  %v1532_v57 = vld [vmem:[%s1927_s6 + $0xb0] ss:$8 sps:$4 sm:$0xff]  }
  0x79   : > { %v1528_v54 = vld [vmem:[%s1927_s6 + $0xb4] ss:$8 sps:$4 sm:$0xff]   ;;  %1007 = vmatprep.mubr.bf16.mxu0 %v1554_v52  ;;  %1050 = vmatprep.mubr.bf16.mxu1 %v1557_v56  ;;  %v1533_v58 = vld [vmem:[%s1927_s6 + $0x1b0] ss:$8 sps:$4 sm:$0xff]   ;;  %v1534_v59 = vld [vmem:[%s1927_s6 + $0xa4] ss:$8 sps:$4 sm:$0xff]  }
  0x7a   : > { %984 = vmatpush1.bf16.msra.mxu0 %v1484_v23  ;;  %v1530_v55 = vld [vmem:[%s1927_s6 + $0x1b4] ss:$8 sps:$4 sm:$0xff]   ;;  %v1536_v60 = vld [vmem:[%s1927_s6 + $0x1a4] ss:$8 sps:$4 sm:$0xff]   ;;  %v1538_v61 = vld [vmem:[%s1927_s6 + $0xa0] ss:$8 sps:$4 sm:$0xff]  }
  0x7b   : > { %1027 = vmatpush1.bf16.msra.mxu1 %v1485_v24  ;;  %985 = vmatprep.subr.bf16.mxu0 %v1486_v25  ;;  %v1539_v62 = vld [vmem:[%s1927_s6 + $0x1a0] ss:$8 sps:$4 sm:$0xff]   ;;  %v1540_v63 = vld [vmem:[%s1927_s6 + $0x94] ss:$8 sps:$4 sm:$0xff]   ;;  %v1544_v1 = vld [vmem:[%s1927_s6 + $0x90] ss:$8 sps:$4 sm:$0xff]  }
  0x7c   : > { %1028 = vmatprep.subr.bf16.mxu1 %v1488_v26  ;;  %v1542_v0 = vld [vmem:[%s1927_s6 + $0x194] ss:$8 sps:$4 sm:$0xff]   ;;  %v1545_v2 = vld [vmem:[%s1927_s6 + $0x190] ss:$8 sps:$4 sm:$0xff]   ;;  %v1546_v3 = vld [vmem:[%s1927_s6 + $0x84] ss:$8 sps:$4 sm:$0xff]  }
  0x7d   : > { %v1548_v4 = vld [vmem:[%s1927_s6 + $0x184] ss:$8 sps:$4 sm:$0xff]   ;;  %v1550_v5 = vld [vmem:[%s1927_s6 + $0x80] ss:$8 sps:$4 sm:$0xff]   ;;  %v563_v10 = vld [vmem:[#allocation2 + $0x10] sm:$0xff]  ;;  %p1354_p5 = scmp.ne.s32.totalorder %s1628_s18, 1 }
  0x7e   : > { %986 = vmatpush1.bf16.msra.mxu0 %v1490_v27  ;;  %v1551_v6 = vld [vmem:[%s1927_s6 + $0x180] ss:$8 sps:$4 sm:$0xff]   ;;  %v565_v19 = vld [vmem:[#allocation2 + $0x18] sm:$0xff] }
  0x7f   : > { %1029 = vmatpush1.bf16.msra.mxu1 %v1491_v28  ;;  %987 = vmatprep.subr.bf16.mxu0 %v1492_v29  ;;  %v1552_v7 = vld [vmem:[%s1925_s27] ss:$16 sps:$4 sm:$0xff]   ;;  %v1555_v8 = vld [vmem:[%s1925_s27 + $0x8] ss:$16 sps:$4 sm:$0xff]  }
  0x80   : > { %1030 = vmatprep.subr.bf16.mxu1 %v1494_v30  ;;  %v564_v14 = vld [vmem:[#allocation2] sm:$0xff]  ;;  %v566_v24 = vld [vmem:[#allocation2 + $0x8] sm:$0xff] }
  0x82   : > { %988 = vmatpush1.bf16.msra.mxu0 %v1496_v31 }
  0x83   : > { %1031 = vmatpush1.bf16.msra.mxu1 %v1497_v32  ;;  %989 = vmatprep.subr.bf16.mxu0 %v1498_v33 }
  0x84   : > { %1032 = vmatprep.subr.bf16.mxu1 %v1500_v34 }
  0x86   : > { %990 = vmatpush1.bf16.msra.mxu0 %v1502_v35 }
  0x87   : > { %1033 = vmatpush1.bf16.msra.mxu1 %v1503_v36  ;;  %991 = vmatprep.subr.bf16.mxu0 %v1504_v37 }
  0x88   : > { %1034 = vmatprep.subr.bf16.mxu1 %v1506_v38 }
  0x8a   : > { %992 = vmatpush2.bf16.msra.mxu0 %v1508_v39 }
  0x8b   : > { %1035 = vmatpush2.bf16.msra.mxu1 %v1509_v40  ;;  %993 = vmatprep.subr.bf16.mxu0 %v1510_v41 }
  0x8c   : > { %1036 = vmatprep.subr.bf16.mxu1 %v1512_v42 }
  0x8e   : > { %994 = vmatpush2.bf16.msra.mxu0 %v1514_v43 }
  0x8f   : > { %1037 = vmatpush2.bf16.msra.mxu1 %v1515_v44  ;;  %995 = vmatprep.subr.bf16.mxu0 %v1516_v45 }
  0x90   : > { %1038 = vmatprep.subr.bf16.mxu1 %v1518_v46 }
  0x92   : > { %996 = vmatpush2.bf16.msra.mxu0 %v1520_v47 }
  0x93   : > { %1039 = vmatpush2.bf16.msra.mxu1 %v1521_v48  ;;  %997 = vmatprep.subr.bf16.mxu0 %v1522_v49 }
  0x94   : > { %1040 = vmatprep.subr.bf16.mxu1 %v1524_v50 }
  0x96   : > { %998 = vmatpush2.bf16.msra.mxu0 %v1526_v51 }
  0x97   : > { %1041 = vmatpush2.bf16.msra.mxu1 %v1527_v53  ;;  %999 = vmatprep.subr.bf16.mxu0 %v1528_v54 }
  0x98   : > { %1042 = vmatprep.subr.bf16.mxu1 %v1530_v55 }
  0x9a   : > { %1000 = vmatpush2.bf16.msra.mxu0 %v1532_v57 }
  0x9b   : > { %1043 = vmatpush2.bf16.msra.mxu1 %v1533_v58  ;;  %1001 = vmatprep.subr.bf16.mxu0 %v1534_v59 }
  0x9c   : > { %1044 = vmatprep.subr.bf16.mxu1 %v1536_v60 }
  0x9e   : > { %1002 = vmatpush2.bf16.msra.mxu0 %v1538_v61 }
  0x9f   : > { %1045 = vmatpush2.bf16.msra.mxu1 %v1539_v62  ;;  %1003 = vmatprep.subr.bf16.mxu0 %v1540_v63 }
  0xa0   : > { %1046 = vmatprep.subr.bf16.mxu1 %v1542_v0 }
  0xa2   : > { %1004 = vmatpush2.bf16.msra.mxu0 %v1544_v1 }
  0xa3   : > { %1047 = vmatpush2.bf16.msra.mxu1 %v1545_v2  ;;  %1005 = vmatprep.subr.bf16.mxu0 %v1546_v3 }
  0xa4   : > { %1048 = vmatprep.subr.bf16.mxu1 %v1548_v4 }
  0xa6   : > { %1006 = vmatpush2.bf16.msra.mxu0 %v1550_v5 }
  0xa7   : > { %1049 = vmatpush2.bf16.msra.mxu1 %v1551_v6 }
  0xa9   : > { %1008 = vmatmul.mubr.bf16.vlgmr.msra.gmra.mxu0 %v1552_v7 }
  0xaa   : > { %1051 = vmatmul.mubr.bf16.vlgmr.msra.gmra.mxu1 %v1555_v8 }
 0x169   : > { %v1009_v9 = vpop.f32.mrf.mxu0 }
 0x16a   : > { %v1052_v11 = vpop.f32.mrf.mxu1 }
 0x16b   : > { %v1053_v12 = vadd.f32 %v1052_v11, %v1009_v9  ;;  %v1011_v13 = vpop.f32.mrf.mxu0 }
 0x16c   : > { %v1054_v15 = vpop.f32.mrf.mxu1 }
 0x16d   : > { %v1061_v16 = vadd.f32 %v1053_v12, %v563_v10  ;;  %v1055_v17 = vadd.f32 %v1054_v15, %v1011_v13  ;;  %v1013_v18 = vpop.f32.mrf.mxu0 }
 0x16e   : > { %v1056_v20 = vpop.f32.mrf.mxu1 }
 0x16f   : > { %1065 = vst [vmem:[#allocation2 + $0x10] sm:$0xff] %v1061_v16  ;;  %v1062_v21 = vadd.f32 %v1055_v17, %v564_v14  ;;  %v1057_v22 = vadd.f32 %v1056_v20, %v1013_v18  ;;  %v1015_v23 = vpop.f32.mrf.mxu0 }
 0x170   : > { %v1058_v25 = vpop.f32.mrf.mxu1 }
 0x171   : > { %1066 = vst [vmem:[#allocation2] sm:$0xff] %v1062_v21  ;;  %v1063_v26 = vadd.f32 %v1057_v22, %v565_v19  ;;  %v1059_v27 = vadd.f32 %v1058_v25, %v1015_v23  ;;  %1072 = sbr.rel (%p1354_p5) target bundleno = 389 (0x185), region = 101 }
 0x173   : > { %1067 = vst [vmem:[#allocation2 + $0x18] sm:$0xff] %v1063_v26  ;;  %v1064_v28 = vadd.f32 %v1059_v27, %v566_v24 }
 0x175   : > { %1068 = vst [vmem:[#allocation2 + $0x8] sm:$0xff] %v1064_v28 }
 0x176   : > { %v1079_v29 = vlaneseq  ;;  %v1077_v31 = vld [vmem:[%s551_s4] sm:$0x3]  ;;  %v1073_v32 = vld [vmem:[#allocation2 + $0x10] sm:$0xff] }
 0x178   : > { %v1080_v30 = vshrl.u32 %v1079_v29, 7  ;;  %v1074_v35 = vld [vmem:[#allocation2] sm:$0xff] }
 0x17a   : > { %v1081_v33 = vsub.s32 0, %v1080_v30  ;;  %v1085_v34 = vsub.s32 1, %v1080_v30  ;;  %v1075_v36 = vld [vmem:[#allocation2 + $0x18] sm:$0xff] }
 0x17c   : > { %v1076_v37 = vld [vmem:[#allocation2 + $0x8] sm:$0xff]  ;;  %v1082_v38 = vrot.slane %v1077_v31, %v1081_v33  ;;  %v1086_v39 = vrot.slane %v1077_v31, %v1085_v34 }
 0x17e   : > { %v1089_v40 = vadd.f32 %v1082_v38, %v1073_v32  ;;  %v1090_v41 = vadd.f32 %v1086_v39, %v1074_v35  ;;  %v1091_v42 = vadd.f32 %v1082_v38, %v1075_v36  ;;  %v1092_v43 = vadd.f32 %v1086_v39, %v1076_v37 }
 0x180   : > { %v1093_v44 = vmax.f32 %v1089_v40, 0.0  ;;  %v1094_v45 = vmax.f32 %v1090_v41, 0.0  ;;  %v1095_v46 = vmax.f32 %v1091_v42, 0.0  ;;  %v1096_v47 = vmax.f32 %v1092_v43, 0.0 }
 0x182   : > { %v1364_v48 = vpack.c.bf16 %v1094_v45, %v1093_v44  ;;  %v1365_v49 = vpack.c.bf16 %v1096_v47, %v1095_v46 }
 0x184   : > { %1109 = vst [vmem:[%s1929_s1] sm:$0xff] %v1364_v48  ;;  %1110 = vst [vmem:[%s1929_s1 + $0x8] sm:$0xff] %v1365_v49 }
 0x185 PF: > { %1117 = sbr.rel (!%p1761_p12) target bundleno = 397 (0x18d), region = 105  ;;  %s1366_s16 = sshll.u32 (%p1761_p12), %s1632_s19, 3 }
 0x186   : > { %s1123_s5 = scalar_lea.vmem (%p1761_p12), %s2052_s3, %s1366_s16 }
 0x18b   : > { %v1154_v50 = vld [vmem:[%s1929_s1] sm:$0xff]  ;;  %v1156_v51 = vld [vmem:[%s1929_s1 + $0x8] sm:$0xff] }
 0x18c   : > { %1155 = vst [vmem:[%s1123_s5] sm:$0xff] %v1154_v50  ;;  %1157 = vst [vmem:[%s1123_s5 + $0x10] sm:$0xff] %v1156_v51 }
 0x18d PF: > { %s13_s22 = sadd.s32 1, %s1644_s22   ;;  %s2062_s1 = sld [smem:[#allocation6_spill]] }
 0x18e   : > { %p10_p6 = scmp.ge.s32.totalorder %s13_s22, 6   ;;  %s2063_s12 = smov %s1608_s13 }
 0x18f   : > { %s2064_s13 = smov %s1759_s9  ;;  %s2065_s14 = smov %s1616_s15 }
 0x190   : > { %s2066_s15 = smov %s1756_s8  ;;  %s2067_s16 = smov %s1624_s17 }
 0x191   : > { %s2068_s17 = smov %s1742_s30  ;;  %s2069_s18 = smov %s1636_s20 }
 0x192   : > { %s2070_s19 = smov %s1640_s21  ;;  %s2071_s20 = smov %s2074_s24 }
 0x193   : > { %s2072_s21 = smov %s2062_s1  ;;  %12 = sbr.rel (!%p10_p6) target bundleno = 9 (0x9), region = 185 }

</bundles_post_ra>
